<compile_context>
chip_gen: v6e
topology: v6e:2x2x1
jax: 0.10.0
libtpu: 0.0.40
codegen_flags: <defaults>
</compile_context>

<pallas_src>
import functools

import jax
import jax.numpy as jnp
from jax.experimental import pallas as pl
from jax.experimental.pallas import tpu as pltpu


# ----------------------------------------------------------------------------
# Fused Pallas kernel: banded-matmul conv + ReLU + 2x2 maxpool + 3-layer MLP
# ----------------------------------------------------------------------------
def _make_fused_kernel(NB, Ho, Wo, Hp, Wp, K, F):
    rows = NB * Ho                       # one row per (image, conv output row)

    def kernel(x_ref, bmat_ref, bc_ref, w1_ref, b1_ref, w2_ref, b2_ref,
               w3_ref, b3_ref, out_ref):
        Lpack = x_ref.shape[-1]          # lane-padded Wpad*C

        # ---- conv as K row-shifted MXU matmuls against banded weights -------
        # conv[(n,ho), wo*F+f] = sum_ky x_packed[n, ho+ky, :] @ B_ky[:, wo*F+f]
        conv = jnp.zeros((rows, Wo * F), jnp.float32)
        for ky in range(K):
            xk = x_ref[:, ky:ky + Ho, :].reshape(rows, Lpack)
            conv += jnp.dot(xk, bmat_ref[ky],
                            preferred_element_type=jnp.float32)

        # bias (pre-tiled per lane on host) + ReLU, 128-lane dense VPU work
        conv = jnp.maximum(conv + bc_ref[...], 0.0)

        # ---- 2x2 / stride-2 max pool on lane-dense values --------------------
        c3 = conv.reshape(rows, Wp, 2 * F)                    # pair w columns
        wmax = jnp.maximum(c3[:, :, :F], c3[:, :, F:])        # (rows, Wp, F)
        h3 = wmax.reshape(NB, Hp, 2, Wp * F)                  # pair h rows
        pooled = jnp.maximum(h3[:, :, 0, :], h3[:, :, 1, :])  # (NB, Hp, Wp*F)

        # ---- flatten (hp, wp, f): single relayout; fc1 rows pre-permuted -----
        flat = pooled.reshape(NB, Hp * Wp * F)                # (NB, D)

        # ---- fc1 -> dropout -> relu -> fc2 -> dropout -> relu -> fc3 ---------
        # TODO(synk): dropout with p > 0 (random masking) not implemented; the
        # module's default p = 0.0 makes it an identity, which is what runs.
        h = jnp.dot(flat, w1_ref[...], preferred_element_type=jnp.float32)
        h = jnp.maximum(h + b1_ref[...], 0.0)
        h = jnp.dot(h, w2_ref[...], preferred_element_type=jnp.float32)
        h = jnp.maximum(h + b2_ref[...], 0.0)
        out = jnp.dot(h, w3_ref[...], preferred_element_type=jnp.float32)
        out_ref[...] = (out + b3_ref[...]).astype(out_ref.dtype)

    return kernel


# ----------------------------------------------------------------------------
# Forward pass wrapper
# ----------------------------------------------------------------------------
def classification_cnn_forward(x, params, *, kernel_size=7, stride_conv=1,
                               pool=2, batch_tile=None):
    """Fused forward pass. `x` is NCHW, params use the PyTorch module's shapes."""
    N, C, H, W = x.shape
    K = kernel_size
    pad = (K - 1) // 2
    conv_w = params["conv_w"]                     # (F, C, K, K) PyTorch layout
    F_ = conv_w.shape[0]
    assert stride_conv == 1 and pool == 2, "fused kernel assumes module defaults"
    Ho = 1 + (H + 2 * pad - K) // stride_conv
    Wo = 1 + (W + 2 * pad - K) // stride_conv
    assert Ho % 2 == 0 and Wo % 2 == 0, "pool path assumes even conv output"
    Hp, Wp = Ho // pool, Wo // pool
    D = F_ * Hp * Wp
    hid = params["fc1_w"].shape[1]
    ncls = params["fc3_w"].shape[1]
    ncls_pad = ((ncls + 127) // 128) * 128        # lane-dense output writeback

    NB = batch_tile if batch_tile is not None else min(N, 32)
    assert N % NB == 0, "ragged batches unsupported"
    assert NB == N or NB % 8 == 0, "output block needs NB==N or NB%8==0"

    Hpad, Wpad = H + 2 * pad, W + 2 * pad
    Lreal = Wpad * C
    Lpack = ((Lreal + 127) // 128) * 128          # lane-dense input rows

    # ---- host-side packing (one-time, outside the per-pixel hot path) -------
    # input: NHWC pad, fuse (W, C) into lanes, zero-pad lanes to Lpack.
    x_nhwc = jnp.transpose(x, (0, 2, 3, 1))
    x_pad = jnp.pad(x_nhwc, ((0, 0), (pad, pad), (pad, pad), (0, 0)))
    x_packed = jnp.pad(x_pad.reshape(N, Hpad, Lreal),
                       ((0, 0), (0, 0), (0, Lpack - Lreal)))

    # banded conv weights: B[ky, w*C + c, wo*F + f] = conv_w[f, c, ky, w - wo]
    # for 0 <= w - wo < K, else 0.  One (Lpack, Wo*F) matrix per ky.
    T = jnp.transpose(conv_w, (2, 3, 1, 0))                       # (K, K, C, F)
    kx = jnp.arange(Wpad)[None, :] - jnp.arange(Wo)[:, None]      # (Wo, Wpad)
    valid = ((kx >= 0) & (kx < K)).astype(jnp.float32)
    B5 = jnp.take(T, jnp.clip(kx, 0, K - 1), axis=1)              # (K,Wo,Wpad,C,F)
    B5 = B5 * valid[None, :, :, None, None]
    bmat = jnp.transpose(B5, (0, 2, 3, 1, 4)).reshape(K, Lreal, Wo * F_)
    bmat = jnp.pad(bmat, ((0, 0), (0, Lpack - Lreal), (0, 0)))

    # conv bias tiled per output lane (wo*F + f -> conv_b[f])
    bc = jnp.tile(params["conv_b"], Wo).reshape(1, Wo * F_)

    # fc1 rows permuted from PyTorch's (f, hp, wp) flatten to (hp, wp, f)
    w1 = (params["fc1_w"].reshape(F_, Hp, Wp, hid)
          .transpose(1, 2, 0, 3).reshape(D, hid))
    b1 = params["fc1_b"].reshape(1, hid)
    w2 = params["fc2_w"]
    b2 = params["fc2_b"].reshape(1, hid)
    # fc3 padded to a lane-dense class dim
    w3 = jnp.pad(params["fc3_w"], ((0, 0), (0, ncls_pad - ncls)))
    b3 = jnp.pad(params["fc3_b"].reshape(1, ncls),
                 ((0, 0), (0, ncls_pad - ncls)))

    kernel = _make_fused_kernel(NB, Ho, Wo, Hp, Wp, K, F_)
    res2 = lambda i: (0, 0)           # weights stay resident across the grid
    res3 = lambda i: (0, 0, 0)

    out_padded = pl.pallas_call(
        kernel,
        grid=(N // NB,),
        in_specs=[
            pl.BlockSpec((NB, Hpad, Lpack), lambda i: (i, 0, 0)),
            pl.BlockSpec((K, Lpack, Wo * F_), res3),
            pl.BlockSpec((1, Wo * F_), res2),
            pl.BlockSpec((D, hid), res2),
            pl.BlockSpec((1, hid), res2),
            pl.BlockSpec((hid, hid), res2),
            pl.BlockSpec((1, hid), res2),
            pl.BlockSpec((hid, ncls_pad), res2),
            pl.BlockSpec((1, ncls_pad), res2),
        ],
        out_specs=pl.BlockSpec((NB, ncls_pad), lambda i: (i, 0)),
        out_shape=jax.ShapeDtypeStruct((N, ncls_pad), jnp.float32),
        compiler_params=pltpu.CompilerParams(
            dimension_semantics=("parallel",)),
    )(x_packed, bmat, bc, w1, b1, w2, b2, w3, b3)

    return out_padded[:, :ncls]


# ----------------------------------------------------------------------------
# Parameter init (deterministic, synthetic — mirrors the module's shapes)
# ----------------------------------------------------------------------------
def init_params(key, input_dim=(3, 16, 16), num_filters=8, kernel_size=7,
                pool=2, hidden_dim=32, num_classes=10, weight_scale=0.001):
    C, H, W = input_dim
    pad = (kernel_size - 1) // 2
    Ho = 1 + (H + 2 * pad - kernel_size)
    Wo = 1 + (W + 2 * pad - kernel_size)
    Hp, Wp = Ho // pool, Wo // pool
    D = num_filters * Hp * Wp

    ks = jax.random.split(key, 8)
    conv_w = jax.random.normal(ks[0], (num_filters, C, kernel_size, kernel_size),
                               jnp.float32) * weight_scale
    conv_b = jax.random.normal(ks[1], (num_filters,), jnp.float32) * 0.01
    fc1_w = jax.random.normal(ks[2], (D, hidden_dim), jnp.float32) / jnp.sqrt(D)
    fc1_b = jax.random.normal(ks[3], (hidden_dim,), jnp.float32) * 0.01
    fc2_w = jax.random.normal(ks[4], (hidden_dim, hidden_dim),
                              jnp.float32) / jnp.sqrt(hidden_dim)
    fc2_b = jax.random.normal(ks[5], (hidden_dim,), jnp.float32) * 0.01
    fc3_w = jax.random.normal(ks[6], (hidden_dim, num_classes),
                              jnp.float32) / jnp.sqrt(hidden_dim)
    fc3_b = jax.random.normal(ks[7], (num_classes,), jnp.float32) * 0.01
    return dict(conv_w=conv_w, conv_b=conv_b, fc1_w=fc1_w, fc1_b=fc1_b,
                fc2_w=fc2_w, fc2_b=fc2_b, fc3_w=fc3_w, fc3_b=fc3_b)


# ----------------------------------------------------------------------------
# Pure-XLA reference of the same module (numerical sanity check)
# ----------------------------------------------------------------------------
def _reference_forward(x, params, *, kernel_size=7, pool=2):
    pad = (kernel_size - 1) // 2
    conv = jax.lax.conv_general_dilated(
        x, params["conv_w"], window_strides=(1, 1),
        padding=((pad, pad), (pad, pad)),
        dimension_numbers=("NCHW", "OIHW", "NCHW"))
    conv = jax.nn.relu(conv + params["conv_b"].reshape(1, -1, 1, 1))
    pooled = jax.lax.reduce_window(conv, -jnp.inf, jax.lax.max,
                                   (1, 1, pool, pool), (1, 1, pool, pool),
                                   "VALID")
    flat = pooled.reshape(x.shape[0], -1)
    h = jax.nn.relu(flat @ params["fc1_w"] + params["fc1_b"])
    h = jax.nn.relu(h @ params["fc2_w"] + params["fc2_b"])
    return h @ params["fc3_w"] + params["fc3_b"]


# ----------------------------------------------------------------------------
if __name__ == "__main__":
    key = jax.random.PRNGKey(0)
    k_x, k_p = jax.random.split(key)

    # Small shapes consistent with the module: N=2, input_dim=(3,16,16),
    # num_filters=8, kernel_size=7 (same padding), pool=2, hidden=32, classes=10.
    x = jax.random.normal(k_x, (2, 3, 16, 16), jnp.float32)
    params = init_params(k_p, input_dim=(3, 16, 16), num_filters=8,
                         kernel_size=7, pool=2, hidden_dim=32, num_classes=10,
                         weight_scale=0.001)

    fwd = jax.jit(functools.partial(classification_cnn_forward,
                                    kernel_size=7, stride_conv=1, pool=2))
    out = jax.block_until_ready(fwd(x, params))
    assert out.shape == (2, 10) and out.dtype == jnp.float32

    ref = jax.block_until_ready(_reference_forward(x, params))
    assert jnp.allclose(out, ref, rtol=5e-2, atol=2e-3), (
        f"max abs diff {jnp.max(jnp.abs(out - ref))}")

    print("KERNEL_OK")
</pallas_src>

<mosaic_0001>
module attributes {stable_mosaic.version = 11 : i64} {
  func.func @kernel(%arg0: i32, %arg1: memref<2x22x128xf32, #tpu.memory_space<vmem>>, %arg2: memref<7x128x128xf32, #tpu.memory_space<vmem>>, %arg3: memref<1x128xf32, #tpu.memory_space<vmem>>, %arg4: memref<512x32xf32, #tpu.memory_space<vmem>>, %arg5: memref<1x32xf32, #tpu.memory_space<vmem>>, %arg6: memref<32x32xf32, #tpu.memory_space<vmem>>, %arg7: memref<1x32xf32, #tpu.memory_space<vmem>>, %arg8: memref<32x128xf32, #tpu.memory_space<vmem>>, %arg9: memref<1x128xf32, #tpu.memory_space<vmem>>, %arg10: memref<2x128xf32, #tpu.memory_space<vmem>>) attributes {dimension_semantics = [#tpu.dimension_semantics<parallel>], iteration_bounds = array<i64: 1>, scalar_prefetch = 0 : i64, scratch_operands = 0 : i64, tpu.core_type = #tpu.core_type<tc>, window_params = [{transform_indices = @transform_0, window_bounds = array<i64: 2, 22, 128>}, {pipeline_mode = #tpu.pipeline_mode<synchronous>, transform_indices = @transform_1, window_bounds = array<i64: 7, 128, 128>}, {pipeline_mode = #tpu.pipeline_mode<synchronous>, transform_indices = @transform_2, window_bounds = array<i64: 1, 128>}, {pipeline_mode = #tpu.pipeline_mode<synchronous>, transform_indices = @transform_3, window_bounds = array<i64: 512, 32>}, {pipeline_mode = #tpu.pipeline_mode<synchronous>, transform_indices = @transform_4, window_bounds = array<i64: 1, 32>}, {pipeline_mode = #tpu.pipeline_mode<synchronous>, transform_indices = @transform_5, window_bounds = array<i64: 32, 32>}, {pipeline_mode = #tpu.pipeline_mode<synchronous>, transform_indices = @transform_6, window_bounds = array<i64: 1, 32>}, {pipeline_mode = #tpu.pipeline_mode<synchronous>, transform_indices = @transform_7, window_bounds = array<i64: 32, 128>}, {pipeline_mode = #tpu.pipeline_mode<synchronous>, transform_indices = @transform_8, window_bounds = array<i64: 1, 128>}, {transform_indices = @transform_9, window_bounds = array<i64: 2, 128>}]} {
    %cst = arith.constant 0.000000e+00 : f32
    %0 = vector.broadcast %cst : f32 to vector<32x128xf32>
    %c0 = arith.constant 0 : index
    %c0_0 = arith.constant 0 : index
    %c0_1 = arith.constant 0 : index
    %1 = vector.load %arg1[%c0, %c0_0, %c0_1] : memref<2x22x128xf32, #tpu.memory_space<vmem>>, vector<2x16x128xf32>
    %2 = vector.shape_cast %1 : vector<2x16x128xf32> to vector<32x128xf32>
    %c0_2 = arith.constant 0 : index
    %c0_3 = arith.constant 0 : index
    %c0_4 = arith.constant 0 : index
    %3 = vector.load %arg2[%c0_2, %c0_3, %c0_4] : memref<7x128x128xf32, #tpu.memory_space<vmem>>, vector<1x128x128xf32>
    %4 = vector.shape_cast %3 : vector<1x128x128xf32> to vector<128x128xf32>
    %cst_5 = arith.constant dense<0.000000e+00> : vector<32x128xf32>
    %5 = tpu.matmul %2, %4, %cst_5 {dimension_numbers = #tpu.dot_dimension_numbers<[1], [0], [0], [1], [0, 0, 1, 1], [], []>} : vector<32x128xf32>, vector<128x128xf32>, vector<32x128xf32> -> vector<32x128xf32>
    %6 = arith.addf %0, %5 : vector<32x128xf32>
    %c0_6 = arith.constant 0 : index
    %c1 = arith.constant 1 : index
    %c0_7 = arith.constant 0 : index
    %7 = vector.load %arg1[%c0_6, %c1, %c0_7] : memref<2x22x128xf32, #tpu.memory_space<vmem>>, vector<2x16x128xf32>
    %8 = vector.shape_cast %7 : vector<2x16x128xf32> to vector<32x128xf32>
    %c1_8 = arith.constant 1 : index
    %c0_9 = arith.constant 0 : index
    %c0_10 = arith.constant 0 : index
    %9 = vector.load %arg2[%c1_8, %c0_9, %c0_10] : memref<7x128x128xf32, #tpu.memory_space<vmem>>, vector<1x128x128xf32>
    %10 = vector.shape_cast %9 : vector<1x128x128xf32> to vector<128x128xf32>
    %cst_11 = arith.constant dense<0.000000e+00> : vector<32x128xf32>
    %11 = tpu.matmul %8, %10, %cst_11 {dimension_numbers = #tpu.dot_dimension_numbers<[1], [0], [0], [1], [0, 0, 1, 1], [], []>} : vector<32x128xf32>, vector<128x128xf32>, vector<32x128xf32> -> vector<32x128xf32>
    %12 = arith.addf %6, %11 : vector<32x128xf32>
    %c0_12 = arith.constant 0 : index
    %c2 = arith.constant 2 : index
    %c0_13 = arith.constant 0 : index
    %13 = vector.load %arg1[%c0_12, %c2, %c0_13] : memref<2x22x128xf32, #tpu.memory_space<vmem>>, vector<2x16x128xf32>
    %14 = vector.shape_cast %13 : vector<2x16x128xf32> to vector<32x128xf32>
    %c2_14 = arith.constant 2 : index
    %c0_15 = arith.constant 0 : index
    %c0_16 = arith.constant 0 : index
    %15 = vector.load %arg2[%c2_14, %c0_15, %c0_16] : memref<7x128x128xf32, #tpu.memory_space<vmem>>, vector<1x128x128xf32>
    %16 = vector.shape_cast %15 : vector<1x128x128xf32> to vector<128x128xf32>
    %cst_17 = arith.constant dense<0.000000e+00> : vector<32x128xf32>
    %17 = tpu.matmul %14, %16, %cst_17 {dimension_numbers = #tpu.dot_dimension_numbers<[1], [0], [0], [1], [0, 0, 1, 1], [], []>} : vector<32x128xf32>, vector<128x128xf32>, vector<32x128xf32> -> vector<32x128xf32>
    %18 = arith.addf %12, %17 : vector<32x128xf32>
    %c0_18 = arith.constant 0 : index
    %c3 = arith.constant 3 : index
    %c0_19 = arith.constant 0 : index
    %19 = vector.load %arg1[%c0_18, %c3, %c0_19] : memref<2x22x128xf32, #tpu.memory_space<vmem>>, vector<2x16x128xf32>
    %20 = vector.shape_cast %19 : vector<2x16x128xf32> to vector<32x128xf32>
    %c3_20 = arith.constant 3 : index
    %c0_21 = arith.constant 0 : index
    %c0_22 = arith.constant 0 : index
    %21 = vector.load %arg2[%c3_20, %c0_21, %c0_22] : memref<7x128x128xf32, #tpu.memory_space<vmem>>, vector<1x128x128xf32>
    %22 = vector.shape_cast %21 : vector<1x128x128xf32> to vector<128x128xf32>
    %cst_23 = arith.constant dense<0.000000e+00> : vector<32x128xf32>
    %23 = tpu.matmul %20, %22, %cst_23 {dimension_numbers = #tpu.dot_dimension_numbers<[1], [0], [0], [1], [0, 0, 1, 1], [], []>} : vector<32x128xf32>, vector<128x128xf32>, vector<32x128xf32> -> vector<32x128xf32>
    %24 = arith.addf %18, %23 : vector<32x128xf32>
    %c0_24 = arith.constant 0 : index
    %c4 = arith.constant 4 : index
    %c0_25 = arith.constant 0 : index
    %25 = vector.load %arg1[%c0_24, %c4, %c0_25] : memref<2x22x128xf32, #tpu.memory_space<vmem>>, vector<2x16x128xf32>
    %26 = vector.shape_cast %25 : vector<2x16x128xf32> to vector<32x128xf32>
    %c4_26 = arith.constant 4 : index
    %c0_27 = arith.constant 0 : index
    %c0_28 = arith.constant 0 : index
    %27 = vector.load %arg2[%c4_26, %c0_27, %c0_28] : memref<7x128x128xf32, #tpu.memory_space<vmem>>, vector<1x128x128xf32>
    %28 = vector.shape_cast %27 : vector<1x128x128xf32> to vector<128x128xf32>
    %cst_29 = arith.constant dense<0.000000e+00> : vector<32x128xf32>
    %29 = tpu.matmul %26, %28, %cst_29 {dimension_numbers = #tpu.dot_dimension_numbers<[1], [0], [0], [1], [0, 0, 1, 1], [], []>} : vector<32x128xf32>, vector<128x128xf32>, vector<32x128xf32> -> vector<32x128xf32>
    %30 = arith.addf %24, %29 : vector<32x128xf32>
    %c0_30 = arith.constant 0 : index
    %c5 = arith.constant 5 : index
    %c0_31 = arith.constant 0 : index
    %31 = vector.load %arg1[%c0_30, %c5, %c0_31] : memref<2x22x128xf32, #tpu.memory_space<vmem>>, vector<2x16x128xf32>
    %32 = vector.shape_cast %31 : vector<2x16x128xf32> to vector<32x128xf32>
    %c5_32 = arith.constant 5 : index
    %c0_33 = arith.constant 0 : index
    %c0_34 = arith.constant 0 : index
    %33 = vector.load %arg2[%c5_32, %c0_33, %c0_34] : memref<7x128x128xf32, #tpu.memory_space<vmem>>, vector<1x128x128xf32>
    %34 = vector.shape_cast %33 : vector<1x128x128xf32> to vector<128x128xf32>
    %cst_35 = arith.constant dense<0.000000e+00> : vector<32x128xf32>
    %35 = tpu.matmul %32, %34, %cst_35 {dimension_numbers = #tpu.dot_dimension_numbers<[1], [0], [0], [1], [0, 0, 1, 1], [], []>} : vector<32x128xf32>, vector<128x128xf32>, vector<32x128xf32> -> vector<32x128xf32>
    %36 = arith.addf %30, %35 : vector<32x128xf32>
    %c0_36 = arith.constant 0 : index
    %c6 = arith.constant 6 : index
    %c0_37 = arith.constant 0 : index
    %37 = vector.load %arg1[%c0_36, %c6, %c0_37] : memref<2x22x128xf32, #tpu.memory_space<vmem>>, vector<2x16x128xf32>
    %38 = vector.shape_cast %37 : vector<2x16x128xf32> to vector<32x128xf32>
    %c6_38 = arith.constant 6 : index
    %c0_39 = arith.constant 0 : index
    %c0_40 = arith.constant 0 : index
    %39 = vector.load %arg2[%c6_38, %c0_39, %c0_40] : memref<7x128x128xf32, #tpu.memory_space<vmem>>, vector<1x128x128xf32>
    %40 = vector.shape_cast %39 : vector<1x128x128xf32> to vector<128x128xf32>
    %cst_41 = arith.constant dense<0.000000e+00> : vector<32x128xf32>
    %41 = tpu.matmul %38, %40, %cst_41 {dimension_numbers = #tpu.dot_dimension_numbers<[1], [0], [0], [1], [0, 0, 1, 1], [], []>} : vector<32x128xf32>, vector<128x128xf32>, vector<32x128xf32> -> vector<32x128xf32>
    %42 = arith.addf %36, %41 : vector<32x128xf32>
    %c0_42 = arith.constant 0 : index
    %c0_43 = arith.constant 0 : index
    %43 = vector.load %arg3[%c0_42, %c0_43] : memref<1x128xf32, #tpu.memory_space<vmem>>, vector<1x128xf32>
    %44 = vector.broadcast %43 : vector<1x128xf32> to vector<32x128xf32>
    %45 = arith.addf %42, %44 : vector<32x128xf32>
    %cst_44 = arith.constant 0.000000e+00 : f32
    %46 = vector.broadcast %cst_44 : f32 to vector<32x128xf32>
    %47 = arith.maximumf %45, %46 : vector<32x128xf32>
    %48 = vector.shape_cast %47 : vector<32x128xf32> to vector<32x8x16xf32>
    %49 = vector.extract_strided_slice %48 {offsets = [0, 0, 0], sizes = [32, 8, 8], strides = [1, 1, 1]} : vector<32x8x16xf32> to vector<32x8x8xf32>
    %50 = vector.extract_strided_slice %48 {offsets = [0, 0, 8], sizes = [32, 8, 8], strides = [1, 1, 1]} : vector<32x8x16xf32> to vector<32x8x8xf32>
    %51 = arith.maximumf %49, %50 : vector<32x8x8xf32>
    %52 = vector.shape_cast %51 : vector<32x8x8xf32> to vector<2x8x2x64xf32>
    %53 = vector.extract_strided_slice %52 {offsets = [0, 0, 0, 0], sizes = [2, 8, 1, 64], strides = [1, 1, 1, 1]} : vector<2x8x2x64xf32> to vector<2x8x1x64xf32>
    %54 = vector.shape_cast %53 : vector<2x8x1x64xf32> to vector<2x8x64xf32>
    %55 = vector.extract_strided_slice %52 {offsets = [0, 0, 1, 0], sizes = [2, 8, 1, 64], strides = [1, 1, 1, 1]} : vector<2x8x2x64xf32> to vector<2x8x1x64xf32>
    %56 = vector.shape_cast %55 : vector<2x8x1x64xf32> to vector<2x8x64xf32>
    %57 = arith.maximumf %54, %56 : vector<2x8x64xf32>
    %58 = vector.shape_cast %57 : vector<2x8x64xf32> to vector<2x512xf32>
    %c0_45 = arith.constant 0 : index
    %c0_46 = arith.constant 0 : index
    %59 = vector.load %arg4[%c0_45, %c0_46] : memref<512x32xf32, #tpu.memory_space<vmem>>, vector<512x32xf32>
    %cst_47 = arith.constant dense<0.000000e+00> : vector<2x32xf32>
    %60 = tpu.matmul %58, %59, %cst_47 {dimension_numbers = #tpu.dot_dimension_numbers<[1], [0], [0], [1], [0, 0, 1, 1], [], []>} : vector<2x512xf32>, vector<512x32xf32>, vector<2x32xf32> -> vector<2x32xf32>
    %c0_48 = arith.constant 0 : index
    %c0_49 = arith.constant 0 : index
    %61 = vector.load %arg5[%c0_48, %c0_49] : memref<1x32xf32, #tpu.memory_space<vmem>>, vector<1x32xf32>
    %62 = vector.broadcast %61 : vector<1x32xf32> to vector<2x32xf32>
    %63 = arith.addf %60, %62 : vector<2x32xf32>
    %cst_50 = arith.constant 0.000000e+00 : f32
    %64 = vector.broadcast %cst_50 : f32 to vector<2x32xf32>
    %65 = arith.maximumf %63, %64 : vector<2x32xf32>
    %c0_51 = arith.constant 0 : index
    %c0_52 = arith.constant 0 : index
    %66 = vector.load %arg6[%c0_51, %c0_52] : memref<32x32xf32, #tpu.memory_space<vmem>>, vector<32x32xf32>
    %cst_53 = arith.constant dense<0.000000e+00> : vector<2x32xf32>
    %67 = tpu.matmul %65, %66, %cst_53 {dimension_numbers = #tpu.dot_dimension_numbers<[1], [0], [0], [1], [0, 0, 1, 1], [], []>} : vector<2x32xf32>, vector<32x32xf32>, vector<2x32xf32> -> vector<2x32xf32>
    %c0_54 = arith.constant 0 : index
    %c0_55 = arith.constant 0 : index
    %68 = vector.load %arg7[%c0_54, %c0_55] : memref<1x32xf32, #tpu.memory_space<vmem>>, vector<1x32xf32>
    %69 = vector.broadcast %68 : vector<1x32xf32> to vector<2x32xf32>
    %70 = arith.addf %67, %69 : vector<2x32xf32>
    %cst_56 = arith.constant 0.000000e+00 : f32
    %71 = vector.broadcast %cst_56 : f32 to vector<2x32xf32>
    %72 = arith.maximumf %70, %71 : vector<2x32xf32>
    %c0_57 = arith.constant 0 : index
    %c0_58 = arith.constant 0 : index
    %73 = vector.load %arg8[%c0_57, %c0_58] : memref<32x128xf32, #tpu.memory_space<vmem>>, vector<32x128xf32>
    %cst_59 = arith.constant dense<0.000000e+00> : vector<2x128xf32>
    %74 = tpu.matmul %72, %73, %cst_59 {dimension_numbers = #tpu.dot_dimension_numbers<[1], [0], [0], [1], [0, 0, 1, 1], [], []>} : vector<2x32xf32>, vector<32x128xf32>, vector<2x128xf32> -> vector<2x128xf32>
    %c0_60 = arith.constant 0 : index
    %c0_61 = arith.constant 0 : index
    %75 = vector.load %arg9[%c0_60, %c0_61] : memref<1x128xf32, #tpu.memory_space<vmem>>, vector<1x128xf32>
    %76 = vector.broadcast %75 : vector<1x128xf32> to vector<2x128xf32>
    %77 = arith.addf %74, %76 : vector<2x128xf32>
    %c0_62 = arith.constant 0 : index
    %c0_63 = arith.constant 0 : index
    %78 = vector.load %arg10[%c0_62, %c0_63] : memref<2x128xf32, #tpu.memory_space<vmem>>, vector<2x128xf32>
    tpu.vector_store %arg10[%c0_62, %c0_63], %77 {strides = array<i32>} : memref<2x128xf32, #tpu.memory_space<vmem>>, vector<2x128xf32>,
    return
  }
  func.func @transform_0(%arg0: i32) -> (i32, i32, i32) {
    %c0_i32 = arith.constant 0 : i32
    %c0_i32_0 = arith.constant 0 : i32
    %c0_i32_1 = arith.constant 0 : i32
    return %arg0, %c0_i32, %c0_i32_0 : i32, i32, i32
  }
  func.func @transform_1(%arg0: i32) -> (i32, i32, i32) {
    %c0_i32 = arith.constant 0 : i32
    %c0_i32_0 = arith.constant 0 : i32
    %c0_i32_1 = arith.constant 0 : i32
    %c0_i32_2 = arith.constant 0 : i32
    return %c0_i32, %c0_i32_0, %c0_i32_1 : i32, i32, i32
  }
  func.func @transform_2(%arg0: i32) -> (i32, i32) {
    %c0_i32 = arith.constant 0 : i32
    %c0_i32_0 = arith.constant 0 : i32
    %c0_i32_1 = arith.constant 0 : i32
    return %c0_i32, %c0_i32_0 : i32, i32
  }
  func.func @transform_3(%arg0: i32) -> (i32, i32) {
    %c0_i32 = arith.constant 0 : i32
    %c0_i32_0 = arith.constant 0 : i32
    %c0_i32_1 = arith.constant 0 : i32
    return %c0_i32, %c0_i32_0 : i32, i32
  }
  func.func @transform_4(%arg0: i32) -> (i32, i32) {
    %c0_i32 = arith.constant 0 : i32
    %c0_i32_0 = arith.constant 0 : i32
    %c0_i32_1 = arith.constant 0 : i32
    return %c0_i32, %c0_i32_0 : i32, i32
  }
  func.func @transform_5(%arg0: i32) -> (i32, i32) {
    %c0_i32 = arith.constant 0 : i32
    %c0_i32_0 = arith.constant 0 : i32
    %c0_i32_1 = arith.constant 0 : i32
    return %c0_i32, %c0_i32_0 : i32, i32
  }
  func.func @transform_6(%arg0: i32) -> (i32, i32) {
    %c0_i32 = arith.constant 0 : i32
    %c0_i32_0 = arith.constant 0 : i32
    %c0_i32_1 = arith.constant 0 : i32
    return %c0_i32, %c0_i32_0 : i32, i32
  }
  func.func @transform_7(%arg0: i32) -> (i32, i32) {
    %c0_i32 = arith.constant 0 : i32
    %c0_i32_0 = arith.constant 0 : i32
    %c0_i32_1 = arith.constant 0 : i32
    return %c0_i32, %c0_i32_0 : i32, i32
  }
  func.func @transform_8(%arg0: i32) -> (i32, i32) {
    %c0_i32 = arith.constant 0 : i32
    %c0_i32_0 = arith.constant 0 : i32
    %c0_i32_1 = arith.constant 0 : i32
    return %c0_i32, %c0_i32_0 : i32, i32
  }
  func.func @transform_9(%arg0: i32) -> (i32, i32) {
    %c0_i32 = arith.constant 0 : i32
    %c0_i32_0 = arith.constant 0 : i32
    return %arg0, %c0_i32 : i32, i32
  }
}

</mosaic_0001>

<bundles_post_ra>
// kernel: tile.8
= control target key start
LH: loop header
LB: loop body
LE: loop exit
PB: predicated region body
PF: predicated region fallthrough
CT: control target
= control target key end

     0   :  { %s28_s0 = inlined_call_operand.vmem [shape: f32[8], index: 0, kind: input, shape index: {}]   ;;  %s29_s1 = inlined_call_operand.vmem [shape: f32[16,8], index: 1, kind: output, shape index: {}]  }
   0x1   :  { %v4_v0 = vld [vmem:[%s28_s0] ss:$0 sm:$0xff] }
   0x2   :  { %5 = vst [vmem:[%s29_s1] sm:$0xff] %v4_v0  ;;  %8 = vst [vmem:[%s29_s1 + $0x8] sm:$0xff] %v4_v0 }

// kernel: tile.9
= control target key start
LH: loop header
LB: loop body
LE: loop exit
PB: predicated region body
PF: predicated region fallthrough
CT: control target
= control target key end

     0   :  { %s133_s10 = smov 120   ;;  %s134_s11 = smov 104   ;;  %vm3_vm0 = vcmask 64512   ;;  %vm9_vm1 = vcmask 1048512   ;;  %vm15_vm2 = vcmask 982912   ;;  %vm21_vm3 = vcmask 917312   ;;  %s209_s0 = inlined_call_operand.vmem [shape: f32[16,8], index: 0, kind: input, shape index: {}]   ;;  %s210_s1 = inlined_call_operand.vmem [shape: f32[1,128], index: 1, kind: output, shape index: {}]  }
   0x1   :  { %v103_v0 = vld [vmem:[%s209_s0 + $0xf] sm:$0x1]   ;;  %v105_v1 = vld [vmem:[%s209_s0 + $0xd] sm:$0x1]   ;;  %v104_v2 = vld [vmem:[%s209_s0 + $0xe] sm:$0x1]  }
   0x2   :  { %7 = vrot.lane.b32.xlu0 %v103_v0, %s133_s10  ;;  %19 = vrot.lane.b32.xlu1 %v105_v1, %s134_s11  ;;  %v106_v3 = vld [vmem:[%s209_s0 + $0xc] sm:$0x1]   ;;  %s135_s16 = smov 112   ;;  %s136_s17 = smov 96   ;;  %v107_v4 = vld [vmem:[%s209_s0 + $0xb] sm:$0x1]  }
   0x3   :  { %v108_v5 = vld [vmem:[%s209_s0 + $0xa] sm:$0x1]   ;;  %v2_v6 = vld [vmem:[%s209_s0] sm:$0x1]   ;;  %s137_s24 = smov 88   ;;  %s138_s25 = smov 80  }
   0x4   :  { %4 = vst.msk [vmem:[#allocation0] sm:$0x1] %vm3_vm0, %v2_v6   ;;  %v109_v7 = vld [vmem:[%s209_s0 + $0x9] sm:$0x1]   ;;  %v110_v8 = vld [vmem:[%s209_s0 + $0x8] sm:$0x1]  }
   0x5   :  { %s139_s30 = smov 72   ;;  %s140_s2 = smov 64   ;;  %v111_v9 = vld [vmem:[%s209_s0 + $0x7] sm:$0x1]   ;;  %v112_v10 = vld [vmem:[%s209_s0 + $0x6] sm:$0x1]  }
   0x6   :  { %13 = vrot.lane.b32.xlu0 %v104_v2, %s135_s16  ;;  %25 = vrot.lane.b32.xlu1 %v106_v3, %s136_s17  ;;  %s141_s7 = smov 56   ;;  %s142_s8 = smov 48   ;;  %v113_v11 = vld [vmem:[%s209_s0 + $0x5] sm:$0x1]   ;;  %v114_v12 = vld [vmem:[%s209_s0 + $0x4] sm:$0x1]  }
   0x7   :  { %s143_s13 = smov 40   ;;  %s144_s14 = smov 32   ;;  %v115_v13 = vld [vmem:[%s209_s0 + $0x3] sm:$0x1]   ;;  %v116_v14 = vld [vmem:[%s209_s0 + $0x2] sm:$0x1]  }
   0x8   :  { %s145_s19 = smov 24   ;;  %s146_s20 = smov 16   ;;  %v117_v15 = vld [vmem:[%s209_s0 + $0x1] sm:$0x1]   ;;  %vm27_vm4 = vcmask 851712   ;;  %vm33_vm5 = vcmask 786112  }
   0x9   :  { %s147_s0 = smov 8   ;;  %vm39_vm6 = vcmask 720512   ;;  %vm45_vm7 = vcmask 654912   ;;  %vm51_vm8 = vcmask 589312   ;;  %vm57_vm9 = vcmask 523712  }
   0xa   :  { %31 = vrot.lane.b32.xlu0 %v107_v4, %s137_s24  ;;  %37 = vrot.lane.b32.xlu1 %v108_v5, %s138_s25  ;;  %vm63_vm10 = vcmask 458112   ;;  %vm69_vm11 = vcmask 392512   ;;  %vm75_vm12 = vcmask 326912   ;;  %vm81_vm13 = vcmask 261312  }
   0xb   :  { %vm87_vm14 = vcmask 195712   ;;  %vm93_vm15 = vcmask 130112  }
   0xe   :  { %43 = vrot.lane.b32.xlu0 %v109_v7, %s139_s30  ;;  %49 = vrot.lane.b32.xlu1 %v110_v8, %s140_s2 }
  0x12   :  { %55 = vrot.lane.b32.xlu0 %v111_v9, %s141_s7  ;;  %61 = vrot.lane.b32.xlu1 %v112_v10, %s142_s8 }
  0x16   :  { %67 = vrot.lane.b32.xlu0 %v113_v11, %s143_s13  ;;  %73 = vrot.lane.b32.xlu1 %v114_v12, %s144_s14 }
  0x1a   :  { %79 = vrot.lane.b32.xlu0 %v115_v13, %s145_s19  ;;  %85 = vrot.lane.b32.xlu1 %v116_v14, %s146_s20 }
  0x1e   :  { %91 = vrot.lane.b32.xlu0 %v117_v15, %s147_s0 }
  0x74   :  { %v8_v16 = vpop.permute.xlu0 %7   ;;  %v20_v17 = vpop.permute.xlu1 %19  }
  0x75   :  { %10 = vst.msk [vmem:[#allocation0] sm:$0x1] %vm9_vm1, %v8_v16  }
  0x78   :  { %v14_v18 = vpop.permute.xlu0 %13   ;;  %v26_v19 = vpop.permute.xlu1 %25  }
  0x79   :  { %16 = vst.msk [vmem:[#allocation0] sm:$0x1] %vm15_vm2, %v14_v18  }
  0x7a   :  { %22 = vst.msk [vmem:[#allocation0] sm:$0x1] %vm21_vm3, %v20_v17  }
  0x7b   :  { %28 = vst.msk [vmem:[#allocation0] sm:$0x1] %vm27_vm4, %v26_v19  }
  0x7c   :  { %v32_v20 = vpop.permute.xlu0 %31   ;;  %v38_v21 = vpop.permute.xlu1 %37  }
  0x7d   :  { %34 = vst.msk [vmem:[#allocation0] sm:$0x1] %vm33_vm5, %v32_v20  }
  0x7e   :  { %40 = vst.msk [vmem:[#allocation0] sm:$0x1] %vm39_vm6, %v38_v21  }
  0x80   :  { %v44_v22 = vpop.permute.xlu0 %43   ;;  %v50_v23 = vpop.permute.xlu1 %49  }
  0x81   :  { %46 = vst.msk [vmem:[#allocation0] sm:$0x1] %vm45_vm7, %v44_v22  }
  0x82   :  { %52 = vst.msk [vmem:[#allocation0] sm:$0x1] %vm51_vm8, %v50_v23  }
  0x84   :  { %v56_v24 = vpop.permute.xlu0 %55   ;;  %v62_v25 = vpop.permute.xlu1 %61  }
  0x85   :  { %58 = vst.msk [vmem:[#allocation0] sm:$0x1] %vm57_vm9, %v56_v24  }
  0x86   :  { %64 = vst.msk [vmem:[#allocation0] sm:$0x1] %vm63_vm10, %v62_v25  }
  0x88   :  { %v68_v26 = vpop.permute.xlu0 %67   ;;  %v74_v27 = vpop.permute.xlu1 %73  }
  0x89   :  { %70 = vst.msk [vmem:[#allocation0] sm:$0x1] %vm69_vm11, %v68_v26  }
  0x8a   :  { %76 = vst.msk [vmem:[#allocation0] sm:$0x1] %vm75_vm12, %v74_v27  }
  0x8c   :  { %v80_v28 = vpop.permute.xlu0 %79   ;;  %v86_v29 = vpop.permute.xlu1 %85  }
  0x8d   :  { %82 = vst.msk [vmem:[#allocation0] sm:$0x1] %vm81_vm13, %v80_v28  }
  0x8e   :  { %88 = vst.msk [vmem:[#allocation0] sm:$0x1] %vm87_vm14, %v86_v29  }
  0x90   :  { %v92_v30 = vpop.permute.xlu0 %91  }
  0x91   :  { %94 = vst.msk [vmem:[#allocation0] sm:$0x1] %vm93_vm15, %v92_v30  }
  0x98   :  { %v99_v31 = vld [vmem:[#allocation0] sm:$0x1] }
  0x99   :  { %102 = vst [vmem:[%s210_s1] sm:$0x1] %v99_v31 }

// kernel: classification_cnn_forward.1
= control target key start
LH: loop header
LB: loop body
LE: loop exit
PB: predicated region body
PF: predicated region fallthrough
CT: control target
= control target key end

     0   :  { %s6811_s0 = inlined_call_operand.vmem [shape: f32[2,22,128], index: 0, kind: input, shape index: {}]   ;;  %s6812_s1 = inlined_call_operand.vmem [shape: f32[7,128,128], index: 1, kind: input, shape index: {}]   ;;  %s6813_s2 = inlined_call_operand.vmem [shape: f32[1,128], index: 2, kind: input, shape index: {}]   ;;  %s6814_s3 = inlined_call_operand.vmem [shape: f32[512,32], index: 3, kind: input, shape index: {}]   ;;  %s6815_s4 = inlined_call_operand.vmem [shape: f32[1,32], index: 4, kind: input, shape index: {}]   ;;  %s6816_s5 = inlined_call_operand.vmem [shape: f32[32,32], index: 5, kind: input, shape index: {}]   ;;  %s6817_s6 = inlined_call_operand.vmem [shape: f32[1,32], index: 6, kind: input, shape index: {}]   ;;  %s6818_s7 = inlined_call_operand.vmem [shape: f32[32,128], index: 7, kind: input, shape index: {}]   ;;  %s6819_s8 = inlined_call_operand.vmem [shape: f32[1,128], index: 8, kind: input, shape index: {}]   ;;  %s6820_s9 = inlined_call_operand.hbm [shape: f32[2,128], index: 9, kind: output, shape index: {}]  }
   0x1   :  { %v3839_v0 = vld [vmem:[%s6812_s1 + $0xf8] sm:$0xff]  ;;  %v3838_v2 = vld [vmem:[%s6812_s1 + $0xf0] sm:$0xff]  ;;  %v3837_v4 = vld [vmem:[%s6812_s1 + $0xe8] sm:$0xff] }
   0x2   :  { %v52_v1 = vld [vmem:[%s6812_s1 + $0x78] sm:$0xff]  ;;  %4146 = vmatprep.subr.mxu0 %v3839_v0  ;;  %v51_v3 = vld [vmem:[%s6812_s1 + $0x70] sm:$0xff]  ;;  %v50_v5 = vld [vmem:[%s6812_s1 + $0x68] sm:$0xff] }
   0x3   :  { %4184 = vmatprep.subr.mxu1 %v52_v1  ;;  %4147 = vmatpush3.msra.mxu0 %v3839_v0  ;;  %v3836_v6 = vld [vmem:[%s6812_s1 + $0xe0] sm:$0xff]  ;;  %v3835_v8 = vld [vmem:[%s6812_s1 + $0xd8] sm:$0xff]  ;;  %v3834_v10 = vld [vmem:[%s6812_s1 + $0xd0] sm:$0xff] }
   0x4   :  { %4185 = vmatpush3.msra.mxu1 %v52_v1  ;;  %4148 = vmatprep.subr.mxu0 %v3838_v2  ;;  %v49_v7 = vld [vmem:[%s6812_s1 + $0x60] sm:$0xff]  ;;  %v48_v9 = vld [vmem:[%s6812_s1 + $0x58] sm:$0xff]  ;;  %v47_v11 = vld [vmem:[%s6812_s1 + $0x50] sm:$0xff] }
   0x5   :  { %4186 = vmatprep.subr.mxu1 %v51_v3  ;;  %4149 = vmatpush3.msra.mxu0 %v3838_v2  ;;  %v3833_v12 = vld [vmem:[%s6812_s1 + $0xc8] sm:$0xff]  ;;  %v3832_v14 = vld [vmem:[%s6812_s1 + $0xc0] sm:$0xff]  ;;  %v3831_v16 = vld [vmem:[%s6812_s1 + $0xb8] sm:$0xff] }
   0x6   :  { %4187 = vmatpush3.msra.mxu1 %v51_v3  ;;  %4150 = vmatprep.subr.mxu0 %v3837_v4  ;;  %v46_v13 = vld [vmem:[%s6812_s1 + $0x48] sm:$0xff]  ;;  %v45_v15 = vld [vmem:[%s6812_s1 + $0x40] sm:$0xff]  ;;  %v44_v17 = vld [vmem:[%s6812_s1 + $0x38] sm:$0xff] }
   0x7   :  { %4188 = vmatprep.subr.mxu1 %v50_v5  ;;  %4151 = vmatpush3.msra.mxu0 %v3837_v4  ;;  %v3830_v18 = vld [vmem:[%s6812_s1 + $0xb0] sm:$0xff]  ;;  %v3829_v20 = vld [vmem:[%s6812_s1 + $0xa8] sm:$0xff]  ;;  %v3828_v22 = vld [vmem:[%s6812_s1 + $0xa0] sm:$0xff] }
   0x8   :  { %4189 = vmatpush3.msra.mxu1 %v50_v5  ;;  %4152 = vmatprep.subr.mxu0 %v3836_v6  ;;  %v43_v19 = vld [vmem:[%s6812_s1 + $0x30] sm:$0xff]  ;;  %v42_v21 = vld [vmem:[%s6812_s1 + $0x28] sm:$0xff]  ;;  %v41_v23 = vld [vmem:[%s6812_s1 + $0x20] sm:$0xff] }
   0x9   :  { %4190 = vmatprep.subr.mxu1 %v49_v7  ;;  %4153 = vmatpush3.msra.mxu0 %v3836_v6  ;;  %v3827_v24 = vld [vmem:[%s6812_s1 + $0x98] sm:$0xff]  ;;  %v3826_v26 = vld [vmem:[%s6812_s1 + $0x90] sm:$0xff]  ;;  %v3825_v28 = vld [vmem:[%s6812_s1 + $0x88] sm:$0xff] }
   0xa   :  { %4191 = vmatpush3.msra.mxu1 %v49_v7  ;;  %4154 = vmatprep.subr.mxu0 %v3835_v8  ;;  %v40_v25 = vld [vmem:[%s6812_s1 + $0x18] sm:$0xff]  ;;  %v39_v27 = vld [vmem:[%s6812_s1 + $0x10] sm:$0xff]  ;;  %v38_v29 = vld [vmem:[%s6812_s1 + $0x8] sm:$0xff] }
   0xb   :  { %4192 = vmatprep.subr.mxu1 %v48_v9  ;;  %4155 = vmatpush3.msra.mxu0 %v3835_v8  ;;  %v3824_v30 = vld [vmem:[%s6812_s1 + $0x80] sm:$0xff]  ;;  %v54_v34 = vld [vmem:[%s6811_s0 + $0x9] sm:$0xff]  ;;  %v3855_v36 = vld [vmem:[%s6812_s1 + $0x178] sm:$0xff] }
   0xc   :  { %4193 = vmatpush3.msra.mxu1 %v48_v9  ;;  %4156 = vmatprep.subr.mxu0 %v3834_v10  ;;  %v37_v31 = vld [vmem:[%s6812_s1] sm:$0xff]  ;;  %v34_v35 = vld [vmem:[%s6811_s0 + $0x8] sm:$0xff]  ;;  %v3871_v37 = vld [vmem:[%s6812_s1 + $0x1f8] sm:$0xff] }
   0xd   :  { %4194 = vmatprep.subr.mxu1 %v47_v11  ;;  %4157 = vmatpush3.msra.mxu0 %v3834_v10  ;;  %v53_v32 = vld [vmem:[%s6811_s0 + $0x1] sm:$0xff]  ;;  %v3854_v38 = vld [vmem:[%s6812_s1 + $0x170] sm:$0xff]  ;;  %v3851_v44 = vld [vmem:[%s6812_s1 + $0x158] sm:$0xff] }
   0xe   :  { %4195 = vmatpush3.msra.mxu1 %v47_v11  ;;  %4158 = vmatprep.subr.mxu0 %v3833_v12  ;;  %v33_v33 = vld [vmem:[%s6811_s0] sm:$0xff]  ;;  %v3870_v39 = vld [vmem:[%s6812_s1 + $0x1f0] sm:$0xff]  ;;  %v3853_v40 = vld [vmem:[%s6812_s1 + $0x168] sm:$0xff] }
   0xf   :  { %4196 = vmatprep.subr.mxu1 %v46_v13  ;;  %4159 = vmatpush3.msra.mxu0 %v3833_v12  ;;  %v3869_v41 = vld [vmem:[%s6812_s1 + $0x1e8] sm:$0xff]  ;;  %v3852_v42 = vld [vmem:[%s6812_s1 + $0x160] sm:$0xff]  ;;  %v3867_v45 = vld [vmem:[%s6812_s1 + $0x1d8] sm:$0xff] }
  0x10   :  { %4197 = vmatpush3.msra.mxu1 %v46_v13  ;;  %4160 = vmatprep.subr.mxu0 %v3832_v14  ;;  %v3868_v43 = vld [vmem:[%s6812_s1 + $0x1e0] sm:$0xff]  ;;  %v3850_v46 = vld [vmem:[%s6812_s1 + $0x150] sm:$0xff]  ;;  %v3849_v48 = vld [vmem:[%s6812_s1 + $0x148] sm:$0xff] }
  0x11   :  { %4198 = vmatprep.subr.mxu1 %v45_v15  ;;  %4161 = vmatpush3.msra.mxu0 %v3832_v14  ;;  %v3866_v47 = vld [vmem:[%s6812_s1 + $0x1d0] sm:$0xff]  ;;  %v3865_v49 = vld [vmem:[%s6812_s1 + $0x1c8] sm:$0xff]  ;;  %v3848_v50 = vld [vmem:[%s6812_s1 + $0x140] sm:$0xff] }
  0x12   :  { %4199 = vmatpush3.msra.mxu1 %v45_v15  ;;  %4162 = vmatprep.subr.mxu0 %v3831_v16  ;;  %v3864_v51 = vld [vmem:[%s6812_s1 + $0x1c0] sm:$0xff] }
  0x13   :  { %4200 = vmatprep.subr.mxu1 %v44_v17  ;;  %4163 = vmatpush3.msra.mxu0 %v3831_v16 }
  0x14   :  { %4201 = vmatpush3.msra.mxu1 %v44_v17  ;;  %4164 = vmatprep.subr.mxu0 %v3830_v18 }
  0x15   :  { %4202 = vmatprep.subr.mxu1 %v43_v19  ;;  %4165 = vmatpush3.msra.mxu0 %v3830_v18 }
  0x16   :  { %4203 = vmatpush3.msra.mxu1 %v43_v19  ;;  %4166 = vmatprep.subr.mxu0 %v3829_v20 }
  0x17   :  { %4204 = vmatprep.subr.mxu1 %v42_v21  ;;  %4167 = vmatpush3.msra.mxu0 %v3829_v20 }
  0x18   :  { %4205 = vmatpush3.msra.mxu1 %v42_v21  ;;  %4168 = vmatprep.subr.mxu0 %v3828_v22 }
  0x19   :  { %4206 = vmatprep.subr.mxu1 %v41_v23  ;;  %4169 = vmatpush3.msra.mxu0 %v3828_v22 }
  0x1a   :  { %4207 = vmatpush3.msra.mxu1 %v41_v23  ;;  %4170 = vmatprep.subr.mxu0 %v3827_v24 }
  0x1b   :  { %4208 = vmatprep.subr.mxu1 %v40_v25  ;;  %4171 = vmatpush3.msra.mxu0 %v3827_v24 }
  0x1c   :  { %4209 = vmatpush3.msra.mxu1 %v40_v25  ;;  %4172 = vmatprep.subr.mxu0 %v3826_v26 }
  0x1d   :  { %4210 = vmatprep.subr.mxu1 %v39_v27  ;;  %4173 = vmatpush3.msra.mxu0 %v3826_v26 }
  0x1e   :  { %4211 = vmatpush3.msra.mxu1 %v39_v27  ;;  %4174 = vmatprep.subr.mxu0 %v3825_v28 }
  0x1f   :  { %4212 = vmatprep.subr.mxu1 %v38_v29  ;;  %4175 = vmatpush3.msra.mxu0 %v3825_v28 }
  0x20   :  { %4213 = vmatpush3.msra.mxu1 %v38_v29  ;;  %4176 = vmatprep.subr.mxu0 %v3824_v30 }
  0x21   :  { %4214 = vmatprep.subr.mxu1 %v37_v31  ;;  %4177 = vmatpush3.msra.mxu0 %v3824_v30 }
  0x22   :  { %4178 = vmatprep.mubr.f32.mxu0 %v53_v32  ;;  %4215 = vmatpush3.msra.mxu1 %v37_v31 }
  0x23   :  { %4216 = vmatprep.mubr.f32.mxu1 %v33_v33  ;;  %4179 = vmatmul.mubr.f32.vlgmr.msra.gmra.mxu0 %v54_v34 }
  0x24   :  { %4217 = vmatmul.mubr.f32.vlgmr.msra.gmra.mxu1 %v34_v35  ;;  %4222 = vmatprep.subr.mxu0 %v3855_v36 }
  0x25   :  { %4260 = vmatprep.subr.mxu1 %v3871_v37  ;;  %4223 = vmatpush3.msra.mxu0 %v3855_v36 }
  0x26   :  { %4261 = vmatpush3.msra.mxu1 %v3871_v37  ;;  %4224 = vmatprep.subr.mxu0 %v3854_v38 }
  0x27   :  { %4262 = vmatprep.subr.mxu1 %v3870_v39  ;;  %4225 = vmatpush3.msra.mxu0 %v3854_v38 }
  0x28   :  { %4263 = vmatpush3.msra.mxu1 %v3870_v39  ;;  %4226 = vmatprep.subr.mxu0 %v3853_v40 }
  0x29   :  { %4264 = vmatprep.subr.mxu1 %v3869_v41  ;;  %4227 = vmatpush3.msra.mxu0 %v3853_v40 }
  0x2a   :  { %4265 = vmatpush3.msra.mxu1 %v3869_v41  ;;  %4228 = vmatprep.subr.mxu0 %v3852_v42 }
  0x2b   :  { %4266 = vmatprep.subr.mxu1 %v3868_v43  ;;  %4229 = vmatpush3.msra.mxu0 %v3852_v42 }
  0x2c   :  { %4267 = vmatpush3.msra.mxu1 %v3868_v43  ;;  %4230 = vmatprep.subr.mxu0 %v3851_v44 }
  0x2d   :  { %4268 = vmatprep.subr.mxu1 %v3867_v45  ;;  %4231 = vmatpush3.msra.mxu0 %v3851_v44 }
  0x2e   :  { %4269 = vmatpush3.msra.mxu1 %v3867_v45  ;;  %4232 = vmatprep.subr.mxu0 %v3850_v46 }
  0x2f   :  { %4270 = vmatprep.subr.mxu1 %v3866_v47  ;;  %4233 = vmatpush3.msra.mxu0 %v3850_v46 }
  0x30   :  { %4271 = vmatpush3.msra.mxu1 %v3866_v47 }
  0x31   :  { %14 = vsyncpa [#allocation3], 0  ;;  %4234 = vmatprep.subr.mxu0 %v3849_v48  ;;  %4272 = vmatprep.subr.mxu1 %v3865_v49  ;;  %v3847_v52 = vld [vmem:[%s6812_s1 + $0x138] sm:$0xff]  ;;  %v3846_v54 = vld [vmem:[%s6812_s1 + $0x130] sm:$0xff]  ;;  %s4483_s16 = smov 112   ;;  %s4484_s17 = smov 96  }
  0x32   :  { %4235 = vmatpush3.msra.mxu0 %v3849_v48  ;;  %4273 = vmatpush3.msra.mxu1 %v3865_v49  ;;  %v3863_v53 = vld [vmem:[%s6812_s1 + $0x1b8] sm:$0xff]  ;;  %v3862_v55 = vld [vmem:[%s6812_s1 + $0x1b0] sm:$0xff]  ;;  %v3845_v56 = vld [vmem:[%s6812_s1 + $0x128] sm:$0xff]  ;;  %s4486_s18 = smov 64   ;;  %s4487_s19 = smov 48   ;;  %vm3105_vm0 = vcmask 64512  }
  0x33   :  { %4236 = vmatprep.subr.mxu0 %v3848_v50  ;;  %4274 = vmatprep.subr.mxu1 %v3864_v51  ;;  %v3861_v57 = vld [vmem:[%s6812_s1 + $0x1a8] sm:$0xff]  ;;  %v3844_v58 = vld [vmem:[%s6812_s1 + $0x120] sm:$0xff]  ;;  %v3843_v60 = vld [vmem:[%s6812_s1 + $0x118] sm:$0xff]  ;;  %s4488_s20 = smov 32   ;;  %s4489_s21 = smov 16   ;;  %vm3122_vm1 = vcmask 130048  }
  0x34   :  { %4237 = vmatpush3.msra.mxu0 %v3848_v50  ;;  %4275 = vmatpush3.msra.mxu1 %v3864_v51  ;;  %v3860_v59 = vld [vmem:[%s6812_s1 + $0x1a0] sm:$0xff]  ;;  %v35_v62 = vld [vmem:[%s6811_s0 + $0x18] sm:$0xff]  ;;  %v3842_v63 = vld [vmem:[%s6812_s1 + $0x110] sm:$0xff]  ;;  %s4492_s22 = smov 120   ;;  %s4494_s23 = smov 8   ;;  %vm3139_vm2 = vcmask 195584  }
  0x35   :  { %4238 = vmatprep.subr.mxu0 %v3847_v52  ;;  %4276 = vmatprep.subr.mxu1 %v3863_v53  ;;  %v55_v61 = vld [vmem:[%s6811_s0 + $0x19] sm:$0xff]  ;;  %v56_v1 = vld [vmem:[%s6811_s0 + $0x21] sm:$0xff]  ;;  %v3858_v4 = vld [vmem:[%s6812_s1 + $0x190] sm:$0xff]  ;;  %s4495_s24 = smov 24   ;;  %s4496_s25 = smov 40   ;;  %vm3156_vm3 = vcmask 261120  }
  0x36   :  { %4239 = vmatpush3.msra.mxu0 %v3847_v52  ;;  %4277 = vmatpush3.msra.mxu1 %v3863_v53  ;;  %v3859_v0 = vld [vmem:[%s6812_s1 + $0x198] sm:$0xff]  ;;  %v36_v2 = vld [vmem:[%s6811_s0 + $0x20] sm:$0xff]  ;;  %v3841_v3 = vld [vmem:[%s6812_s1 + $0x108] sm:$0xff]  ;;  %s4497_s26 = smov 56   ;;  %vm3173_vm4 = vcmask 326656   ;;  %vm3190_vm5 = vcmask 392192  }
  0x37   :  { %4240 = vmatprep.subr.mxu0 %v3846_v54  ;;  %4278 = vmatprep.subr.mxu1 %v3862_v55  ;;  %v3840_v5 = vld [vmem:[%s6812_s1 + $0x100] sm:$0xff]  ;;  %v3857_v6 = vld [vmem:[%s6812_s1 + $0x188] sm:$0xff]  ;;  %v3887_v10 = vld [vmem:[%s6812_s1 + $0x278] sm:$0xff]  ;;  %vm3207_vm6 = vcmask 457728   ;;  %vm3305_vm7 = vcmask 1041409   ;;  %vm3308_vm8 = vcmask 1042434  }
  0x38   :  { %4241 = vmatpush3.msra.mxu0 %v3846_v54  ;;  %4279 = vmatpush3.msra.mxu1 %v3862_v55  ;;  %v244_v7 = vld [vmem:[%s6811_s0 + $0x2] sm:$0xff]  ;;  %v245_v8 = vld [vmem:[%s6811_s0 + $0xa] sm:$0xff]  ;;  %v3903_v14 = vld [vmem:[%s6812_s1 + $0x2f8] sm:$0xff]  ;;  %vm3311_vm9 = vcmask 1043459   ;;  %vm3314_vm10 = vcmask 1044484   ;;  %vm3317_vm11 = vcmask 1045509  }
  0x39   :  { %4242 = vmatprep.subr.mxu0 %v3845_v56  ;;  %4280 = vmatprep.subr.mxu1 %v3861_v57  ;;  %v3856_v9 = vld [vmem:[%s6812_s1 + $0x180] sm:$0xff]  ;;  %v355_v12 = vld [vmem:[%s6811_s0 + $0xb] sm:$0xff]  ;;  %v3883_v23 = vld [vmem:[%s6812_s1 + $0x258] sm:$0xff]  ;;  %vm3320_vm12 = vcmask 1046534   ;;  %vm3323_vm13 = vcmask 1047559   ;;  %vm3423_vm14 = vcmask 523264  }
  0x3a   :  { %4243 = vmatpush3.msra.mxu0 %v3845_v56  ;;  %4281 = vmatpush3.msra.mxu1 %v3861_v57  ;;  %v354_v11 = vld [vmem:[%s6811_s0 + $0x3] sm:$0xff]  ;;  %v3886_v13 = vld [vmem:[%s6812_s1 + $0x270] sm:$0xff]  ;;  %v246_v15 = vld [vmem:[%s6811_s0 + $0x1a] sm:$0xff]  ;;  %vm4498_vm15 = vmmov 0   ;;  %s4499_s14 = smov [#allocation2]  }
  0x3b   :  { %4244 = vmatprep.subr.mxu0 %v3844_v58  ;;  %4282 = vmatprep.subr.mxu1 %v3860_v59  ;;  %v247_v16 = vld [vmem:[%s6811_s0 + $0x22] sm:$0xff]  ;;  %v3902_v18 = vld [vmem:[%s6812_s1 + $0x2f0] sm:$0xff]  ;;  %v3899_v26 = vld [vmem:[%s6812_s1 + $0x2d8] sm:$0xff] }
  0x3c   :  { %4245 = vmatpush3.msra.mxu0 %v3844_v58  ;;  %4283 = vmatpush3.msra.mxu1 %v3860_v59  ;;  %v3885_v17 = vld [vmem:[%s6812_s1 + $0x268] sm:$0xff]  ;;  %v356_v19 = vld [vmem:[%s6811_s0 + $0x1b] sm:$0xff]  ;;  %v3882_v25 = vld [vmem:[%s6812_s1 + $0x250] sm:$0xff] }
  0x3d   :  { %4246 = vmatprep.subr.mxu0 %v3843_v60  ;;  %4181 = vmatprep.mubr.f32.mxu0 %v55_v61  ;;  %v3884_v20 = vld [vmem:[%s6812_s1 + $0x260] sm:$0xff]  ;;  %v3901_v22 = vld [vmem:[%s6812_s1 + $0x2e8] sm:$0xff]  ;;  %v3898_v28 = vld [vmem:[%s6812_s1 + $0x2d0] sm:$0xff] }
  0x3e   :  { %4247 = vmatpush3.msra.mxu0 %v3843_v60  ;;  %4219 = vmatprep.mubr.f32.mxu1 %v35_v62  ;;  %v357_v21 = vld [vmem:[%s6811_s0 + $0x23] sm:$0xff]  ;;  %v3879_v31 = vld [vmem:[%s6812_s1 + $0x238] sm:$0xff]  ;;  %v3878_v33 = vld [vmem:[%s6812_s1 + $0x230] sm:$0xff] }
  0x3f   :  { %4248 = vmatprep.subr.mxu0 %v3842_v63  ;;  %4284 = vmatprep.subr.mxu1 %v3859_v0  ;;  %v3900_v24 = vld [vmem:[%s6812_s1 + $0x2e0] sm:$0xff]  ;;  %v3881_v27 = vld [vmem:[%s6812_s1 + $0x248] sm:$0xff]  ;;  %v3895_v34 = vld [vmem:[%s6812_s1 + $0x2b8] sm:$0xff] }
  0x40   :  { %4182 = vmatmul.mubr.f32.gmra.mxu0 %v56_v1  ;;  %4220 = vmatmul.mubr.f32.gmra.mxu1 %v36_v2  ;;  %v3880_v29 = vld [vmem:[%s6812_s1 + $0x240] sm:$0xff]  ;;  %v3897_v30 = vld [vmem:[%s6812_s1 + $0x2c8] sm:$0xff]  ;;  %v3894_v36 = vld [vmem:[%s6812_s1 + $0x2b0] sm:$0xff] }
  0x41   :  { %4249 = vmatpush3.msra.mxu0 %v3842_v63  ;;  %4285 = vmatpush3.msra.mxu1 %v3859_v0  ;;  %v3896_v32 = vld [vmem:[%s6812_s1 + $0x2c0] sm:$0xff]  ;;  %v3877_v35 = vld [vmem:[%s6812_s1 + $0x228] sm:$0xff]  ;;  %v3875_v39 = vld [vmem:[%s6812_s1 + $0x218] sm:$0xff] }
  0x42   :  { %4250 = vmatprep.subr.mxu0 %v3841_v3  ;;  %4286 = vmatprep.subr.mxu1 %v3858_v4  ;;  %v3876_v37 = vld [vmem:[%s6812_s1 + $0x220] sm:$0xff]  ;;  %v3893_v38 = vld [vmem:[%s6812_s1 + $0x2a8] sm:$0xff]  ;;  %v3874_v41 = vld [vmem:[%s6812_s1 + $0x210] sm:$0xff] }
  0x43   :  { %4251 = vmatpush3.msra.mxu0 %v3841_v3  ;;  %4287 = vmatpush3.msra.mxu1 %v3858_v4  ;;  %v3892_v40 = vld [vmem:[%s6812_s1 + $0x2a0] sm:$0xff]  ;;  %v3891_v42 = vld [vmem:[%s6812_s1 + $0x298] sm:$0xff]  ;;  %v3873_v43 = vld [vmem:[%s6812_s1 + $0x208] sm:$0xff] }
  0x44   :  { %4252 = vmatprep.subr.mxu0 %v3840_v5  ;;  %4288 = vmatprep.subr.mxu1 %v3857_v6  ;;  %v3890_v44 = vld [vmem:[%s6812_s1 + $0x290] sm:$0xff]  ;;  %v3872_v45 = vld [vmem:[%s6812_s1 + $0x200] sm:$0xff]  ;;  %v3889_v46 = vld [vmem:[%s6812_s1 + $0x288] sm:$0xff] }
  0x45   :  { %4253 = vmatpush3.msra.mxu0 %v3840_v5  ;;  %4254 = vmatprep.mubr.f32.mxu0 %v244_v7  ;;  %v464_v47 = vld [vmem:[%s6811_s0 + $0x4] sm:$0xff]  ;;  %v465_v48 = vld [vmem:[%s6811_s0 + $0xc] sm:$0xff]  ;;  %v3919_v50 = vld [vmem:[%s6812_s1 + $0x378] sm:$0xff] }
  0x46   :  { %4289 = vmatpush3.msra.mxu1 %v3857_v6  ;;  %4255 = vmatmul.mubr.f32.vlgmr.msra.gmra.mxu0 %v245_v8  ;;  %v3888_v49 = vld [vmem:[%s6812_s1 + $0x280] sm:$0xff]  ;;  %v575_v52 = vld [vmem:[%s6811_s0 + $0xd] sm:$0xff]  ;;  %v3915_v61 = vld [vmem:[%s6812_s1 + $0x358] sm:$0xff] }
  0x47   :  { %4290 = vmatprep.subr.mxu1 %v3856_v9  ;;  %4298 = vmatprep.subr.mxu0 %v3887_v10  ;;  %v574_v51 = vld [vmem:[%s6811_s0 + $0x5] sm:$0xff]  ;;  %v3918_v53 = vld [vmem:[%s6812_s1 + $0x370] sm:$0xff]  ;;  %v466_v54 = vld [vmem:[%s6811_s0 + $0x1c] sm:$0xff] }
  0x48   :  { %4291 = vmatpush3.msra.mxu1 %v3856_v9  ;;  %4292 = vmatprep.mubr.f32.mxu1 %v354_v11  ;;  %v576_v55 = vld [vmem:[%s6811_s0 + $0x1d] sm:$0xff]  ;;  %v3917_v57 = vld [vmem:[%s6812_s1 + $0x368] sm:$0xff]  ;;  %v3914_v62 = vld [vmem:[%s6812_s1 + $0x350] sm:$0xff] }
  0x49   :  { %4299 = vmatpush3.msra.mxu0 %v3887_v10  ;;  %4293 = vmatmul.mubr.f32.vlgmr.msra.gmra.mxu1 %v355_v12  ;;  %v467_v56 = vld [vmem:[%s6811_s0 + $0x24] sm:$0xff]  ;;  %v3911_v1 = vld [vmem:[%s6812_s1 + $0x338] sm:$0xff]  ;;  %v3910_v2 = vld [vmem:[%s6812_s1 + $0x330] sm:$0xff] }
  0x4a   :  { %4300 = vmatprep.subr.mxu0 %v3886_v13  ;;  %4336 = vmatprep.subr.mxu1 %v3903_v14  ;;  %v577_v58 = vld [vmem:[%s6811_s0 + $0x25] sm:$0xff]  ;;  %v3907_v5 = vld [vmem:[%s6812_s1 + $0x318] sm:$0xff]  ;;  %v3906_v6 = vld [vmem:[%s6812_s1 + $0x310] sm:$0xff] }
  0x4b   :  { %4257 = vmatprep.mubr.f32.mxu0 %v246_v15  ;;  %4301 = vmatpush3.msra.mxu0 %v3886_v13  ;;  %v3916_v59 = vld [vmem:[%s6812_s1 + $0x360] sm:$0xff]  ;;  %v3913_v63 = vld [vmem:[%s6812_s1 + $0x348] sm:$0xff] }
  0x4c   :  { %4337 = vmatpush3.msra.mxu1 %v3903_v14  ;;  %4258 = vmatmul.mubr.f32.gmra.mxu0 %v247_v16  ;;  %v684_v60 = vld [vmem:[%s6811_s0 + $0x6] sm:$0xff]  ;;  %v685_v9 = vld [vmem:[%s6811_s0 + $0xe] sm:$0xff]  ;;  %v686_v10 = vld [vmem:[%s6811_s0 + $0x1e] sm:$0xff] }
  0x4d   :  { %4302 = vmatprep.subr.mxu0 %v3885_v17  ;;  %4338 = vmatprep.subr.mxu1 %v3902_v18  ;;  %v3912_v0 = vld [vmem:[%s6812_s1 + $0x340] sm:$0xff]  ;;  %v3909_v3 = vld [vmem:[%s6812_s1 + $0x328] sm:$0xff] }
  0x4e   :  { %4295 = vmatprep.mubr.f32.mxu1 %v356_v19  ;;  %4303 = vmatpush3.msra.mxu0 %v3885_v17  ;;  %v3908_v4 = vld [vmem:[%s6812_s1 + $0x320] sm:$0xff]  ;;  %v3905_v7 = vld [vmem:[%s6812_s1 + $0x308] sm:$0xff] }
  0x4f   :  { %4339 = vmatpush3.msra.mxu1 %v3902_v18  ;;  %4304 = vmatprep.subr.mxu0 %v3884_v20  ;;  %v3904_v8 = vld [vmem:[%s6812_s1 + $0x300] sm:$0xff] }
  0x50   :  { %4296 = vmatmul.mubr.f32.gmra.mxu1 %v357_v21  ;;  %4340 = vmatprep.subr.mxu1 %v3901_v22  ;;  %v687_v11 = vld [vmem:[%s6811_s0 + $0x26] sm:$0xff] }
  0x51   :  { %4305 = vmatpush3.msra.mxu0 %v3884_v20  ;;  %4341 = vmatpush3.msra.mxu1 %v3901_v22 }
  0x52   :  { %4306 = vmatprep.subr.mxu0 %v3883_v23  ;;  %4342 = vmatprep.subr.mxu1 %v3900_v24 }
  0x53   :  { %4307 = vmatpush3.msra.mxu0 %v3883_v23  ;;  %4343 = vmatpush3.msra.mxu1 %v3900_v24 }
  0x54   :  { %4308 = vmatprep.subr.mxu0 %v3882_v25  ;;  %4344 = vmatprep.subr.mxu1 %v3899_v26 }
  0x55   :  { %4309 = vmatpush3.msra.mxu0 %v3882_v25  ;;  %4345 = vmatpush3.msra.mxu1 %v3899_v26 }
  0x56   :  { %4310 = vmatprep.subr.mxu0 %v3881_v27  ;;  %4346 = vmatprep.subr.mxu1 %v3898_v28 }
  0x57   :  { %4311 = vmatpush3.msra.mxu0 %v3881_v27  ;;  %4347 = vmatpush3.msra.mxu1 %v3898_v28 }
  0x58   :  { %4312 = vmatprep.subr.mxu0 %v3880_v29  ;;  %4348 = vmatprep.subr.mxu1 %v3897_v30 }
  0x59   :  { %4313 = vmatpush3.msra.mxu0 %v3880_v29  ;;  %4349 = vmatpush3.msra.mxu1 %v3897_v30 }
  0x5a   :  { %4314 = vmatprep.subr.mxu0 %v3879_v31  ;;  %4350 = vmatprep.subr.mxu1 %v3896_v32 }
  0x5b   :  { %4315 = vmatpush3.msra.mxu0 %v3879_v31  ;;  %4351 = vmatpush3.msra.mxu1 %v3896_v32 }
  0x5c   :  { %4316 = vmatprep.subr.mxu0 %v3878_v33  ;;  %4352 = vmatprep.subr.mxu1 %v3895_v34 }
  0x5d   :  { %4317 = vmatpush3.msra.mxu0 %v3878_v33  ;;  %4353 = vmatpush3.msra.mxu1 %v3895_v34 }
  0x5e   :  { %4318 = vmatprep.subr.mxu0 %v3877_v35  ;;  %4354 = vmatprep.subr.mxu1 %v3894_v36 }
  0x5f   :  { %4319 = vmatpush3.msra.mxu0 %v3877_v35  ;;  %4355 = vmatpush3.msra.mxu1 %v3894_v36 }
  0x60   :  { %4320 = vmatprep.subr.mxu0 %v3876_v37  ;;  %4356 = vmatprep.subr.mxu1 %v3893_v38 }
  0x61   :  { %4321 = vmatpush3.msra.mxu0 %v3876_v37  ;;  %4357 = vmatpush3.msra.mxu1 %v3893_v38 }
  0x62   :  { %4322 = vmatprep.subr.mxu0 %v3875_v39  ;;  %4358 = vmatprep.subr.mxu1 %v3892_v40 }
  0x63   :  { %4323 = vmatpush3.msra.mxu0 %v3875_v39  ;;  %4359 = vmatpush3.msra.mxu1 %v3892_v40 }
  0x64   :  { %4324 = vmatprep.subr.mxu0 %v3874_v41  ;;  %4360 = vmatprep.subr.mxu1 %v3891_v42 }
  0x65   :  { %4325 = vmatpush3.msra.mxu0 %v3874_v41  ;;  %4361 = vmatpush3.msra.mxu1 %v3891_v42 }
  0x66   :  { %4326 = vmatprep.subr.mxu0 %v3873_v43  ;;  %4362 = vmatprep.subr.mxu1 %v3890_v44 }
  0x67   :  { %4327 = vmatpush3.msra.mxu0 %v3873_v43  ;;  %4363 = vmatpush3.msra.mxu1 %v3890_v44 }
  0x68   :  { %4328 = vmatprep.subr.mxu0 %v3872_v45  ;;  %4364 = vmatprep.subr.mxu1 %v3889_v46 }
  0x69   :  { %4329 = vmatpush3.msra.mxu0 %v3872_v45  ;;  %4330 = vmatprep.mubr.f32.mxu0 %v464_v47 }
  0x6a   :  { %4365 = vmatpush3.msra.mxu1 %v3889_v46  ;;  %4331 = vmatmul.mubr.f32.vlgmr.msra.gmra.mxu0 %v465_v48 }
  0x6b   :  { %4366 = vmatprep.subr.mxu1 %v3888_v49  ;;  %4374 = vmatprep.subr.mxu0 %v3919_v50 }
  0x6c   :  { %4367 = vmatpush3.msra.mxu1 %v3888_v49  ;;  %4368 = vmatprep.mubr.f32.mxu1 %v574_v51  ;;  %v3920_v49 = vld [vmem:[%s6813_s2] ss:$0 sm:$0xff]  ;;  %s4485_s2 = smov 80  }
  0x6d   :  { %4375 = vmatpush3.msra.mxu0 %v3919_v50  ;;  %4369 = vmatmul.mubr.f32.vlgmr.msra.gmra.mxu1 %v575_v52 }
  0x6e   :  { %4376 = vmatprep.subr.mxu0 %v3918_v53  ;;  %4333 = vmatprep.mubr.f32.mxu0 %v466_v54 }
  0x6f   :  { %4377 = vmatpush3.msra.mxu0 %v3918_v53  ;;  %4371 = vmatprep.mubr.f32.mxu1 %v576_v55 }
  0x70   :  { %4334 = vmatmul.mubr.f32.gmra.mxu0 %v467_v56  ;;  %4378 = vmatprep.subr.mxu0 %v3917_v57 }
  0x71   :  { %4379 = vmatpush3.msra.mxu0 %v3917_v57  ;;  %4372 = vmatmul.mubr.f32.gmra.mxu1 %v577_v58 }
  0x72   :  { %4380 = vmatprep.subr.mxu0 %v3916_v59  ;;  %4406 = vmatprep.mubr.f32.mxu0 %v684_v60 }
  0x73   :  { %4381 = vmatpush3.msra.mxu0 %v3916_v59 }
  0x74   :  { %4382 = vmatprep.subr.mxu0 %v3915_v61 }
  0x75   :  { %4383 = vmatpush3.msra.mxu0 %v3915_v61 }
  0x76   :  { %4384 = vmatprep.subr.mxu0 %v3914_v62 }
  0x77   :  { %4385 = vmatpush3.msra.mxu0 %v3914_v62 }
  0x78   :  { %4386 = vmatprep.subr.mxu0 %v3913_v63 }
  0x79   :  { %4387 = vmatpush3.msra.mxu0 %v3913_v63 }
  0x7a   :  { %4388 = vmatprep.subr.mxu0 %v3912_v0 }
  0x7b   :  { %4389 = vmatpush3.msra.mxu0 %v3912_v0 }
  0x7c   :  { %4390 = vmatprep.subr.mxu0 %v3911_v1 }
  0x7d   :  { %4391 = vmatpush3.msra.mxu0 %v3911_v1 }
  0x7e   :  { %4392 = vmatprep.subr.mxu0 %v3910_v2 }
  0x7f   :  { %4393 = vmatpush3.msra.mxu0 %v3910_v2 }
  0x80   :  { %4394 = vmatprep.subr.mxu0 %v3909_v3 }
  0x81   :  { %4395 = vmatpush3.msra.mxu0 %v3909_v3 }
  0x82   :  { %4396 = vmatprep.subr.mxu0 %v3908_v4 }
  0x83   :  { %4397 = vmatpush3.msra.mxu0 %v3908_v4 }
  0x84   :  { %4398 = vmatprep.subr.mxu0 %v3907_v5 }
  0x85   :  { %4399 = vmatpush3.msra.mxu0 %v3907_v5 }
  0x86   :  { %4400 = vmatprep.subr.mxu0 %v3906_v6 }
  0x87   :  { %4401 = vmatpush3.msra.mxu0 %v3906_v6 }
  0x88   :  { %4402 = vmatprep.subr.mxu0 %v3905_v7 }
  0x89   :  { %4403 = vmatpush3.msra.mxu0 %v3905_v7 }
  0x8a   :  { %4404 = vmatprep.subr.mxu0 %v3904_v8 }
  0x8b   :  { %4405 = vmatpush3.msra.mxu0 %v3904_v8 }
  0x8c   :  { %4407 = vmatmul.mubr.f32.vlgmr.msra.gmra.mxu0 %v685_v9 }
  0x8d   :  { %4409 = vmatprep.mubr.f32.mxu0 %v686_v10 }
  0x90   :  { %4410 = vmatmul.mubr.f32.gmra.mxu0 %v687_v11 }
  0xe3   :  { %v4180_v12 = vpop.f32.mrf.mxu0 }
  0xe4   :  { %v4218_v15 = vpop.f32.mrf.mxu1 }
  0xe5   :  { %v140_v13 = vpop.f32.mrf.mxu0  ;;  %v231_v28 = vadd.f32 %v4218_v15, %v4180_v12 }
  0xe6   :  { %v225_v17 = vpop.f32.mrf.mxu1 }
  0xe7   :  { %v226_v29 = vadd.f32 %v225_v17, %v140_v13 }
 0x100   :  { %v4183_v14 = vpop.f32.mrf.mxu0  ;;  %v4221_v18 = vpop.f32.mrf.mxu1 }
 0x101   :  { %v241_v33 = vadd.f32 %v4221_v18, %v4183_v14  ;;  %v902_v18 = vlaneseq }
 0x102   :  { %v150_v16 = vpop.f32.mrf.mxu0  ;;  %v235_v20 = vpop.f32.mrf.mxu1 }
 0x103   :  { %v236_v63 = vadd.f32 %v235_v20, %v150_v16  ;;  %v4490_v16 = vmov 1983009808  }
 0x104   :  { %v900_v17 = vunpack.c.l.s4 %v4490_v16 }
 0x106   :  { %v4256_v19 = vpop.f32.mrf.mxu0 }
 0x107   :  { %v351_v30 = vadd.f32 %v4256_v19, %v231_v28 }
 0x108   :  { %v331_v21 = vpop.f32.mrf.mxu0 }
 0x109   :  { %v4294_v22 = vpop.f32.mrf.mxu1  ;;  %v350_v34 = vadd.f32 %v331_v21, %v226_v29  ;;  %v901_v21 = vunpack.c.0.s8 %v900_v17 }
 0x10a   :  { %v461_v36 = vadd.f32 %v4294_v22, %v351_v30  ;;  %v903_v22 = vshrl.u32 %v902_v18, 7 }
 0x10b   :  { %v441_v24 = vpop.f32.mrf.mxu1 }
 0x10c   :  { %v4259_v23 = vpop.f32.mrf.mxu0  ;;  %v460_v39 = vadd.f32 %v441_v24, %v350_v34  ;;  %v5047_v28 = vsub.s32 %v901_v21, %v903_v22 }
 0x10d   :  { %v353_v37 = vadd.f32 %v4259_v23, %v241_v33 }
 0x10e   :  { %v341_v25 = vpop.f32.mrf.mxu0 }
 0x10f   :  { %v352_v0 = vadd.f32 %v341_v25, %v236_v63 }
 0x110   :  { %v4297_v26 = vpop.f32.mrf.mxu1 }
 0x111   :  { %v463_v42 = vadd.f32 %v4297_v26, %v353_v37  ;;  %v4491_v26 = vmov 1934713408  }
 0x112   :  { %v451_v31 = vpop.f32.mrf.mxu1 }
 0x113   :  { %v462_v1 = vadd.f32 %v451_v31, %v352_v0 }
 0x12a   :  { %v4332_v27 = vpop.f32.mrf.mxu0 }
 0x12b   :  { %v571_v40 = vadd.f32 %v4332_v27, %v461_v36  ;;  %v964_v27 = vunpack.c.l.s4 %v4491_v26 }
 0x12c   :  { %v551_v32 = vpop.f32.mrf.mxu0 }
 0x12d   :  { %v4370_v35 = vpop.f32.mrf.mxu1  ;;  %v570_v43 = vadd.f32 %v551_v32, %v460_v39  ;;  %v965_v34 = vunpack.c.0.s8 %v964_v27 }
 0x12e   :  { %v681_v45 = vadd.f32 %v4370_v35, %v571_v40 }
 0x12f   :  { %v661_v41 = vpop.f32.mrf.mxu1 }
 0x130   :  { %v4335_v38 = vpop.f32.mrf.mxu0  ;;  %v680_v50 = vadd.f32 %v661_v41, %v570_v43 }
 0x131   :  { %v573_v46 = vadd.f32 %v4335_v38, %v463_v42  ;;  %v4373_v47 = vpop.f32.mrf.mxu1 }
 0x132   :  { %v561_v44 = vpop.f32.mrf.mxu0 }
 0x133   :  { %v683_v53 = vadd.f32 %v4373_v47, %v573_v46  ;;  %v572_v2 = vadd.f32 %v561_v44, %v462_v1  ;;  %v671_v3 = vpop.f32.mrf.mxu1 }
 0x135   :  { %v682_v5 = vadd.f32 %v671_v3, %v572_v2 }
 0x14c   :  { %v4408_v48 = vpop.f32.mrf.mxu0 }
 0x14d   :  { %v791_v51 = vadd.f32 %v4408_v48, %v681_v45  ;;  %v5058_v45 = vsub.s32 %v965_v34, %v903_v22 }
 0x14e   :  { %v771_v52 = vpop.f32.mrf.mxu0 }
 0x14f   :  { %v802_v54 = vadd.f32 %v3920_v49, %v791_v51  ;;  %v790_v55 = vadd.f32 %v771_v52, %v680_v50 }
 0x150   :  { %v4411_v56 = vpop.f32.mrf.mxu0 }
 0x151   :  { %v4973_v57 = vmax.f32 %v802_v54, 0.0  ;;  %v801_v58 = vadd.f32 %v3920_v49, %v790_v55  ;;  %v793_v59 = vadd.f32 %v4411_v56, %v683_v53 }
 0x152   :  { %v781_v4 = vpop.f32.mrf.mxu0 }
 0x153   :  { %v4975_v60 = vmax.f32 %v801_v58, 0.0  ;;  %v804_v61 = vadd.f32 %v3920_v49, %v793_v59  ;;  %815 = vrot.lane.b32.xlu0 %v4973_v57, %s4483_s16  ;;  %v792_v6 = vadd.f32 %v781_v4, %v682_v5 }
 0x155   :  { %825 = vrot.lane.b32.xlu1 %v4975_v60, %s4484_s17  ;;  %v4981_v62 = vmax.f32 %v804_v61, 0.0  ;;  %v803_v7 = vadd.f32 %v3920_v49, %v792_v6 }
 0x157   :  { %827 = vrot.lane.b32.xlu0 %v4973_v57, %s4484_s17  ;;  %v5011_v8 = vmax.f32 %v803_v7, 0.0 }
 0x159   :  { %819 = vrot.lane.b32.xlu1 %v4981_v62, %s4483_s16 }
 0x15b   :  { %839 = vrot.lane.b32.xlu0 %v4973_v57, %s4485_s2 }
 0x15d   :  { %831 = vrot.lane.b32.xlu1 %v4981_v62, %s4484_s17 }
 0x15f   :  { %851 = vrot.lane.b32.xlu0 %v4973_v57, %s4486_s18 }
 0x161   :  { %843 = vrot.lane.b32.xlu1 %v4981_v62, %s4485_s2 }
 0x163   :  { %863 = vrot.lane.b32.xlu0 %v4973_v57, %s4487_s19 }
 0x165   :  { %855 = vrot.lane.b32.xlu1 %v4981_v62, %s4486_s18 }
 0x167   :  { %875 = vrot.lane.b32.xlu0 %v4973_v57, %s4488_s20 }
 0x169   :  { %867 = vrot.lane.b32.xlu1 %v4981_v62, %s4487_s19 }
 0x16b   :  { %887 = vrot.lane.b32.xlu0 %v4973_v57, %s4489_s21 }
 0x16d   :  { %879 = vrot.lane.b32.xlu1 %v4981_v62, %s4488_s20 }
 0x16f   :  { %813 = vrot.lane.b32.xlu0 %v4975_v60, %s4483_s16 }
 0x171   :  { %891 = vrot.lane.b32.xlu1 %v4981_v62, %s4489_s21 }
 0x173   :  { %837 = vrot.lane.b32.xlu0 %v4975_v60, %s4485_s2 }
 0x175   :  { %829 = vrot.lane.b32.xlu1 %v5011_v8, %s4484_s17 }
 0x177   :  { %849 = vrot.lane.b32.xlu0 %v4975_v60, %s4486_s18 }
 0x179   :  { %841 = vrot.lane.b32.xlu1 %v5011_v8, %s4485_s2 }
 0x17b   :  { %861 = vrot.lane.b32.xlu0 %v4975_v60, %s4487_s19 }
 0x17d   :  { %853 = vrot.lane.b32.xlu1 %v5011_v8, %s4486_s18 }
 0x17f   :  { %873 = vrot.lane.b32.xlu0 %v4975_v60, %s4488_s20 }
 0x181   :  { %865 = vrot.lane.b32.xlu1 %v5011_v8, %s4487_s19 }
 0x183   :  { %885 = vrot.lane.b32.xlu0 %v4975_v60, %s4489_s21 }
 0x185   :  { %877 = vrot.lane.b32.xlu1 %v5011_v8, %s4488_s20 }
 0x187   :  { %817 = vrot.lane.b32.xlu0 %v5011_v8, %s4483_s16 }
 0x189   :  { %889 = vrot.lane.b32.xlu1 %v5011_v8, %s4489_s21 }
 0x1c5   :  { %v816_v9 = vpop.permute.xlu0 %815 }
 0x1c7   :  { %v5037_v10 = vpop.permute.xlu1 %825 }
 0x1c9   :  { %v828_v11 = vpop.permute.xlu0 %827 }
 0x1ca   :  { %v1033_v29 = vcombine.low %v4973_v57, %v828_v11  ;;  %v1034_v46 = vcombine.high %v4973_v57, %v828_v11 }
 0x1cb   :  { %v5039_v12 = vpop.permute.xlu1 %819 }
 0x1cc   :  { %v1041_v36 = vrot.slane %v1033_v29, %v5047_v28  ;;  %v1048_v56 = vrot.slane %v1034_v46, %v5047_v28 }
 0x1cd   :  { %v840_v13 = vpop.permute.xlu0 %839 }
 0x1ce   :  { %v1049_v24 = vcombine.low %v816_v9, %v840_v13  ;;  %v1050_v40 = vcombine.high %v816_v9, %v840_v13 }
 0x1cf   :  { %v5041_v14 = vpop.permute.xlu1 %831 }
 0x1d0   :  { %v1057_v32 = vrot.slane %v1049_v24, %v5047_v28  ;;  %v1064_v51 = vrot.slane %v1050_v40, %v5047_v28 }
 0x1d1   :  { %v852_v15 = vpop.permute.xlu0 %851 }
 0x1d2   :  { %v1097_v41 = vcombine.low %v1041_v36, %v1057_v32  ;;  %v1098_v52 = vcombine.high %v1041_v36, %v1057_v32  ;;  %v1113_v0 = vcombine.low %v1048_v56, %v1064_v51  ;;  %v1114_v7 = vcombine.high %v1048_v56, %v1064_v51 }
 0x1d3   :  { %v5043_v19 = vpop.permute.xlu1 %843 }
 0x1d4   :  { %v1105_v55 = vrot.slane %v1097_v41, %v5058_v45  ;;  %v1112_v2 = vrot.slane %v1098_v52, %v5058_v45  ;;  %v1121_v13 = vrot.slane %v1113_v0, %v5058_v45  ;;  %v1128_v22 = vrot.slane %v1114_v7, %v5058_v45 }
 0x1d5   :  { %v864_v20 = vpop.permute.xlu0 %863 }
 0x1d7   :  { %v5045_v23 = vpop.permute.xlu1 %855 }
 0x1d9   :  { %v876_v25 = vpop.permute.xlu0 %875 }
 0x1da   :  { %v1065_v31 = vcombine.low %v852_v15, %v876_v25  ;;  %v1066_v42 = vcombine.high %v852_v15, %v876_v25 }
 0x1db   :  { %v5050_v30 = vpop.permute.xlu1 %867 }
 0x1dc   :  { %v1073_v38 = vrot.slane %v1065_v31, %v5047_v28  ;;  %v1080_v53 = vrot.slane %v1066_v42, %v5047_v28 }
 0x1dd   :  { %v888_v33 = vpop.permute.xlu0 %887 }
 0x1de   :  { %v1081_v35 = vcombine.low %v864_v20, %v888_v33  ;;  %v1082_v37 = vcombine.high %v864_v20, %v888_v33  ;;  %v897_v20 = vcombine.low %v4975_v60, %v5037_v10 }
 0x1df   :  { %v5056_v43 = vpop.permute.xlu1 %879 }
 0x1e0   :  { %v1089_v39 = vrot.slane %v1081_v35, %v5047_v28  ;;  %v1096_v48 = vrot.slane %v1082_v37, %v5047_v28  ;;  %v905_v33 = vrot.slane %v897_v20, %v5047_v28  ;;  %v898_v35 = vcombine.high %v4975_v60, %v5037_v10 }
 0x1e1   :  { %v814_v44 = vpop.permute.xlu0 %813 }
 0x1e2   :  { %v1129_v47 = vcombine.low %v1073_v38, %v1089_v39  ;;  %v1130_v49 = vcombine.high %v1073_v38, %v1089_v39  ;;  %v1145_v58 = vcombine.low %v1080_v53, %v1096_v48  ;;  %v1146_v3 = vcombine.high %v1080_v53, %v1096_v48 }
 0x1e3   :  { %v5067_v59 = vpop.permute.xlu1 %891  ;;  %v912_v60 = vrot.slane %v898_v35, %v5047_v28 }
 0x1e4   :  { %v1137_v50 = vrot.slane %v1129_v47, %v5058_v45  ;;  %v1144_v63 = vrot.slane %v1130_v49, %v5058_v45  ;;  %v1153_v5 = vrot.slane %v1145_v58, %v5058_v45  ;;  %v1160_v17 = vrot.slane %v1146_v3, %v5058_v45 }
 0x1e5   :  { %v838_v54 = vpop.permute.xlu0 %837  ;;  %v1353_v51 = vcombine.low %v5050_v30, %v5067_v59  ;;  %v1321_v58 = vcombine.low %v5039_v12, %v5043_v19 }
 0x1e6   :  { %v5069_v57 = vcombine.high %v1105_v55, %v1137_v50  ;;  %v5071_v61 = vcombine.low %v1105_v55, %v1137_v50  ;;  %v5079_v4 = vcombine.high %v1112_v2, %v1144_v63  ;;  %v5082_v6 = vcombine.low %v1112_v2, %v1144_v63 }
 0x1e7   :  { %v5084_v9 = vpop.permute.xlu1 %829  ;;  %v913_v15 = vcombine.low %v814_v44, %v838_v54  ;;  %v5091_v16 = vcombine.high %v1121_v13, %v1153_v5  ;;  %v5094_v18 = vcombine.low %v1121_v13, %v1153_v5  ;;  %v914_v24 = vcombine.high %v814_v44, %v838_v54 }
 0x1e8   :  { %1491 = vrot.lane.b32.xlu1 %v5069_v57, %s4492_s22  ;;  %1489 = vrot.lane.b32.xlu0 %v5071_v61, %s4492_s22  ;;  %v5106_v27 = vcombine.high %v1128_v22, %v1160_v17  ;;  %v5108_v32 = vcombine.low %v1128_v22, %v1160_v17  ;;  %v1337_v63 = vcombine.low %v5045_v23, %v5056_v43 }
 0x1e9   :  { %v850_v1 = vpop.permute.xlu0 %849  ;;  %v921_v25 = vrot.slane %v913_v15, %v5047_v28  ;;  %v928_v38 = vrot.slane %v914_v24, %v5047_v28  ;;  %v1305_v2 = vcombine.low %v4981_v62, %v5041_v14  ;;  %v1361_v3 = vrot.slane %v1353_v51, %v5047_v28 }
 0x1ea   :  { %v1329_v15 = vrot.slane %v1321_v58, %v5047_v28  ;;  %v1345_v17 = vrot.slane %v1337_v63, %v5047_v28  ;;  %v1169_v63 = vcombine.low %v5011_v8, %v5084_v9 }
 0x1eb   :  { %v5104_v26 = vpop.permute.xlu1 %841  ;;  %v962_v39 = vcombine.high %v905_v33, %v921_v25  ;;  %v977_v48 = vcombine.low %v912_v60, %v928_v38  ;;  %v961_v0 = vcombine.low %v905_v33, %v921_v25  ;;  %v978_v20 = vcombine.high %v912_v60, %v928_v38 }
 0x1ec   :  { %1495 = vrot.lane.b32.xlu1 %v5079_v4, %s4492_s22  ;;  %1493 = vrot.lane.b32.xlu0 %v5082_v6, %s4492_s22  ;;  %v1313_v22 = vrot.slane %v1305_v2, %v5047_v28  ;;  %v1354_v25 = vcombine.high %v5050_v30, %v5067_v59  ;;  %v1306_v30 = vcombine.high %v4981_v62, %v5041_v14 }
 0x1ed   :  { %v862_v11 = vpop.permute.xlu0 %861  ;;  %v976_v49 = vrot.slane %v962_v39, %v5058_v45  ;;  %v992_v38 = vrot.slane %v978_v20, %v5058_v45 }
 0x1ee   :  { %v1368_v59 = vrot.slane %v1354_v25, %v5047_v28  ;;  %v1320_v14 = vrot.slane %v1306_v30, %v5047_v28  ;;  %v1177_v25 = vrot.slane %v1169_v63, %v5047_v28 }
 0x1ef   :  { %v5122_v46 = vpop.permute.xlu1 %853 }
 0x1f0   :  { %1499 = vrot.lane.b32.xlu1 %v5091_v16, %s4492_s22  ;;  %1497 = vrot.lane.b32.xlu0 %v5094_v18, %s4492_s22 }
 0x1f1   :  { %v874_v21 = vpop.permute.xlu0 %873 }
 0x1f2   :  { %v929_v29 = vcombine.low %v850_v1, %v874_v21  ;;  %v930_v31 = vcombine.high %v850_v1, %v874_v21  ;;  %v985_v1 = vrot.slane %v977_v48, %v5058_v45  ;;  %v969_v21 = vrot.slane %v961_v0, %v5058_v45 }
 0x1f3   :  { %v5134_v56 = vpop.permute.xlu1 %865 }
 0x1f4   :  { %1503 = vrot.lane.b32.xlu1 %v5106_v27, %s4492_s22  ;;  %1501 = vrot.lane.b32.xlu0 %v5108_v32, %s4492_s22  ;;  %v937_v40 = vrot.slane %v929_v29, %v5047_v28  ;;  %v944_v41 = vrot.slane %v930_v31, %v5047_v28  ;;  %v1401_v29 = vcombine.low %v1345_v17, %v1361_v3 }
 0x1f5   :  { %v886_v34 = vpop.permute.xlu0 %885 }
 0x1f6   :  { %v945_v36 = vcombine.low %v862_v11, %v886_v34  ;;  %v946_v37 = vcombine.high %v862_v11, %v886_v34  ;;  %v1322_v34 = vcombine.high %v5039_v12, %v5043_v19  ;;  %v1402_v12 = vcombine.high %v1345_v17, %v1361_v3 }
 0x1f7   :  { %v878_v24 = vpop.permute.xlu1 %877  ;;  %v1409_v39 = vrot.slane %v1401_v29, %v5058_v45 }
 0x1f8   :  { %v953_v42 = vrot.slane %v945_v36, %v5047_v28  ;;  %v960_v44 = vrot.slane %v946_v37, %v5047_v28  ;;  %v1369_v36 = vcombine.low %v1313_v22, %v1329_v15  ;;  %v1338_v37 = vcombine.high %v5045_v23, %v5056_v43 }
 0x1f9   :  { %v1336_v23 = vrot.slane %v1322_v34, %v5047_v28  ;;  %v1416_v48 = vrot.slane %v1402_v12, %v5058_v45  ;;  %v1201_v51 = vcombine.low %v5122_v46, %v878_v24  ;;  %v1202_v17 = vcombine.high %v5122_v46, %v878_v24 }
 0x1fa   :  { %v994_v10 = vcombine.high %v937_v40, %v953_v42  ;;  %v1009_v47 = vcombine.low %v944_v41, %v960_v44  ;;  %v993_v52 = vcombine.low %v937_v40, %v953_v42  ;;  %v1010_v5 = vcombine.high %v944_v41, %v960_v44  ;;  %v818_v44 = vpop.permute.xlu0 %817 }
 0x1fb   :  { %v890_v43 = vpop.permute.xlu1 %889  ;;  %v1370_v41 = vcombine.high %v1313_v22, %v1329_v15  ;;  %v1352_v42 = vrot.slane %v1338_v37, %v5047_v28  ;;  %v1377_v62 = vrot.slane %v1369_v36, %v5058_v45  ;;  %v1209_v20 = vrot.slane %v1201_v51, %v5047_v28 }
 0x1fc   :  { %v1008_v50 = vrot.slane %v994_v10, %v5058_v45  ;;  %v1017_v55 = vrot.slane %v1009_v47, %v5058_v45  ;;  %v1001_v11 = vrot.slane %v993_v52, %v5058_v45  ;;  %v1024_v33 = vrot.slane %v1010_v5, %v5058_v45 }
 0x1fd   :  { %v1417_v60 = vcombine.low %v1352_v42, %v1368_v59  ;;  %v1217_v10 = vcombine.low %v5134_v56, %v890_v43  ;;  %v5194_v47 = vcombine.high %v1377_v62, %v1409_v39  ;;  %v1185_v52 = vcombine.low %v818_v44, %v5104_v26 }
 0x1fe   :  { %v5129_v53 = vcombine.high %v976_v49, %v1008_v50  ;;  %v5131_v54 = vcombine.low %v976_v49, %v1008_v50  ;;  %v5148_v7 = vcombine.high %v985_v1, %v1017_v55  ;;  %v5151_v13 = vcombine.low %v985_v1, %v1017_v55 }
 0x1ff   :  { %v5163_v31 = vcombine.high %v969_v21, %v1001_v11  ;;  %v5168_v35 = vcombine.low %v969_v21, %v1001_v11  ;;  %v5180_v19 = vcombine.high %v992_v38, %v1024_v33  ;;  %v5184_v40 = vcombine.low %v992_v38, %v1024_v33 }
 0x200   :  { %1479 = vrot.lane.b32.xlu1 %v5129_v53, %s4492_s22  ;;  %1477 = vrot.lane.b32.xlu0 %v5131_v54, %s4492_s22  ;;  %v1385_v49 = vcombine.low %v1320_v14, %v1336_v23  ;;  %v5197_v50 = vcombine.low %v1377_v62, %v1409_v39  ;;  %v1384_v55 = vrot.slane %v1370_v41, %v5058_v45 }
 0x201   :  { %v1418_v58 = vcombine.high %v1352_v42, %v1368_v59  ;;  %v1218_v0 = vcombine.high %v5134_v56, %v890_v43  ;;  %v1225_v1 = vrot.slane %v1217_v10, %v5047_v28  ;;  %v1425_v3 = vrot.slane %v1417_v60, %v5058_v45 }
 0x202   :  { %v5210_v2 = vcombine.high %v1384_v55, %v1416_v48  ;;  %v1386_v5 = vcombine.high %v1320_v14, %v1336_v23  ;;  %v5213_v11 = vcombine.low %v1384_v55, %v1416_v48  ;;  %v1393_v15 = vrot.slane %v1385_v49, %v5058_v45 }
 0x203   :  { %v1186_v21 = vcombine.high %v818_v44, %v5104_v26  ;;  %v1193_v22 = vrot.slane %v1185_v52, %v5047_v28  ;;  %v1170_v56 = vcombine.high %v5011_v8, %v5084_v9  ;;  %v1232_v29 = vrot.slane %v1218_v0, %v5047_v28 }
 0x204   :  { %1483 = vrot.lane.b32.xlu1 %v5148_v7, %s4492_s22  ;;  %1481 = vrot.lane.b32.xlu0 %v5151_v13, %s4492_s22  ;;  %v1266_v46 = vcombine.high %v1209_v20, %v1225_v1  ;;  %v5228_v24 = vcombine.high %v1393_v15, %v1425_v3  ;;  %v1432_v26 = vrot.slane %v1418_v58, %v5058_v45 }
 0x205   :  { %v5231_v33 = vcombine.low %v1393_v15, %v1425_v3  ;;  %v1216_v34 = vrot.slane %v1202_v17, %v5047_v28  ;;  %v1200_v36 = vrot.slane %v1186_v21, %v5047_v28  ;;  %v1234_v37 = vcombine.high %v1177_v25, %v1193_v22 }
 0x206   :  { %v1400_v8 = vrot.slane %v1386_v5, %v5058_v45  ;;  %v1184_v9 = vrot.slane %v1170_v56, %v5047_v28  ;;  %v1280_v59 = vrot.slane %v1266_v46, %v5058_v45  ;;  %v1265_v43 = vcombine.low %v1209_v20, %v1225_v1 }
 0x207   :  { %v1281_v38 = vcombine.low %v1216_v34, %v1232_v29  ;;  %v1248_v23 = vrot.slane %v1234_v37, %v5058_v45  ;;  %v1233_v14 = vcombine.low %v1177_v25, %v1193_v22  ;;  %v1282_v60 = vcombine.high %v1216_v34, %v1232_v29 }
 0x208   :  { %1475 = vrot.lane.b32.xlu1 %v5163_v31, %s4492_s22  ;;  %1473 = vrot.lane.b32.xlu0 %v5168_v35, %s4492_s22  ;;  %v5241_v30 = vcombine.high %v1400_v8, %v1432_v26  ;;  %v5244_v12 = vcombine.low %v1400_v8, %v1432_v26  ;;  %v1249_v39 = vcombine.low %v1184_v9, %v1200_v36  ;;  %v6840_v26 = vmov 0.0  }
 0x209   :  { %v5251_v41 = vcombine.high %v1248_v23, %v1280_v59  ;;  %v1289_v42 = vrot.slane %v1281_v38, %v5058_v45  ;;  %v5254_v62 = vcombine.low %v1248_v23, %v1280_v59  ;;  %v1273_v48 = vrot.slane %v1265_v43, %v5058_v45 }
 0x20a   :  { %v1257_v44 = vrot.slane %v1249_v39, %v5058_v45  ;;  %v1250_v51 = vcombine.high %v1184_v9, %v1200_v36  ;;  %v1241_v52 = vrot.slane %v1233_v14, %v5058_v45  ;;  %v1296_v58 = vrot.slane %v1282_v60, %v5058_v45 }
 0x20c   :  { %1487 = vrot.lane.b32.xlu1 %v5180_v19, %s4492_s22  ;;  %1485 = vrot.lane.b32.xlu0 %v5184_v40, %s4492_s22  ;;  %v5261_v10 = vcombine.high %v1257_v44, %v1289_v42  ;;  %v5264_v49 = vcombine.low %v1257_v44, %v1289_v42  ;;  %v5271_v55 = vcombine.high %v1241_v52, %v1273_v48 }
 0x20d   :  { %v5274_v63 = vcombine.low %v1241_v52, %v1273_v48  ;;  %v1264_v0 = vrot.slane %v1250_v51, %v5058_v45 }
 0x20e   :  { %6848 = vst [vmem:[#allocation5_spill] sm:$0xff] %v5271_v55 }
 0x20f   :  { %6849 = vst [vmem:[#allocation6_spill] sm:$0xff] %v5274_v63  ;;  %v5281_v1 = vcombine.high %v1264_v0, %v1296_v58  ;;  %v5283_v3 = vcombine.low %v1264_v0, %v1296_v58 }
 0x210   :  { %1523 = vrot.lane.b32.xlu1 %v5194_v47, %s4492_s22  ;;  %1521 = vrot.lane.b32.xlu0 %v5197_v50, %s4492_s22 }
 0x214   :  { %1527 = vrot.lane.b32.xlu1 %v5210_v2, %s4492_s22  ;;  %1525 = vrot.lane.b32.xlu0 %v5213_v11, %s4492_s22 }
 0x218   :  { %1531 = vrot.lane.b32.xlu1 %v5228_v24, %s4492_s22  ;;  %1529 = vrot.lane.b32.xlu0 %v5231_v33, %s4492_s22 }
 0x21c   :  { %1535 = vrot.lane.b32.xlu1 %v5241_v30, %s4492_s22  ;;  %1533 = vrot.lane.b32.xlu0 %v5244_v12, %s4492_s22 }
 0x220   :  { %1511 = vrot.lane.b32.xlu1 %v5251_v41, %s4492_s22  ;;  %1509 = vrot.lane.b32.xlu0 %v5254_v62, %s4492_s22 }
 0x224   :  { %1515 = vrot.lane.b32.xlu1 %v5261_v10, %s4492_s22  ;;  %1513 = vrot.lane.b32.xlu0 %v5264_v49, %s4492_s22 }
 0x228   :  { %1507 = vrot.lane.b32.xlu1 %v5271_v55, %s4492_s22  ;;  %1505 = vrot.lane.b32.xlu0 %v5274_v63, %s4492_s22 }
 0x22c   :  { %1519 = vrot.lane.b32.xlu1 %v5281_v1, %s4492_s22  ;;  %1517 = vrot.lane.b32.xlu0 %v5283_v3, %s4492_s22 }
 0x25a   :  { %v1492_v5 = vpop.permute.xlu1 %1491  ;;  %v1490_v17 = vpop.permute.xlu0 %1489 }
 0x25b   :  { %v5290_v15 = vmax.f32 %v5069_v57, %v1492_v5  ;;  %v5293_v20 = vmax.f32 %v5071_v61, %v1490_v17 }
 0x25d   :  { %v5297_v21 = vrot.slane %v5290_v15, %v5047_v28  ;;  %v5301_v22 = vrot.slane %v5293_v20, %v5047_v28 }
 0x25e   :  { %v1496_v56 = vpop.permute.xlu1 %1495  ;;  %v1494_v29 = vpop.permute.xlu0 %1493 }
 0x25f   :  { %v1580_v25 = vmax.f32 %v5079_v4, %v1496_v56  ;;  %v1896_v57 = vcombine.high %v5301_v22, %v5297_v21  ;;  %v1579_v46 = vmax.f32 %v5082_v6, %v1494_v29 }
 0x261   :  { %v1946_v61 = vcombine.high %v1580_v25, %v6840_v26  ;;  %v5309_v34 = vrot.slane %v1580_v25, %v5047_v28  ;;  %v1931_v36 = vcombine.high %v1579_v46, %v6840_v26  ;;  %v5313_v37 = vrot.slane %v1579_v46, %v5047_v28 }
 0x262   :  { %v1500_v8 = vpop.permute.xlu1 %1499  ;;  %v5316_v4 = vrot.slane %v1896_v57, %v5058_v45  ;;  %v1498_v38 = vpop.permute.xlu0 %1497 }
 0x263   :  { %v5319_v9 = vrot.slane %v1946_v61, %v5047_v28  ;;  %v1582_v6 = vmax.f32 %v5091_v16, %v1500_v8  ;;  %v5323_v59 = vrot.slane %v1931_v36, %v5047_v28  ;;  %v1962_v39 = vcombine.high %v5313_v37, %v5309_v34 }
 0x264   :  { %v1581_v23 = vmax.f32 %v5094_v18, %v1498_v38  ;;  %2745 = vrot.lane.b32.xlu0 %v5316_v4, %s4489_s21 }
 0x265   :  { %v2012_v43 = vcombine.high %v1582_v6, %v6840_v26  ;;  %v5332_v42 = vrot.slane %v1582_v6, %v5047_v28  ;;  %v5341_v48 = vrot.slane %v1962_v39, %v5058_v45 }
 0x266   :  { %v1997_v14 = vcombine.high %v1581_v23, %v6840_v26  ;;  %v5338_v44 = vrot.slane %v1581_v23, %v5047_v28  ;;  %v1504_v60 = vpop.permute.xlu1 %1503  ;;  %v1502_v52 = vpop.permute.xlu0 %1501 }
 0x267   :  { %v5344_v18 = vrot.slane %v2012_v43, %v5047_v28  ;;  %v1584_v51 = vmax.f32 %v5106_v27, %v1504_v60  ;;  %v1583_v5 = vmax.f32 %v5108_v32, %v1502_v52 }
 0x268   :  { %v5348_v58 = vrot.slane %v1997_v14, %v5047_v28  ;;  %v2028_v0 = vcombine.high %v5338_v44, %v5332_v42  ;;  %2747 = vrot.lane.b32.xlu0 %v5341_v48, %s4489_s21 }
 0x269   :  { %v2078_v17 = vcombine.high %v1584_v51, %v6840_v26  ;;  %v5357_v56 = vrot.slane %v1584_v51, %v5047_v28  ;;  %v2063_v25 = vcombine.high %v1583_v5, %v6840_v26  ;;  %v5363_v29 = vrot.slane %v1583_v5, %v5047_v28 }
 0x26a   :  { %v5366_v57 = vrot.slane %v2028_v0, %v5058_v45 }
 0x26b   :  { %v5369_v32 = vrot.slane %v2078_v17, %v5047_v28  ;;  %v5374_v61 = vrot.slane %v2063_v25, %v5047_v28  ;;  %v2094_v36 = vcombine.high %v5363_v29, %v5357_v56 }
 0x26c   :  { %2749 = vrot.lane.b32.xlu0 %v5366_v57, %s4489_s21 }
 0x26d   :  { %v5387_v39 = vrot.slane %v2094_v36, %v5058_v45 }
 0x270   :  { %2751 = vrot.lane.b32.xlu0 %v5387_v39, %s4489_s21 }
 0x272   :  { %v1480_v23 = vpop.permute.xlu1 %1479  ;;  %v1478_v14 = vpop.permute.xlu0 %1477 }
 0x273   :  { %v1572_v43 = vmax.f32 %v5129_v53, %v1480_v23  ;;  %v1571_v60 = vmax.f32 %v5131_v54, %v1478_v14 }
 0x275   :  { %v1682_v51 = vcombine.high %v1572_v43, %v6840_v26  ;;  %v5395_v52 = vrot.slane %v1572_v43, %v5047_v28  ;;  %v1667_v0 = vcombine.high %v1571_v60, %v6840_v26  ;;  %v5399_v5 = vrot.slane %v1571_v60, %v5047_v28 }
 0x276   :  { %v1484_v17 = vpop.permute.xlu1 %1483  ;;  %v1482_v53 = vpop.permute.xlu0 %1481 }
 0x277   :  { %v5402_v25 = vrot.slane %v1682_v51, %v5047_v28  ;;  %v1574_v36 = vmax.f32 %v5148_v7, %v1484_v17  ;;  %v5406_v23 = vrot.slane %v1667_v0, %v5047_v28  ;;  %v1698_v43 = vcombine.high %v5399_v5, %v5395_v52 }
 0x278   :  { %v1573_v14 = vmax.f32 %v5151_v13, %v1482_v53  ;;  %v1895_v7 = vcombine.low %v5301_v22, %v5297_v21 }
 0x279   :  { %v1748_v60 = vcombine.high %v1574_v36, %v6840_v26  ;;  %v5415_v38 = vrot.slane %v1574_v36, %v5047_v28  ;;  %v5430_v36 = vrot.slane %v1698_v43, %v5058_v45 }
 0x27a   :  { %v1733_v0 = vcombine.high %v1573_v14, %v6840_v26  ;;  %v1476_v17 = vpop.permute.xlu1 %1475  ;;  %v5426_v27 = vrot.slane %v1573_v14, %v5047_v28  ;;  %v1474_v53 = vpop.permute.xlu0 %1473  ;;  %v5471_v46 = vrot.slane %v1895_v7, %v5058_v45  ;;  %v1961_v7 = vcombine.low %v5313_v37, %v5309_v34 }
 0x27b   :  { %v5423_v54 = vrot.slane %v1748_v60, %v5047_v28  ;;  %v1570_v13 = vmax.f32 %v5163_v31, %v1476_v17  ;;  %v1569_v16 = vmax.f32 %v5168_v35, %v1474_v53  ;;  %2739 = vrot.lane.b32.xlu0 %v5430_v36, %s4489_s21 }
 0x27c   :  { %v5435_v51 = vrot.slane %v1733_v0, %v5047_v28  ;;  %v1764_v14 = vcombine.high %v5426_v27, %v5415_v38  ;;  %6854 = vst [vmem:[#allocation11_spill] sm:$0xff] %v5471_v46  ;;  %v1927_v63 = vcombine.high %v5471_v46, %v6840_v26 }
 0x27d   :  { %6850 = vst [vmem:[#allocation7_spill] sm:$0xff] %v5423_v54  ;;  %v1616_v31 = vcombine.high %v1570_v13, %v6840_v26  ;;  %v5444_v17 = vrot.slane %v1570_v13, %v5047_v28  ;;  %v1601_v22 = vcombine.high %v1569_v16, %v6840_v26  ;;  %v5454_v43 = vrot.slane %v1569_v16, %v5047_v28 }
 0x27e   :  { %6851 = vst [vmem:[#allocation8_spill] sm:$0xff] %v5435_v51  ;;  %v1488_v0 = vpop.permute.xlu1 %1487  ;;  %v1486_v60 = vpop.permute.xlu0 %1485  ;;  %v5468_v16 = vrot.slane %v1764_v14, %v5058_v45 }
 0x27f   :  { %v5457_v53 = vrot.slane %v1616_v31, %v5047_v28  ;;  %v1576_v13 = vmax.f32 %v5180_v19, %v1488_v0  ;;  %v5461_v6 = vrot.slane %v1601_v22, %v5047_v28  ;;  %v1575_v35 = vmax.f32 %v5184_v40, %v1486_v60 }
 0x280   :  { %2741 = vrot.lane.b32.xlu0 %v5468_v16, %s4489_s21  ;;  %v1632_v19 = vcombine.high %v5454_v43, %v5444_v17 }
 0x281   :  { %6852 = vst [vmem:[#allocation9_spill] sm:$0xff] %v5457_v53  ;;  %6853 = vst [vmem:[#allocation10_spill] sm:$0xff] %v5461_v6  ;;  %v1821_v8 = vrot.slane %v1576_v13, %v5047_v28  ;;  %v1806_v0 = vrot.slane %v1575_v35, %v5047_v28 }
 0x282   :  { %v1524_v22 = vpop.permute.xlu1 %1523  ;;  %v1522_v60 = vpop.permute.xlu0 %1521  ;;  %v5511_v53 = vrot.slane %v1632_v19, %v5058_v45 }
 0x283   :  { %v5481_v40 = vmax.f32 %v5194_v47, %v1524_v22  ;;  %v5486_v14 = vmax.f32 %v5197_v50, %v1522_v60  ;;  %v1829_v31 = vcombine.low %v1806_v0, %v1821_v8  ;;  %v1830_v21 = vcombine.high %v1806_v0, %v1821_v8 }
 0x284   :  { %2681 = vrot.lane.b32.xlu0 %v1927_v63, %s4494_s23  ;;  %v2027_v60 = vcombine.low %v5338_v44, %v5332_v42 }
 0x285   :  { %v5494_v55 = vrot.slane %v5481_v40, %v5047_v28  ;;  %v5498_v22 = vrot.slane %v5486_v14, %v5047_v28  ;;  %v1844_v37 = vrot.slane %v1830_v21, %v5058_v45  ;;  %v5504_v8 = vrot.slane %v1829_v31, %v5058_v45 }
 0x286   :  { %v1528_v47 = vpop.permute.xlu1 %1527  ;;  %v1526_v34 = vpop.permute.xlu0 %1525 }
 0x287   :  { %v1596_v50 = vmax.f32 %v5210_v2, %v1528_v47  ;;  %6855 = vst [vmem:[#allocation12_spill] sm:$0xff] %v5504_v8  ;;  %v1595_v0 = vmax.f32 %v5213_v11, %v1526_v34  ;;  %2743 = vrot.lane.b32.xlu1 %v1844_v37, %s4489_s21  ;;  %v5515_v2 = vrot.slane %v1961_v7, %v5058_v45 }
 0x288   :  { %v2424_v31 = vcombine.high %v5498_v22, %v5494_v55  ;;  %2737 = vrot.lane.b32.xlu0 %v5511_v53, %s4489_s21  ;;  %v1861_v19 = vcombine.high %v5504_v8, %v6840_v26  ;;  %v1814_v7 = vcombine.high %v1576_v13, %v6840_v26  ;;  %v1799_v47 = vcombine.high %v1575_v35, %v6840_v26 }
 0x289   :  { %v2474_v46 = vcombine.high %v1596_v50, %v6840_v26  ;;  %6856 = vst [vmem:[#allocation13_spill] sm:$0xff] %v5515_v2  ;;  %v2459_v63 = vcombine.high %v1595_v0, %v6840_v26  ;;  %v5544_v35 = vrot.slane %v1596_v50, %v5047_v28 }
 0x28a   :  { %v1532_v21 = vpop.permute.xlu1 %1531  ;;  %v1530_v44 = vpop.permute.xlu0 %1529  ;;  %v5563_v13 = vrot.slane %v1814_v7, %v5047_v28 }
 0x28b   :  { %v5521_v11 = vrot.slane %v2474_v46, %v5047_v28  ;;  %v1598_v42 = vmax.f32 %v5228_v24, %v1532_v21  ;;  %v5531_v34 = vrot.slane %v2459_v63, %v5047_v28  ;;  %v1597_v6 = vmax.f32 %v5231_v33, %v1530_v44  ;;  %2679 = vrot.lane.b32.xlu1 %v1861_v19, %s4494_s23 }
 0x28c   :  { %v2093_v46 = vcombine.low %v5363_v29, %v5357_v56  ;;  %v1993_v24 = vcombine.high %v5515_v2, %v6840_v26  ;;  %v5541_v21 = vrot.slane %v2027_v60, %v5058_v45  ;;  %v5552_v63 = vrot.slane %v1595_v0, %v5047_v28 }
 0x28d   :  { %v2540_v54 = vcombine.high %v1598_v42, %v6840_v26  ;;  %v2525_v56 = vcombine.high %v1597_v6, %v6840_v26  ;;  %v5560_v19 = vrot.slane %v2424_v31, %v5058_v45  ;;  %v5566_v33 = vrot.slane %v1799_v47, %v5047_v28 }
 0x28e   :  { %6857 = vst [vmem:[#allocation14_spill] sm:$0xff] %v5541_v21  ;;  %v1536_v29 = vpop.permute.xlu1 %1535  ;;  %2683 = vrot.lane.b32.xlu0 %v1993_v24, %s4494_s23  ;;  %v1534_v60 = vpop.permute.xlu0 %1533  ;;  %v1880_v24 = vcombine.high %v5290_v15, %v6840_v26  ;;  %v2059_v7 = vcombine.high %v5541_v21, %v6840_v26  ;;  %v1862_v21 = vcombine.high %v1844_v37, %v6840_v26 }
 0x28f   :  { %v5555_v44 = vrot.slane %v2540_v54, %v5047_v28  ;;  %v1600_v50 = vmax.f32 %v5241_v30, %v1536_v29  ;;  %v5569_v0 = vrot.slane %v2525_v56, %v5047_v28  ;;  %v1599_v54 = vmax.f32 %v5244_v12, %v1534_v60  ;;  %2761 = vrot.lane.b32.xlu1 %v5560_v19, %s4489_s21 }
 0x290   :  { %v1865_v30 = vcombine.high %v5293_v20, %v6840_v26  ;;  %v1928_v20 = vcombine.high %v5316_v4, %v6840_v26  ;;  %v2490_v29 = vcombine.high %v5552_v63, %v5544_v35  ;;  %v5601_v4 = vrot.slane %v2093_v46, %v5058_v45 }
 0x291   :  { %v2606_v31 = vcombine.high %v1600_v50, %v6840_v26  ;;  %v2591_v56 = vcombine.high %v1599_v54, %v6840_v26  ;;  %v1845_v51 = vcombine.low %v5566_v33, %v5563_v13 }
 0x292   :  { %v1512_v15 = vpop.permute.xlu1 %1511  ;;  %2685 = vrot.lane.b32.xlu0 %v2059_v7, %s4494_s23  ;;  %v1510_v47 = vpop.permute.xlu0 %1509  ;;  %6859 = vst [vmem:[#allocation16_spill] sm:$0xff] %v5601_v4  ;;  %v5609_v7 = vrot.slane %v1597_v6, %v5047_v28  ;;  %v5636_v46 = vrot.slane %v1865_v30, %v5047_v28 }
 0x293   :  { %v5591_v60 = vrot.slane %v2606_v31, %v5047_v28  ;;  %v1588_v8 = vmax.f32 %v5251_v41, %v1512_v15  ;;  %v5597_v12 = vrot.slane %v2591_v56, %v5047_v28  ;;  %v1587_v2 = vmax.f32 %v5254_v62, %v1510_v47  ;;  %2807 = vrot.lane.b32.xlu1 %v1862_v21, %s4495_s24 }
 0x294   :  { %v5606_v31 = vrot.slane %v1598_v42, %v5047_v28  ;;  %v5625_v56 = vrot.slane %v1880_v24, %v5047_v28  ;;  %v5633_v62 = vrot.slane %v2490_v29, %v5058_v45  ;;  %v5653_v30 = vrot.slane %v1845_v51, %v5058_v45 }
 0x295   :  { %6858 = vst [vmem:[#allocation15_spill] sm:$0xff] %v5591_v60  ;;  %v2210_v41 = vcombine.high %v1588_v8, %v6840_v26  ;;  %v5613_v37 = vrot.slane %v1588_v8, %v5047_v28  ;;  %v2195_v42 = vcombine.high %v1587_v2, %v6840_v26  ;;  %v5622_v47 = vrot.slane %v1587_v2, %v5047_v28 }
 0x296   :  { %v1516_v6 = vpop.permute.xlu1 %1515  ;;  %2809 = vrot.lane.b32.xlu0 %v1928_v20, %s4495_s24  ;;  %v1514_v15 = vpop.permute.xlu0 %1513  ;;  %v2556_v29 = vcombine.high %v5609_v7, %v5606_v31  ;;  %v5668_v24 = vrot.slane %v1599_v54, %v5047_v28  ;;  %v1994_v54 = vcombine.high %v5341_v48, %v6840_v26 }
 0x297   :  { %v5628_v8 = vrot.slane %v2210_v41, %v5047_v28  ;;  %v1590_v21 = vmax.f32 %v5261_v10, %v1516_v6  ;;  %v5639_v2 = vrot.slane %v2195_v42, %v5047_v28  ;;  %v1589_v41 = vmax.f32 %v5264_v49, %v1514_v15  ;;  %2763 = vrot.lane.b32.xlu1 %v5633_v62, %s4489_s21 }
 0x298   :  { %v2125_v10 = vcombine.high %v5601_v4, %v6840_v26  ;;  %v5665_v15 = vrot.slane %v1600_v50, %v5047_v28 }
 0x299   :  { %6860 = vst [vmem:[#allocation17_spill] sm:$0xff] %v5628_v8  ;;  %6861 = vst [vmem:[#allocation18_spill] sm:$0xff] %v5639_v2  ;;  %v2276_v60 = vcombine.high %v1590_v21, %v6840_v26  ;;  %v5646_v20 = vrot.slane %v1590_v21, %v5047_v28  ;;  %v2261_v6 = vcombine.high %v1589_v41, %v6840_v26 }
 0x29a   :  { %v5662_v21 = vpop.permute.xlu1 %1507  ;;  %v5674_v4 = vrot.slane %v1589_v41, %v5047_v28  ;;  %2687 = vrot.lane.b32.xlu0 %v2125_v10, %s4494_s23  ;;  %v5677_v49 = vpop.permute.xlu0 %1505  ;;  %v2622_v8 = vcombine.high %v5668_v24, %v5665_v15  ;;  %v5699_v26 = vrot.slane %v2556_v29, %v5058_v45 }
 0x29b   :  { %6862 = vst [vmem:[#allocation19_spill] sm:$0xff] %v5662_v21  ;;  %v5671_v51 = vrot.slane %v2276_v60, %v5047_v28  ;;  %6863 = vst [vmem:[#allocation20_spill] sm:$0xff] %v5677_v49  ;;  %v5680_v42 = vrot.slane %v2261_v6, %v5047_v28  ;;  %2871 = vrot.lane.b32.xlu1 %v5653_v30, %s4488_s20  ;;  %v1911_v60 = vcombine.low %v5636_v46, %v5625_v56  ;;  %v6864_v49 = vmov 0.0  }
 0x29d   :  { %v5707_v10 = vrot.slane %v1911_v60, %v5058_v45 }
 0x29e   :  { %v1520_v6 = vpop.permute.xlu1 %1519  ;;  %2811 = vrot.lane.b32.xlu0 %v1994_v54, %s4495_s24  ;;  %v1518_v50 = vpop.permute.xlu0 %1517 }
 0x29f   :  { %v1592_v48 = vmax.f32 %v5281_v1, %v1520_v6  ;;  %v1591_v2 = vmax.f32 %v5283_v3, %v1518_v50  ;;  %2765 = vrot.lane.b32.xlu1 %v5699_v26, %s4489_s21  ;;  %v5721_v3 = vrot.slane %v2622_v8, %v5058_v45  ;;  %v1846_v50 = vcombine.high %v5566_v33, %v5563_v13 }
 0x2a0   :  { %v2226_v13 = vcombine.high %v5622_v47, %v5613_v37  ;;  %v2292_v8 = vcombine.high %v5674_v4, %v5646_v20 }
 0x2a1   :  { %v2342_v21 = vcombine.high %v1592_v48, %v6864_v49  ;;  %v5704_v41 = vrot.slane %v1592_v48, %v5047_v28  ;;  %v2327_v54 = vcombine.high %v1591_v2, %v6864_v49  ;;  %v5716_v29 = vrot.slane %v1591_v2, %v5047_v28 }
 0x2a2   :  { %2873 = vrot.lane.b32.xlu0 %v5707_v10, %s4488_s20  ;;  %v5742_v33 = vrot.slane %v1846_v50, %v5058_v45  ;;  %v5759_v50 = vrot.slane %v2226_v13, %v5058_v45 }
 0x2a3   :  { %v5713_v1 = vrot.slane %v2342_v21, %v5047_v28  ;;  %v5726_v60 = vrot.slane %v2327_v54, %v5047_v28  ;;  %v2357_v6 = vcombine.low %v5716_v29, %v5704_v41  ;;  %v2060_v21 = vcombine.high %v5366_v57, %v6864_v49  ;;  %2767 = vrot.lane.b32.xlu1 %v5721_v3, %s4489_s21 }
 0x2a4   :  { %v6865_v57 = vcombine.low %v5323_v59, %v5319_v9  ;;  %v2423_v54 = vcombine.low %v5498_v22, %v5494_v55  ;;  %v6866_v22 = vcombine.low %v5348_v58, %v5344_v18 }
 0x2a6   :  { %2813 = vrot.lane.b32.xlu0 %v2060_v21, %s4495_s24  ;;  %v5748_v48 = vrot.slane %v6865_v57, %v5058_v45  ;;  %v2126_v21 = vcombine.high %v5387_v39, %v6864_v49  ;;  %v5767_v57 = vrot.slane %v2292_v8, %v5058_v45  ;;  %v5770_v55 = vrot.slane %v2423_v54, %v5058_v45 }
 0x2a7   :  { %2999 = vrot.lane.b32.xlu1 %v5742_v33, %s4487_s19  ;;  %v5776_v13 = vrot.slane %v6866_v22, %v5058_v45  ;;  %v1912_v39 = vcombine.high %v5636_v46, %v5625_v56  ;;  %v2358_v8 = vcombine.high %v5716_v29, %v5704_v41  ;;  %v2555_v46 = vcombine.low %v5609_v7, %v5606_v31  ;;  %v6897_v29 = vld [vmem:[#allocation19_spill] sm:$0xff] }
 0x2a8   :  { %v2455_v54 = vcombine.high %v5770_v55, %v6864_v49  ;;  %v6867_v56 = vcombine.low %v5374_v61, %v5369_v32 }
 0x2a9   :  { %v5791_v22 = vrot.slane %v1912_v39, %v5058_v45  ;;  %v5817_v7 = vrot.slane %v2555_v46, %v5058_v45  ;;  %v6869_v46 = vcombine.high %v5348_v58, %v5344_v18  ;;  %v6870_v18 = vcombine.low %v5399_v5, %v5395_v52 }
 0x2aa   :  { %2875 = vrot.lane.b32.xlu0 %v5748_v48, %s4488_s20  ;;  %v5808_v39 = vrot.slane %v6867_v56, %v5058_v45  ;;  %v6872_v5 = vcombine.low %v5426_v27, %v5415_v38 }
 0x2ab   :  { %2755 = vrot.lane.b32.xlu1 %v5759_v50, %s4489_s21  ;;  %v2587_v56 = vcombine.high %v5817_v7, %v6864_v49  ;;  %v5836_v2 = vrot.slane %v6869_v46, %v5058_v45  ;;  %v5854_v58 = vrot.slane %v6870_v18, %v5058_v45 }
 0x2ae   :  { %2815 = vrot.lane.b32.xlu0 %v2126_v21, %s4495_s24  ;;  %v2489_v21 = vcombine.low %v5552_v63, %v5544_v35  ;;  %v5799_v35 = vrot.slane %v2358_v8, %v5058_v45 }
 0x2af   :  { %2757 = vrot.lane.b32.xlu1 %v5767_v57, %s4489_s21 }
 0x2b0   :  { %v5802_v63 = vrot.slane %v2489_v21, %v5058_v45  ;;  %v6868_v21 = vcombine.high %v5323_v59, %v5319_v9  ;;  %v2408_v9 = vcombine.high %v5481_v40, %v6864_v49  ;;  %v2393_v59 = vcombine.high %v5486_v14, %v6864_v49 }
 0x2b1   :  { %v6871_v40 = vcombine.high %v5374_v61, %v5369_v32  ;;  %v1729_v32 = vcombine.high %v5854_v58, %v6864_v49  ;;  %v2522_v61 = vcombine.high %v5633_v62, %v6864_v49 }
 0x2b2   :  { %2877 = vrot.lane.b32.xlu0 %v5776_v13, %s4488_s20  ;;  %v2521_v31 = vcombine.high %v5802_v63, %v6864_v49  ;;  %v5823_v8 = vrot.slane %v6868_v21, %v5058_v45  ;;  %v5873_v21 = vrot.slane %v6872_v5, %v5058_v45 }
 0x2b3   :  { %2697 = vrot.lane.b32.xlu1 %v2455_v54, %s4494_s23  ;;  %v2621_v54 = vcombine.low %v5668_v24, %v5665_v15  ;;  %v2456_v24 = vcombine.high %v5560_v19, %v6864_v49  ;;  %v5860_v14 = vrot.slane %v6871_v40, %v5058_v45  ;;  %v2407_v19 = vrot.slane %v2393_v59, %v5047_v28 }
 0x2b4   :  { %v1795_v27 = vcombine.high %v5873_v21, %v6864_v49  ;;  %v1796_v59 = vcombine.high %v5468_v16, %v6864_v49  ;;  %v2654_v16 = vcombine.high %v5721_v3, %v6864_v49 }
 0x2b5   :  { %v5848_v15 = vrot.slane %v2621_v54, %v5058_v45 }
 0x2b6   :  { %3001 = vrot.lane.b32.xlu0 %v5791_v22, %s4487_s19 }
 0x2b7   :  { %2759 = vrot.lane.b32.xlu1 %v5799_v35, %s4489_s21  ;;  %v2653_v52 = vcombine.high %v5848_v15, %v6864_v49 }
 0x2ba   :  { %2879 = vrot.lane.b32.xlu0 %v5808_v39, %s4488_s20 }
 0x2bb   :  { %2699 = vrot.lane.b32.xlu1 %v2521_v31, %s4494_s23  ;;  %v2422_v31 = vrot.slane %v2408_v9, %v5047_v28  ;;  %v2588_v9 = vcombine.high %v5699_v26, %v6864_v49  ;;  %v6875_v26 = vcombine.low %v5406_v23, %v5402_v25 }
 0x2bd   :  { %v2439_v54 = vcombine.low %v2407_v19, %v2422_v31  ;;  %v5923_v18 = vrot.slane %v6875_v26, %v5058_v45  ;;  %v2440_v5 = vcombine.high %v2407_v19, %v2422_v31  ;;  %v6880_v31 = vld [vmem:[#allocation10_spill] sm:$0xff]  ;;  %v6881_v19 = vld [vmem:[#allocation9_spill] sm:$0xff] }
 0x2be   :  { %3003 = vrot.lane.b32.xlu0 %v5823_v8, %s4487_s19 }
 0x2bf   :  { %2701 = vrot.lane.b32.xlu1 %v2587_v56, %s4494_s23  ;;  %v6873_v56 = vcombine.low %v5454_v43, %v5444_v17  ;;  %v5892_v38 = vrot.slane %v2439_v54, %v5058_v45  ;;  %v1863_v17 = vcombine.high %v5653_v30, %v6864_v49  ;;  %v1730_v43 = vcombine.high %v5430_v36, %v6864_v49  ;;  %v6877_v54 = vld [vmem:[#allocation8_spill] sm:$0xff] }
 0x2c0   :  { %v6874_v36 = vcombine.low %v5531_v34, %v5521_v11 }
 0x2c1   :  { %v5885_v46 = vrot.slane %v6873_v56, %v5058_v45  ;;  %v6878_v56 = vld [vmem:[#allocation7_spill] sm:$0xff] }
 0x2c2   :  { %3005 = vrot.lane.b32.xlu0 %v5836_v2, %s4487_s19  ;;  %v5917_v30 = vrot.slane %v6874_v36, %v5058_v45  ;;  %v6883_v36 = vcombine.high %v5406_v23, %v5402_v25  ;;  %v6886_v25 = vcombine.high %v6877_v54, %v6878_v56 }
 0x2c3   :  { %2825 = vrot.lane.b32.xlu1 %v2456_v24, %s4495_s24  ;;  %v1663_v62 = vcombine.high %v5885_v46, %v6864_v49 }
 0x2c4   :  { %v5976_v26 = vrot.slane %v6883_v36, %v5058_v45  ;;  %v5993_v23 = vrot.slane %v6886_v25, %v5058_v45 }
 0x2c6   :  { %3007 = vrot.lane.b32.xlu0 %v5860_v14, %s4487_s19 }
 0x2c7   :  { %2703 = vrot.lane.b32.xlu1 %v2653_v52, %s4494_s23  ;;  %v1664_v52 = vcombine.high %v5511_v53, %v6864_v49  ;;  %v5956_v53 = vrot.slane %v2440_v5, %v5058_v45 }
 0x2ca   :  { %2675 = vrot.lane.b32.xlu0 %v1729_v32, %s4494_s23  ;;  %v6876_v32 = vcombine.low %v5569_v0, %v5555_v44 }
 0x2cb   :  { %2827 = vrot.lane.b32.xlu1 %v2522_v61, %s4495_s24 }
 0x2cc   :  { %v5941_v61 = vrot.slane %v6876_v32, %v5058_v45  ;;  %v6887_v32 = vcombine.high %v5531_v34, %v5521_v11  ;;  %v6889_v11 = vcombine.high %v6880_v31, %v6881_v19 }
 0x2ce   :  { %2677 = vrot.lane.b32.xlu0 %v1795_v27, %s4494_s23  ;;  %v6879_v27 = vcombine.low %v6877_v54, %v6878_v56  ;;  %v6888_v54 = vcombine.high %v5569_v0, %v5555_v44  ;;  %v6022_v34 = vrot.slane %v6889_v11, %v5058_v45 }
 0x2cf   :  { %2889 = vrot.lane.b32.xlu1 %v5892_v38, %s4488_s20 }
 0x2d0   :  { %v6016_v56 = vrot.slane %v6888_v54, %v5058_v45  ;;  %v1930_v54 = vcombine.high %v5791_v22, %v6864_v49  ;;  %v2127_v22 = vcombine.high %v5808_v39, %v6864_v49  ;;  %v1996_v39 = vcombine.high %v5823_v8, %v6864_v49  ;;  %v6902_v8 = vld [vmem:[#allocation11_spill] sm:$0xff] }
 0x2d2   :  { %2673 = vrot.lane.b32.xlu0 %v1663_v62, %s4494_s23  ;;  %v5949_v62 = vrot.slane %v6879_v27, %v5058_v45  ;;  %v6003_v27 = vrot.slane %v6887_v32, %v5058_v45 }
 0x2d3   :  { %2935 = vrot.lane.b32.xlu1 %v1863_v17, %s4496_s25  ;;  %v6882_v17 = vcombine.low %v6880_v31, %v6881_v19  ;;  %v1995_v19 = vcombine.high %v5748_v48, %v6864_v49  ;;  %v2061_v48 = vcombine.high %v5776_v13, %v6864_v49 }
 0x2d6   :  { %2803 = vrot.lane.b32.xlu0 %v1730_v43, %s4495_s24  ;;  %v5909_v24 = vpop.permute.xlu0 %2745  ;;  %v5962_v43 = vrot.slane %v6882_v17, %v5058_v45  ;;  %v1929_v17 = vcombine.high %v5707_v10, %v6864_v49  ;;  %v6890_v10 = vcombine.low %v5622_v47, %v5613_v37  ;;  %v6894_v37 = vcombine.low %v5674_v4, %v5646_v20 }
 0x2d7   :  { %2829 = vrot.lane.b32.xlu1 %v2588_v9, %s4495_s24  ;;  %v1864_v9 = vcombine.high %v5742_v33, %v6864_v49  ;;  %v6884_v33 = vld [vmem:[#allocation15_spill] sm:$0xff]  ;;  %v6066_v4 = vrot.slane %v2357_v6, %v5058_v45  ;;  %v6898_v6 = vld [vmem:[#allocation5_spill] sm:$0xff] }
 0x2d8   :  { %v6892_v0 = vcombine.high %v5597_v12, %v6884_v33  ;;  %v6052_v47 = vrot.slane %v6894_v37, %v5058_v45 }
 0x2d9   :  { %6896 = vst [vmem:[#allocation9_spill] sm:$0xff] %v6066_v4  ;;  %v2389_v41 = vcombine.high %v6066_v4, %v6864_v49 }
 0x2da   :  { %2805 = vrot.lane.b32.xlu0 %v1796_v59, %s4495_s24  ;;  %v5929_v40 = vpop.permute.xlu0 %2747  ;;  %v6040_v31 = vrot.slane %v6892_v0, %v5058_v45  ;;  %6895 = vst [vmem:[#allocation10_spill] sm:$0xff] %v6052_v47  ;;  %v6899_v0 = vld [vmem:[#allocation20_spill] sm:$0xff] }
 0x2db   :  { %2891 = vrot.lane.b32.xlu1 %v5917_v30, %s4488_s20 }
 0x2dc   :  { %6893 = vst [vmem:[#allocation7_spill] sm:$0xff] %v6040_v31 }
 0x2de   :  { %2867 = vrot.lane.b32.xlu0 %v5923_v18, %s4488_s20  ;;  %v5943_v3 = vpop.permute.xlu0 %2749 }
 0x2df   :  { %2831 = vrot.lane.b32.xlu1 %v2654_v16, %s4495_s24 }
 0x2e2   :  { %2801 = vrot.lane.b32.xlu0 %v1664_v52, %s4495_s24  ;;  %v5968_v59 = vpop.permute.xlu0 %2751  ;;  %v6885_v52 = vcombine.low %v5597_v12, %v6884_v33 }
 0x2e3   :  { %2893 = vrot.lane.b32.xlu1 %v5941_v61, %s4488_s20 }
 0x2e4   :  { %v5987_v5 = vrot.slane %v6885_v52, %v5058_v45  ;;  %v6030_v52 = vrot.slane %v6890_v10, %v5058_v45  ;;  %v6083_v10 = vmax.f32 %v6898_v6, %v6897_v29 }
 0x2e6   :  { %2869 = vrot.lane.b32.xlu0 %v5949_v62, %s4488_s20  ;;  %6891 = vst [vmem:[#allocation8_spill] sm:$0xff] %v6030_v52  ;;  %v2257_v12 = vcombine.high %v6030_v52, %v6864_v49 }
 0x2e7   :  { %3017 = vrot.lane.b32.xlu1 %v5956_v53, %s4487_s19 }
 0x2ea   :  { %2865 = vrot.lane.b32.xlu0 %v5962_v43, %s4488_s20 }
 0x2eb   :  { %3063 = vrot.lane.b32.xlu1 %v1864_v9, %s4497_s26 }
 0x2ed   :  { %v5981_v16 = vpop.permute.xlu0 %2739 }
 0x2ee   :  { %2995 = vrot.lane.b32.xlu0 %v5976_v26, %s4487_s19 }
 0x2ef   :  { %2895 = vrot.lane.b32.xlu1 %v5987_v5, %s4488_s20 }
 0x2f2   :  { %2997 = vrot.lane.b32.xlu0 %v5993_v23, %s4487_s19  ;;  %v6007_v9 = vpop.permute.xlu0 %2741 }
 0x2f3   :  { %3019 = vrot.lane.b32.xlu1 %v6003_v27, %s4487_s19 }
 0x2f6   :  { %2937 = vrot.lane.b32.xlu0 %v1929_v17, %s4496_s25  ;;  %v2682_v36 = vpop.permute.xlu0 %2681  ;;  %v2323_v17 = vcombine.high %v6052_v47, %v6864_v49  ;;  %v6904_v47 = vld [vmem:[#allocation17_spill] sm:$0xff] }
 0x2f7   :  { %3021 = vrot.lane.b32.xlu1 %v6016_v56, %s4487_s19 }
 0x2f9   :  { %v6034_v44 = vpop.permute.xlu1 %2743 }
 0x2fa   :  { %2993 = vrot.lane.b32.xlu0 %v6022_v34, %s4487_s19  ;;  %v6044_v25 = vpop.permute.xlu0 %2737 }
 0x2fb   :  { %3023 = vrot.lane.b32.xlu1 %v6040_v31, %s4487_s19 }
 0x2fd   :  { %v6055_v32 = vpop.permute.xlu1 %2679 }
 0x2fe   :  { %2939 = vrot.lane.b32.xlu0 %v1995_v19, %s4496_s25  ;;  %v6900_v19 = vld [vmem:[#allocation6_spill] sm:$0xff] }
 0x2ff   :  { %2691 = vrot.lane.b32.xlu1 %v2257_v12, %s4494_s23  ;;  %v6087_v37 = vmax.f32 %v6900_v19, %v6899_v0  ;;  %v2324_v0 = vcombine.high %v5767_v57, %v6864_v49 }
 0x300   :  { %v2684_v33 = vpop.permute.xlu0 %2683 }
 0x301   :  { %v6069_v20 = vpop.permute.xlu1 %2761  ;;  %v6103_v29 = vrot.slane %v6087_v37, %v5047_v28 }
 0x302   :  { %2941 = vrot.lane.b32.xlu0 %v2061_v48, %s4496_s25  ;;  %v2258_v48 = vcombine.high %v5759_v50, %v6864_v49  ;;  %v6901_v50 = vld [vmem:[#allocation13_spill] sm:$0xff] }
 0x303   :  { %2693 = vrot.lane.b32.xlu1 %v2323_v17, %s4494_s23 }
 0x304   :  { %v2686_v13 = vpop.permute.xlu0 %2685 }
 0x305   :  { %v6077_v11 = vpop.permute.xlu1 %2807 }
 0x306   :  { %3065 = vrot.lane.b32.xlu0 %v1930_v54, %s4497_s26  ;;  %v6099_v54 = vrot.slane %v6083_v10, %v5047_v28 }
 0x307   :  { %2695 = vrot.lane.b32.xlu1 %v2389_v41, %s4494_s23  ;;  %v3111_v41 = vsel %vm3105_vm0, %v6901_v50, %v2684_v33 }
 0x308   :  { %v2810_v12 = vpop.permute.xlu0 %2809  ;;  %v2160_v4 = vcombine.high %v6103_v29, %v6099_v54  ;;  %v3128_v33 = vsel %vm3122_vm1, %v3111_v41, %v5929_v40 }
 0x309   :  { %v6095_v17 = vpop.permute.xlu1 %2763 }
 0x30a   :  { %2943 = vrot.lane.b32.xlu0 %v2127_v22, %s4496_s25  ;;  %v2062_v22 = vcombine.high %v5836_v2, %v6864_v49  ;;  %v6903_v2 = vld [vmem:[#allocation18_spill] sm:$0xff] }
 0x30b   :  { %2819 = vrot.lane.b32.xlu1 %v2258_v48, %s4495_s24  ;;  %v3110_v48 = vsel %vm3105_vm0, %v6902_v8, %v2682_v36  ;;  %v6905_v52 = vcombine.low %v6903_v2, %v6904_v47 }
 0x30c   :  { %v2688_v6 = vpop.permute.xlu0 %2687  ;;  %v3127_v36 = vsel %vm3122_vm1, %v3110_v48, %v5909_v24  ;;  %v1731_v48 = vcombine.high %v5923_v18, %v6864_v49  ;;  %v6908_v18 = vld [vmem:[#allocation16_spill] sm:$0xff] }
 0x30d   :  { %v6113_v19 = vpop.permute.xlu1 %2871  ;;  %v6132_v31 = vrot.slane %v6905_v52, %v5058_v45  ;;  %v3144_v40 = vsel %vm3139_vm2, %v3127_v36, %v2810_v12  ;;  %v2390_v52 = vcombine.high %v5799_v35, %v6864_v49  ;;  %v6907_v35 = vcombine.low %v5680_v42, %v5671_v51 }
 0x30e   :  { %3067 = vrot.lane.b32.xlu0 %v1996_v39, %s4497_s26 }
 0x30f   :  { %2821 = vrot.lane.b32.xlu1 %v2324_v0, %s4495_s24  ;;  %v6138_v0 = vrot.slane %v2160_v4, %v5058_v45  ;;  %v6166_v36 = vrot.slane %v6907_v35, %v5058_v45  ;;  %v6910_v35 = vcombine.high %v6903_v2, %v6904_v47  ;;  %v2159_v2 = vcombine.low %v6103_v29, %v6099_v54 }
 0x310   :  { %v2812_v50 = vpop.permute.xlu0 %2811  ;;  %v1666_v29 = vcombine.high %v6022_v34, %v6864_v49 }
 0x311   :  { %v3145_v57 = vsel %vm3139_vm2, %v3128_v33, %v2812_v50  ;;  %v6126_v39 = vpop.permute.xlu1 %2765  ;;  %v6234_v54 = vrot.slane %v2159_v2, %v5058_v45  ;;  %v2192_v2 = vcombine.high %v6138_v0, %v6864_v49 }
 0x312   :  { %3069 = vrot.lane.b32.xlu0 %v2062_v22, %s4497_s26  ;;  %v6906_v22 = vld [vmem:[#allocation14_spill] sm:$0xff] }
 0x313   :  { %2883 = vrot.lane.b32.xlu1 %v6132_v31, %s4488_s20  ;;  %v3112_v8 = vsel %vm3105_vm0, %v6906_v22, %v2686_v13  ;;  %v2191_v34 = vcombine.high %v6234_v54, %v6864_v49 }
 0x314   :  { %v2874_v41 = vpop.permute.xlu0 %2873  ;;  %v3129_v4 = vsel %vm3122_vm1, %v3112_v8, %v5943_v3  ;;  %v1797_v3 = vcombine.high %v5949_v62, %v6864_v49 }
 0x315   :  { %v6145_v33 = vsel %vm3156_vm3, %v3144_v40, %v2874_v41  ;;  %v6151_v24 = vpop.permute.xlu1 %2767  ;;  %v3113_v41 = vsel %vm3105_vm0, %v6908_v18, %v2688_v6  ;;  %v1665_v6 = vcombine.high %v5962_v43, %v6864_v49 }
 0x316   :  { %2753 = vrot.lane.b32.xlu0 %v6138_v0, %s4489_s21  ;;  %v3130_v62 = vsel %vm3122_vm1, %v3113_v41, %v5968_v59  ;;  %v6911_v41 = vcombine.high %v5680_v42, %v5671_v51  ;;  %v2144_v42 = vcombine.high %v6083_v10, %v6864_v49  ;;  %v2129_v51 = vcombine.high %v6087_v37, %v6864_v49 }
 0x317   :  { %2823 = vrot.lane.b32.xlu1 %v2390_v52, %s4495_s24  ;;  %v6909_v52 = vcombine.low %v5726_v60, %v5713_v1  ;;  %v6912_v10 = vcombine.high %v5726_v60, %v5713_v1  ;;  %v2523_v1 = vcombine.high %v5917_v30, %v6864_v49  ;;  %v2589_v30 = vcombine.high %v5941_v61, %v6864_v49 }
 0x318   :  { %v2814_v12 = vpop.permute.xlu0 %2813  ;;  %v6214_v47 = vrot.slane %v6911_v41, %v5058_v45 }
 0x319   :  { %v3146_v13 = vsel %vm3139_vm2, %v3129_v4, %v2814_v12  ;;  %v6160_v50 = vpop.permute.xlu1 %2999  ;;  %v6184_v4 = vrot.slane %v6909_v52, %v5058_v45  ;;  %v6247_v37 = vrot.slane %v6912_v10, %v5058_v45 }
 0x31a   :  { %2931 = vrot.lane.b32.xlu0 %v1731_v48, %s4496_s25 }
 0x31b   :  { %2885 = vrot.lane.b32.xlu1 %v6166_v36, %s4488_s20 }
 0x31c   :  { %v2876_v40 = vpop.permute.xlu0 %2875 }
 0x31d   :  { %v6175_v22 = vsel %vm3156_vm3, %v3145_v57, %v2876_v40  ;;  %v6178_v8 = vpop.permute.xlu1 %2755  ;;  %v6200_v40 = vrot.slane %v6910_v35, %v5058_v45  ;;  %v2143_v35 = vrot.slane %v2129_v51, %v5047_v28 }
 0x31e   :  { %2933 = vrot.lane.b32.xlu0 %v1797_v3, %s4496_s25  ;;  %v1732_v3 = vcombine.high %v5976_v26, %v6864_v49  ;;  %v1798_v26 = vcombine.high %v5993_v23, %v6864_v49 }
 0x31f   :  { %2887 = vrot.lane.b32.xlu1 %v6184_v4, %s4488_s20 }
 0x320   :  { %v2816_v12 = vpop.permute.xlu0 %2815 }
 0x321   :  { %v3147_v57 = vsel %vm3139_vm2, %v3130_v62, %v2816_v12  ;;  %v6194_v48 = vpop.permute.xlu1 %2757 }
 0x322   :  { %2929 = vrot.lane.b32.xlu0 %v1665_v6, %s4496_s25  ;;  %v2158_v6 = vrot.slane %v2144_v42, %v5047_v28 }
 0x323   :  { %3011 = vrot.lane.b32.xlu1 %v6200_v40, %s4487_s19 }
 0x324   :  { %v2878_v59 = vpop.permute.xlu0 %2877 }
 0x325   :  { %v6207_v43 = vsel %vm3156_vm3, %v3146_v13, %v2878_v59  ;;  %v2698_v18 = vpop.permute.xlu1 %2697  ;;  %v2457_v13 = vcombine.high %v5892_v38, %v6864_v49 }
 0x326   :  { %3059 = vrot.lane.b32.xlu0 %v1732_v3, %s4497_s26  ;;  %v3118_v60 = vsel %vm3105_vm0, %v5770_v55, %v2698_v18  ;;  %v2175_v3 = vcombine.low %v2143_v35, %v2158_v6  ;;  %v2176_v55 = vcombine.high %v2143_v35, %v2158_v6  ;;  %v2655_v35 = vcombine.high %v5987_v5, %v6864_v49 }
 0x327   :  { %3013 = vrot.lane.b32.xlu1 %v6214_v47, %s4487_s19 }
 0x328   :  { %v6218_v52 = vpop.permute.xlu0 %3001  ;;  %v2183_v51 = vrot.slane %v2175_v3, %v5058_v45  ;;  %v2190_v61 = vrot.slane %v2176_v55, %v5058_v45 }
 0x329   :  { %v6227_v62 = vpop.permute.xlu1 %2759 }
 0x32a   :  { %3061 = vrot.lane.b32.xlu0 %v1798_v26, %s4497_s26  ;;  %v3135_v26 = vsel %vm3122_vm1, %v3118_v60, %v6069_v20 }
 0x32b   :  { %2953 = vrot.lane.b32.xlu1 %v2457_v13, %s4496_s25 }
 0x32c   :  { %v2880_v23 = vpop.permute.xlu0 %2879 }
 0x32d   :  { %v6240_v38 = vsel %vm3156_vm3, %v3147_v57, %v2880_v23  ;;  %v2700_v12 = vpop.permute.xlu1 %2699  ;;  %v2458_v23 = vcombine.high %v5956_v53, %v6864_v49 }
 0x32e   :  { %3057 = vrot.lane.b32.xlu0 %v1666_v29, %s4497_s26  ;;  %v3119_v20 = vsel %vm3105_vm0, %v5802_v63, %v2700_v12  ;;  %v2193_v63 = vcombine.high %v2183_v51, %v6864_v49  ;;  %v6913_v12 = vld [vmem:[#allocation12_spill] sm:$0xff] }
 0x32f   :  { %3015 = vrot.lane.b32.xlu1 %v6247_v37, %s4487_s19  ;;  %v3136_v10 = vsel %vm3122_vm1, %v3119_v20, %v6095_v17  ;;  %v2524_v17 = vcombine.high %v6003_v27, %v6864_v49 }
 0x330   :  { %v6251_v59 = vpop.permute.xlu0 %3003 }
 0x331   :  { %v2702_v57 = vpop.permute.xlu1 %2701 }
 0x332   :  { %2689 = vrot.lane.b32.xlu0 %v2191_v34, %s4494_s23 }
 0x333   :  { %2955 = vrot.lane.b32.xlu1 %v2523_v1, %s4496_s25  ;;  %v3109_v1 = vsel %vm3105_vm0, %v6913_v12, %v6055_v32  ;;  %v2260_v12 = vcombine.high %v6200_v40, %v6864_v49 }
 0x334   :  { %v6262_v41 = vpop.permute.xlu0 %3005  ;;  %v3126_v5 = vsel %vm3122_vm1, %v3109_v1, %v6034_v44  ;;  %v2590_v44 = vcombine.high %v6016_v56, %v6864_v49 }
 0x335   :  { %v2826_v13 = vpop.permute.xlu1 %2825  ;;  %v3143_v32 = vsel %vm3139_vm2, %v3126_v5, %v6077_v11 }
 0x336   :  { %2817 = vrot.lane.b32.xlu0 %v2192_v2, %s4495_s24  ;;  %v3152_v42 = vsel %vm3139_vm2, %v3135_v26, %v2826_v13  ;;  %v2194_v26 = vcombine.high %v2190_v61, %v6864_v49  ;;  %v3160_v27 = vsel %vm3156_vm3, %v3143_v32, %v6113_v19 }
 0x337   :  { %2957 = vrot.lane.b32.xlu1 %v2589_v30, %s4496_s25 }
 0x338   :  { %v6273_v18 = vpop.permute.xlu0 %3007 }
 0x339   :  { %v2704_v0 = vpop.permute.xlu1 %2703 }
 0x33a   :  { %2881 = vrot.lane.b32.xlu0 %v2183_v51, %s4488_s20 }
 0x33b   :  { %3081 = vrot.lane.b32.xlu1 %v2458_v23, %s4497_s26 }
 0x33c   :  { %v2676_v29 = vpop.permute.xlu0 %2675 }
 0x33d   :  { %v2828_v6 = vpop.permute.xlu1 %2827  ;;  %v3107_v13 = vsel %vm3105_vm0, %v5854_v58, %v2676_v29  ;;  %v2128_v58 = vcombine.high %v5860_v14, %v6864_v49 }
 0x33e   :  { %3009 = vrot.lane.b32.xlu0 %v2190_v61, %s4487_s19  ;;  %v3153_v34 = vsel %vm3139_vm2, %v3136_v10, %v2828_v6  ;;  %v3124_v11 = vsel %vm3122_vm1, %v3107_v13, %v5981_v16  ;;  %v2325_v61 = vcombine.high %v6166_v36, %v6864_v49  ;;  %v2391_v36 = vcombine.high %v6184_v4, %v6864_v49 }
 0x33f   :  { %2959 = vrot.lane.b32.xlu1 %v2655_v35, %s4496_s25 }
 0x340   :  { %v2678_v53 = vpop.permute.xlu0 %2677 }
 0x341   :  { %v2890_v60 = vpop.permute.xlu1 %2889  ;;  %v3108_v56 = vsel %vm3105_vm0, %v5873_v21, %v2678_v53 }
 0x342   :  { %2945 = vrot.lane.b32.xlu0 %v2193_v63, %s4496_s25  ;;  %v6299_v3 = vsel %vm3156_vm3, %v3152_v42, %v2890_v60  ;;  %v3120_v42 = vsel %vm3105_vm0, %v5817_v7, %v2702_v57  ;;  %v2259_v57 = vcombine.high %v6132_v31, %v6864_v49  ;;  %v3125_v14 = vsel %vm3122_vm1, %v3108_v56, %v6007_v9  ;;  %v3458_v56 = vld [vmem:[%s6814_s3 + $0xf0] sm:$0xff] }
 0x343   :  { %3083 = vrot.lane.b32.xlu1 %v2524_v17, %s4497_s26  ;;  %v3137_v7 = vsel %vm3122_vm1, %v3120_v42, %v6126_v39  ;;  %v3121_v39 = vsel %vm3105_vm0, %v5848_v15, %v2704_v0 }
 0x344   :  { %v2674_v2 = vpop.permute.xlu0 %2673  ;;  %v3138_v35 = vsel %vm3122_vm1, %v3121_v39, %v6151_v24 }
 0x345   :  { %v2936_v30 = vpop.permute.xlu1 %2935  ;;  %v3106_v9 = vsel %vm3105_vm0, %v5885_v46, %v2674_v2  ;;  %v2392_v2 = vcombine.high %v6247_v37, %v6864_v49 }
 0x346   :  { %3073 = vrot.lane.b32.xlu0 %v2194_v26, %s4497_s26  ;;  %v3177_v55 = vsel %vm3173_vm4, %v3160_v27, %v2936_v30  ;;  %v3123_v0 = vsel %vm3122_vm1, %v3106_v9, %v6044_v25  ;;  %v2326_v25 = vcombine.high %v6214_v47, %v6864_v49  ;;  %v6914_v47 = vld [vmem:[#allocation7_spill] sm:$0xff]  ;;  %v3488_v9 = vld [vmem:[%s6814_s3 + $0x1e0] sm:$0xff] }
 0x347   :  { %3085 = vrot.lane.b32.xlu1 %v2590_v44, %s4497_s26  ;;  %v3194_v19 = vsel %vm3190_vm5, %v3177_v55, %v6160_v50  ;;  %v2656_v27 = vcombine.high %v6914_v47, %v6864_v49  ;;  %v3485_v47 = vld [vmem:[%s6814_s3 + $0x1c8] sm:$0xff] }
 0x348   :  { %v2804_v51 = vpop.permute.xlu0 %2803 }
 0x349   :  { %v3141_v23 = vsel %vm3139_vm2, %v3124_v11, %v2804_v51  ;;  %v2830_v16 = vpop.permute.xlu1 %2829 }
 0x34a   :  { %3071 = vrot.lane.b32.xlu0 %v2128_v58, %s4497_s26  ;;  %v3154_v20 = vsel %vm3139_vm2, %v3137_v7, %v2830_v16  ;;  %v3459_v58 = vld [vmem:[%s6814_s3 + $0xf8] sm:$0xff]  ;;  %v3457_v16 = vld [vmem:[%s6814_s3 + $0xe8] sm:$0xff] }
 0x34b   :  { %2947 = vrot.lane.b32.xlu1 %v2259_v57, %s4496_s25  ;;  %4066 = vmatprep.subr.mxu1 %v3459_v58  ;;  %v3475_v7 = vld [vmem:[%s6814_s3 + $0x178] sm:$0xff]  ;;  %v3490_v57 = vld [vmem:[%s6814_s3 + $0x1f0] sm:$0xff]  ;;  %v3484_v58 = vld [vmem:[%s6814_s3 + $0x1c0] sm:$0xff] }
 0x34c   :  { %v2806_v50 = vpop.permute.xlu0 %2805 }
 0x34d   :  { %v3142_v21 = vsel %vm3139_vm2, %v3125_v14, %v2806_v50  ;;  %v2892_v29 = vpop.permute.xlu1 %2891  ;;  %v3441_v14 = vld [vmem:[%s6814_s3 + $0x68] sm:$0xff]  ;;  %v3474_v50 = vld [vmem:[%s6814_s3 + $0x170] sm:$0xff] }
 0x34e   :  { %v6342_v10 = vsel %vm3156_vm3, %v3153_v34, %v2892_v29  ;;  %v3456_v29 = vld [vmem:[%s6814_s3 + $0xe0] sm:$0xff] }
 0x34f   :  { %2949 = vrot.lane.b32.xlu1 %v2325_v61, %s4496_s25  ;;  %v3473_v61 = vld [vmem:[%s6814_s3 + $0x168] sm:$0xff] }
 0x350   :  { %v2868_v31 = vpop.permute.xlu0 %2867 }
 0x351   :  { %v6348_v6 = vsel %vm3156_vm3, %v3141_v23, %v2868_v31  ;;  %v2832_v53 = vpop.permute.xlu1 %2831  ;;  %v3440_v31 = vld [vmem:[%s6814_s3 + $0x60] sm:$0xff] }
 0x352   :  { %v3155_v15 = vsel %vm3139_vm2, %v3138_v35, %v2832_v53  ;;  %v3455_v53 = vld [vmem:[%s6814_s3 + $0xd8] sm:$0xff] }
 0x353   :  { %2951 = vrot.lane.b32.xlu1 %v2391_v36, %s4496_s25  ;;  %v3472_v36 = vld [vmem:[%s6814_s3 + $0x160] sm:$0xff] }
 0x354   :  { %v2802_v34 = vpop.permute.xlu0 %2801 }
 0x355   :  { %v3140_v46 = vsel %vm3139_vm2, %v3123_v0, %v2802_v34  ;;  %v2894_v63 = vpop.permute.xlu1 %2893  ;;  %v3487_v34 = vld [vmem:[%s6814_s3 + $0x1d8] sm:$0xff] }
 0x356   :  { %v6362_v24 = vsel %vm3156_vm3, %v3154_v20, %v2894_v63 }
 0x357   :  { %3075 = vrot.lane.b32.xlu1 %v2260_v12, %s4497_s26  ;;  %v3438_v12 = vld [vmem:[%s6814_s3 + $0x50] sm:$0xff] }
 0x358   :  { %v2870_v1 = vpop.permute.xlu0 %2869 }
 0x359   :  { %v6366_v4 = vsel %vm3156_vm3, %v3142_v21, %v2870_v1  ;;  %v6368_v60 = vpop.permute.xlu1 %3017  ;;  %v3489_v21 = vld [vmem:[%s6814_s3 + $0x1e8] sm:$0xff]  ;;  %v3486_v1 = vld [vmem:[%s6814_s3 + $0x1d0] sm:$0xff] }
 0x35b   :  { %3077 = vrot.lane.b32.xlu1 %v2326_v25, %s4497_s26 }
 0x35c   :  { %v2866_v17 = vpop.permute.xlu0 %2865 }
 0x35d   :  { %v6374_v40 = vsel %vm3156_vm3, %v3140_v46, %v2866_v17  ;;  %v3064_v5 = vpop.permute.xlu1 %3063  ;;  %v3454_v46 = vld [vmem:[%s6814_s3 + $0xd0] sm:$0xff]  ;;  %v3453_v17 = vld [vmem:[%s6814_s3 + $0xc8] sm:$0xff] }
 0x35e   :  { %v6379_v26 = vsel %vm3207_vm6, %v3194_v19, %v3064_v5  ;;  %v3443_v19 = vld [vmem:[%s6814_s3 + $0x78] sm:$0xff]  ;;  %v3470_v5 = vld [vmem:[%s6814_s3 + $0x150] sm:$0xff] }
 0x35f   :  { %3079 = vrot.lane.b32.xlu1 %v2392_v2, %s4497_s26  ;;  %4067 = vmatpush3.msra.mxu1 %v3443_v19 }
 0x360   :  { %v6381_v32 = vpop.permute.xlu0 %2995  ;;  %4068 = vmatprep.subr.mxu1 %v3458_v56  ;;  %v3451_v56 = vld [vmem:[%s6814_s3 + $0xb8] sm:$0xff] }
 0x361   :  { %v2896_v13 = vpop.permute.xlu1 %2895 }
 0x362   :  { %v6387_v30 = vsel %vm3156_vm3, %v3155_v15, %v2896_v13 }
 0x363   :  { %3087 = vrot.lane.b32.xlu1 %v2656_v27, %s4497_s26  ;;  %v3452_v27 = vld [vmem:[%s6814_s3 + $0xc0] sm:$0xff] }
 0x364   :  { %v6389_v44 = vpop.permute.xlu0 %2997 }
 0x365   :  { %v6392_v42 = vpop.permute.xlu1 %3019 }
 0x368   :  { %v2938_v37 = vpop.permute.xlu0 %2937 }
 0x369   :  { %v3178_v55 = vsel %vm3173_vm4, %v6145_v33, %v2938_v37  ;;  %v6396_v11 = vpop.permute.xlu1 %3021  ;;  %v3491_v33 = vld [vmem:[%s6814_s3 + $0x1f8] sm:$0xff] }
 0x36a   :  { %v6400_v51 = vsel %vm3190_vm5, %v3178_v55, %v6218_v52  ;;  %v3442_v52 = vld [vmem:[%s6814_s3 + $0x70] sm:$0xff]  ;;  %4101 = vmatprep.subr.mxu0 %v3491_v33  ;;  %v3436_v55 = vld [vmem:[%s6814_s3 + $0x40] sm:$0xff] }
 0x36b   :  { %4102 = vmatpush3.msra.mxu0 %v3475_v7  ;;  %4069 = vmatpush3.msra.mxu1 %v3442_v52  ;;  %v3468_v33 = vld [vmem:[%s6814_s3 + $0x140] sm:$0xff]  ;;  %v3435_v7 = vld [vmem:[%s6814_s3 + $0x38] sm:$0xff] }
 0x36c   :  { %v6411_v23 = vpop.permute.xlu0 %2993  ;;  %4103 = vmatprep.subr.mxu0 %v3490_v57  ;;  %4070 = vmatprep.subr.mxu1 %v3457_v16  ;;  %v6915_v16 = vld [vmem:[#allocation8_spill] sm:$0xff] }
 0x36d   :  { %v6428_v20 = vpop.permute.xlu1 %3023  ;;  %4104 = vmatpush3.msra.mxu0 %v3474_v50  ;;  %4071 = vmatpush3.msra.mxu1 %v3441_v14  ;;  %v3450_v14 = vld [vmem:[%s6814_s3 + $0xb0] sm:$0xff]  ;;  %v3467_v50 = vld [vmem:[%s6814_s3 + $0x138] sm:$0xff] }
 0x36e   :  { %4105 = vmatprep.subr.mxu0 %v3489_v21  ;;  %4072 = vmatprep.subr.mxu1 %v3456_v29  ;;  %v3434_v29 = vld [vmem:[%s6814_s3 + $0x30] sm:$0xff] }
 0x36f   :  { %4106 = vmatpush3.msra.mxu0 %v3473_v61  ;;  %4073 = vmatpush3.msra.mxu1 %v3440_v31  ;;  %v3482_v61 = vld [vmem:[%s6814_s3 + $0x1b0] sm:$0xff] }
 0x370   :  { %v2940_v39 = vpop.permute.xlu0 %2939  ;;  %4107 = vmatprep.subr.mxu0 %v3488_v9  ;;  %4074 = vmatprep.subr.mxu1 %v3455_v53  ;;  %v3466_v31 = vld [vmem:[%s6814_s3 + $0x130] sm:$0xff]  ;;  %v3433_v53 = vld [vmem:[%s6814_s3 + $0x28] sm:$0xff] }
 0x371   :  { %v3179_v35 = vsel %vm3173_vm4, %v6175_v22, %v2940_v39  ;;  %v2692_v15 = vpop.permute.xlu1 %2691  ;;  %v3439_v22 = vld [vmem:[%s6814_s3 + $0x58] sm:$0xff]  ;;  %4108 = vmatpush3.msra.mxu0 %v3472_v36  ;;  %v3449_v39 = vld [vmem:[%s6814_s3 + $0xa8] sm:$0xff] }
 0x372   :  { %v6461_v0 = vsel %vm3190_vm5, %v3179_v35, %v6251_v59  ;;  %v3471_v59 = vld [vmem:[%s6814_s3 + $0x158] sm:$0xff]  ;;  %4075 = vmatpush3.msra.mxu1 %v3439_v22  ;;  %4109 = vmatprep.subr.mxu0 %v3487_v34  ;;  %v3115_v57 = vsel %vm3105_vm0, %v6915_v16, %v2692_v15  ;;  %v3481_v36 = vld [vmem:[%s6814_s3 + $0x1a8] sm:$0xff] }
 0x373   :  { %4076 = vmatprep.subr.mxu1 %v3454_v46  ;;  %4110 = vmatpush3.msra.mxu0 %v3471_v59  ;;  %v3132_v9 = vsel %vm3122_vm1, %v3115_v57, %v6178_v8  ;;  %v6916_v15 = vld [vmem:[#allocation10_spill] sm:$0xff]  ;;  %v3448_v8 = vld [vmem:[%s6814_s3 + $0xa0] sm:$0xff] }
 0x374   :  { %v2942_v63 = vpop.permute.xlu0 %2941  ;;  %4077 = vmatpush3.msra.mxu1 %v3438_v12  ;;  %4111 = vmatprep.subr.mxu0 %v3486_v1  ;;  %v3465_v46 = vld [vmem:[%s6814_s3 + $0x128] sm:$0xff]  ;;  %v3480_v12 = vld [vmem:[%s6814_s3 + $0x1a0] sm:$0xff]  ;;  %v3447_v1 = vld [vmem:[%s6814_s3 + $0x98] sm:$0xff] }
 0x375   :  { %v3180_v25 = vsel %vm3173_vm4, %v6207_v43, %v2942_v63  ;;  %v2694_v2 = vpop.permute.xlu1 %2693  ;;  %v3437_v43 = vld [vmem:[%s6814_s3 + $0x48] sm:$0xff]  ;;  %4078 = vmatprep.subr.mxu1 %v3453_v17  ;;  %4112 = vmatpush3.msra.mxu0 %v3470_v5  ;;  %v3432_v63 = vld [vmem:[%s6814_s3 + $0x20] sm:$0xff] }
 0x376   :  { %v6491_v13 = vsel %vm3190_vm5, %v3180_v25, %v6262_v41  ;;  %v3469_v41 = vld [vmem:[%s6814_s3 + $0x148] sm:$0xff]  ;;  %4079 = vmatpush3.msra.mxu1 %v3437_v43  ;;  %4113 = vmatprep.subr.mxu0 %v3485_v47  ;;  %v3116_v22 = vsel %vm3105_vm0, %v6916_v15, %v2694_v2  ;;  %v3464_v25 = vld [vmem:[%s6814_s3 + $0x120] sm:$0xff]  ;;  %v3431_v2 = vld [vmem:[%s6814_s3 + $0x18] sm:$0xff] }
 0x377   :  { %4080 = vmatprep.subr.mxu1 %v3452_v27  ;;  %4114 = vmatpush3.msra.mxu0 %v3469_v41  ;;  %v3133_v17 = vsel %vm3122_vm1, %v3116_v22, %v6194_v48  ;;  %v3479_v43 = vld [vmem:[%s6814_s3 + $0x198] sm:$0xff]  ;;  %v3446_v27 = vld [vmem:[%s6814_s3 + $0x90] sm:$0xff] }
 0x378   :  { %v3066_v37 = vpop.permute.xlu0 %3065  ;;  %4081 = vmatpush3.msra.mxu1 %v3436_v55  ;;  %4115 = vmatprep.subr.mxu0 %v3484_v58  ;;  %v3463_v48 = vld [vmem:[%s6814_s3 + $0x118] sm:$0xff]  ;;  %v6917_v58 = vld [vmem:[#allocation9_spill] sm:$0xff] }
 0x379   :  { %v6513_v19 = vsel %vm3207_vm6, %v6400_v51, %v3066_v37  ;;  %v2696_v52 = vpop.permute.xlu1 %2695  ;;  %v3483_v51 = vld [vmem:[%s6814_s3 + $0x1b8] sm:$0xff]  ;;  %4082 = vmatprep.subr.mxu1 %v3451_v56  ;;  %4116 = vmatpush3.msra.mxu0 %v3468_v33  ;;  %v3430_v37 = vld [vmem:[%s6814_s3 + $0x10] sm:$0xff] }
 0x37a   :  { %4083 = vmatpush3.msra.mxu1 %v3435_v7  ;;  %4117 = vmatprep.subr.mxu0 %v3483_v51  ;;  %v3117_v56 = vsel %vm3105_vm0, %v6917_v58, %v2696_v52 }
 0x37b   :  { %4084 = vmatprep.subr.mxu1 %v3450_v14  ;;  %4118 = vmatpush3.msra.mxu0 %v3467_v50  ;;  %v3134_v51 = vsel %vm3122_vm1, %v3117_v56, %v6227_v62 }
 0x37c   :  { %v6535_v21 = vpop.permute.xlu0 %2943  ;;  %4085 = vmatpush3.msra.mxu1 %v3434_v29  ;;  %4119 = vmatprep.subr.mxu0 %v3482_v61 }
 0x37d   :  { %v2820_v35 = vpop.permute.xlu1 %2819  ;;  %4086 = vmatprep.subr.mxu1 %v3449_v39  ;;  %4120 = vmatpush3.msra.mxu0 %v3466_v31 }
 0x37e   :  { %v3149_v34 = vsel %vm3139_vm2, %v3132_v9, %v2820_v35  ;;  %4087 = vmatpush3.msra.mxu1 %v3433_v53  ;;  %4121 = vmatprep.subr.mxu0 %v3481_v36 }
 0x37f   :  { %4088 = vmatprep.subr.mxu1 %v3448_v8  ;;  %4122 = vmatpush3.msra.mxu0 %v3465_v46  ;;  %v3243_v46 = vrot.slane %v6379_v26, 1 }
 0x380   :  { %v3068_v59 = vpop.permute.xlu0 %3067  ;;  %4089 = vmatpush3.msra.mxu1 %v3432_v63  ;;  %4123 = vmatprep.subr.mxu0 %v3480_v12 }
 0x381   :  { %v2822_v5 = vpop.permute.xlu1 %2821  ;;  %4090 = vmatprep.subr.mxu1 %v3447_v1  ;;  %4124 = vmatpush3.msra.mxu0 %v3464_v25  ;;  %v3213_v8 = vsel %vm3207_vm6, %v6461_v0, %v3068_v59  ;;  %v3275_v0 = vmax.f32 %v6379_v26, %v3243_v46 }
 0x382   :  { %v3150_v47 = vsel %vm3139_vm2, %v3133_v17, %v2822_v5  ;;  %4091 = vmatpush3.msra.mxu1 %v3431_v2  ;;  %4125 = vmatprep.subr.mxu0 %v3479_v43  ;;  %v3245_v1 = vrot.slane %v3213_v8, 1 }
 0x383   :  { %4092 = vmatprep.subr.mxu1 %v3446_v27  ;;  %4126 = vmatpush3.msra.mxu0 %v3463_v48  ;;  %v3310_v56 = vrot.slane %v3275_v0, 5 }
 0x384   :  { %v3070_v41 = vpop.permute.xlu0 %3069  ;;  %4093 = vmatpush3.msra.mxu1 %v3430_v37 }
 0x385   :  { %v2884_v55 = vpop.permute.xlu1 %2883 }
 0x386   :  { %v6599_v33 = vsel %vm3156_vm3, %v3149_v34, %v2884_v55 }
 0x388   :  { %v6601_v7 = vpop.permute.xlu0 %2753 }
 0x389   :  { %v2824_v16 = vpop.permute.xlu1 %2823 }
 0x38a   :  { %v6606_v57 = vsel %vm3139_vm2, %v3134_v51, %v2824_v16 }
 0x38c   :  { %v2932_v14 = vpop.permute.xlu0 %2931 }
 0x38d   :  { %v3175_v50 = vsel %vm3173_vm4, %v6348_v6, %v2932_v14  ;;  %v2886_v29 = vpop.permute.xlu1 %2885 }
 0x38e   :  { %v3192_v52 = vsel %vm3190_vm5, %v3175_v50, %v6381_v32  ;;  %v6613_v61 = vsel %vm3156_vm3, %v3150_v47, %v2886_v29 }
 0x390   :  { %v2934_v39 = vpop.permute.xlu0 %2933 }
 0x391   :  { %v3176_v31 = vsel %vm3173_vm4, %v6366_v4, %v2934_v39  ;;  %v6617_v62 = vpop.permute.xlu1 %2887 }
 0x392   :  { %v3193_v9 = vsel %vm3190_vm5, %v3176_v31, %v6389_v44 }
 0x394   :  { %v2930_v35 = vpop.permute.xlu0 %2929 }
 0x395   :  { %v3174_v6 = vsel %vm3173_vm4, %v6374_v40, %v2930_v35  ;;  %v6623_v53 = vpop.permute.xlu1 %3011  ;;  %v3214_v40 = vsel %vm3207_vm6, %v6491_v13, %v3070_v41  ;;  %v3277_v13 = vmax.f32 %v3213_v8, %v3245_v1 }
 0x396   :  { %v3191_v32 = vsel %vm3190_vm5, %v3174_v6, %v6411_v23  ;;  %v3244_v23 = vrot.slane %v6513_v19, 1  ;;  %v3246_v5 = vrot.slane %v3214_v40, 1 }
 0x397   :  { %v3316_v50 = vrot.slane %v3277_v13, 3 }
 0x398   :  { %v3060_v36 = vpop.permute.xlu0 %3059  ;;  %v3276_v27 = vmax.f32 %v6513_v19, %v3244_v23  ;;  %v3278_v55 = vmax.f32 %v3214_v40, %v3246_v5  ;;  %v3181_v40 = vsel %vm3173_vm4, %v6240_v38, %v6535_v21 }
 0x399   :  { %v3209_v15 = vsel %vm3207_vm6, %v3192_v52, %v3060_v36  ;;  %v6628_v22 = vpop.permute.xlu1 %3013 }
 0x39a   :  { %v3241_v4 = vrot.slane %v3209_v15, 1  ;;  %v3313_v26 = vrot.slane %v3276_v27, 4  ;;  %v3319_v31 = vrot.slane %v3278_v55, 2 }
 0x39c   :  { %v3062_v34 = vpop.permute.xlu0 %3061  ;;  %v3273_v25 = vmax.f32 %v3209_v15, %v3241_v4 }
 0x39d   :  { %v3210_v44 = vsel %vm3207_vm6, %v3193_v9, %v3062_v34  ;;  %v6636_v12 = vpop.permute.xlu1 %2953 }
 0x39e   :  { %v3242_v63 = vrot.slane %v3210_v44, 1  ;;  %v3304_v48 = vrot.slane %v3273_v25, 7 }
 0x3a0   :  { %v3058_v17 = vpop.permute.xlu0 %3057  ;;  %v3274_v2 = vmax.f32 %v3210_v44, %v3242_v63 }
 0x3a1   :  { %v3208_v43 = vsel %vm3207_vm6, %v3191_v32, %v3058_v17  ;;  %v6641_v47 = vpop.permute.xlu1 %3015 }
 0x3a2   :  { %v3240_v59 = vrot.slane %v3208_v43, 1  ;;  %v3307_v58 = vrot.slane %v3274_v2, 6 }
 0x3a4   :  { %v3272_v41 = vmax.f32 %v3208_v43, %v3240_v59  ;;  %v2690_v37 = vpop.permute.xlu0 %2689 }
 0x3a5   :  { %v2956_v16 = vpop.permute.xlu1 %2955  ;;  %v3114_v5 = vsel %vm3105_vm0, %v6234_v54, %v2690_v37  ;;  %v3186_v54 = vsel %vm3173_vm4, %v6299_v3, %v6636_v12  ;;  %v3168_v3 = vsel %vm3156_vm3, %v6606_v57, %v6617_v62 }
 0x3a6   :  { %v3306_v51 = vsel %vm3305_vm7, %v3304_v48, %v3272_v41  ;;  %v3187_v19 = vsel %vm3173_vm4, %v6342_v10, %v2956_v16  ;;  %v3131_v38 = vsel %vm3122_vm1, %v3114_v5, %v6601_v7 }
 0x3a7   :  { %v3309_v14 = vsel %vm3308_vm8, %v3307_v58, %v3306_v51  ;;  %v3204_v52 = vsel %vm3190_vm5, %v3187_v19, %v6392_v42 }
 0x3a8   :  { %v2818_v29 = vpop.permute.xlu0 %2817  ;;  %v3312_v39 = vsel %vm3311_vm9, %v3310_v56, %v3309_v14  ;;  %v3203_v56 = vsel %vm3190_vm5, %v3186_v54, %v6368_v60  ;;  %v3462_v54 = vld [vmem:[%s6814_s3 + $0x110] sm:$0xff] }
 0x3a9   :  { %v3315_v9 = vsel %vm3314_vm10, %v3313_v26, %v3312_v39  ;;  %v2958_v35 = vpop.permute.xlu1 %2957 }
 0x3aa   :  { %v3318_v6 = vsel %vm3317_vm11, %v3316_v50, %v3315_v9  ;;  %v3188_v32 = vsel %vm3173_vm4, %v6362_v24, %v2958_v35  ;;  %v3198_v24 = vsel %vm3190_vm5, %v3181_v40, %v6273_v18  ;;  %v3148_v18 = vsel %vm3139_vm2, %v3131_v38, %v2818_v29  ;;  %v3445_v38 = vld [vmem:[%s6814_s3 + $0x88] sm:$0xff] }
 0x3ab   :  { %v3321_v10 = vsel %vm3320_vm12, %v3319_v31, %v3318_v6  ;;  %v3205_v15 = vsel %vm3190_vm5, %v3188_v32, %v6396_v11  ;;  %4094 = vmatprep.subr.mxu1 %v3445_v38 }
 0x3ac   :  { %v2882_v36 = vpop.permute.xlu0 %2881 }
 0x3ad   :  { %v3082_v4 = vpop.permute.xlu1 %3081  ;;  %v3165_v59 = vsel %vm3156_vm3, %v3148_v18, %v2882_v36  ;;  %v3478_v18 = vld [vmem:[%s6814_s3 + $0x190] sm:$0xff] }
 0x3ae   :  { %4127 = vmatprep.subr.mxu0 %v3478_v18 }
 0x3af   :  { %4128 = vmatpush3.msra.mxu0 %v3462_v54 }
 0x3b0   :  { %v3010_v42 = vpop.permute.xlu0 %3009 }
 0x3b1   :  { %v2960_v34 = vpop.permute.xlu1 %2959 }
 0x3b4   :  { %v2946_v8 = vpop.permute.xlu0 %2945 }
 0x3b5   :  { %v3084_v44 = vpop.permute.xlu1 %3083  ;;  %v3182_v13 = vsel %vm3173_vm4, %v3165_v59, %v2946_v8 }
 0x3b6   :  { %v3199_v7 = vsel %vm3190_vm5, %v3182_v13, %v3010_v42 }
 0x3b8   :  { %v3074_v46 = vpop.permute.xlu0 %3073 }
 0x3b9   :  { %v3086_v63 = vpop.permute.xlu1 %3085  ;;  %v3216_v58 = vsel %vm3207_vm6, %v3199_v7, %v3074_v46  ;;  %v3428_v7 = vld [vmem:[%s6814_s3] sm:$0xff] }
 0x3ba   :  { %v3248_v26 = vrot.slane %v3216_v58, 1  ;;  %v3222_v60 = vsel %vm3207_vm6, %v3205_v15, %v3086_v63 }
 0x3bb   :  { %v3254_v35 = vrot.slane %v3222_v60, 1 }
 0x3bc   :  { %v3072_v23 = vpop.permute.xlu0 %3071 }
 0x3bd   :  { %v3215_v1 = vsel %vm3207_vm6, %v3198_v24, %v3072_v23  ;;  %v2948_v17 = vpop.permute.xlu1 %2947  ;;  %v3286_v46 = vmax.f32 %v3222_v60, %v3254_v35 }
 0x3be   :  { %v3247_v25 = vrot.slane %v3215_v1, 1  ;;  %v3183_v27 = vsel %vm3173_vm4, %v6599_v33, %v2948_v17 }
 0x3bf   :  { %v3200_v48 = vsel %vm3190_vm5, %v3183_v27, %v6623_v53  ;;  %v3220_v53 = vsel %vm3207_vm6, %v3203_v56, %v3082_v4  ;;  %v3476_v56 = vld [vmem:[%s6814_s3 + $0x180] sm:$0xff] }
 0x3c0   :  { %v3279_v11 = vmax.f32 %v3215_v1, %v3247_v25  ;;  %v3252_v29 = vrot.slane %v3220_v53, 1  ;;  %v3335_v25 = vrot.slane %v3286_v46, 2 }
 0x3c1   :  { %v2950_v43 = vpop.permute.xlu1 %2949 }
 0x3c2   :  { %v3322_v2 = vrot.slane %v3279_v11, 1  ;;  %v3184_v37 = vsel %vm3173_vm4, %v6613_v61, %v2950_v43  ;;  %v3221_v61 = vsel %vm3207_vm6, %v3204_v52, %v3084_v44  ;;  %v3280_v52 = vmax.f32 %v3216_v58, %v3248_v26 }
 0x3c3   :  { %v3201_v51 = vsel %vm3190_vm5, %v3184_v37, %v6628_v22  ;;  %v3253_v57 = vrot.slane %v3221_v61, 1  ;;  %v3189_v22 = vsel %vm3173_vm4, %v6387_v30, %v2960_v34  ;;  %v3284_v36 = vmax.f32 %v3220_v53, %v3252_v29 }
 0x3c4   :  { %v6667_v0 = vsel %vm3323_vm13, %v3322_v2, %v3321_v10 }
 0x3c5   :  { %v2952_v21 = vpop.permute.xlu1 %2951  ;;  %v3285_v4 = vmax.f32 %v3221_v61, %v3253_v57  ;;  %v3331_v63 = vrot.slane %v3284_v36, 4  ;;  %v3341_v11 = vcombine.high %v6667_v0, %v6864_v49  ;;  %v3348_v59 = vrot.slane %v6667_v0, %v5047_v28  ;;  %v3477_v0 = vld [vmem:[%s6814_s3 + $0x188] sm:$0xff] }
 0x3c6   :  { %v3185_v14 = vsel %vm3173_vm4, %v3168_v3, %v2952_v21  ;;  %v3429_v21 = vld [vmem:[%s6814_s3 + $0x8] sm:$0xff]  ;;  %4129 = vmatprep.subr.mxu0 %v3477_v0  ;;  %v3460_v3 = vld [vmem:[%s6814_s3 + $0x100] sm:$0xff] }
 0x3c7   :  { %v3202_v31 = vsel %vm3190_vm5, %v3185_v14, %v6641_v47  ;;  %v3206_v47 = vsel %vm3190_vm5, %v3189_v22, %v6428_v20  ;;  %v3333_v24 = vrot.slane %v3285_v4, 3  ;;  %4095 = vmatpush3.msra.mxu1 %v3429_v21  ;;  %v3641_v36 = vld [vmem:[%s6816_s5 + $0x8] sm:$0xff] }
 0x3c9   :  { %v3076_v41 = vpop.permute.xlu1 %3075 }
 0x3ca   :  { %v3217_v55 = vsel %vm3207_vm6, %v3200_v48, %v3076_v41  ;;  %v3355_v48 = vrot.slane %v3341_v11, %v5047_v28  ;;  %v3444_v41 = vld [vmem:[%s6814_s3 + $0x80] sm:$0xff] }
 0x3cb   :  { %v3249_v33 = vrot.slane %v3217_v55, 1  ;;  %4096 = vmatprep.subr.mxu1 %v3444_v41 }
 0x3cc   :  { %4097 = vmatpush3.msra.mxu1 %v3428_v7 }
 0x3cd   :  { %v3281_v12 = vmax.f32 %v3217_v55, %v3249_v33  ;;  %v3078_v16 = vpop.permute.xlu1 %3077  ;;  %v3461_v33 = vld [vmem:[%s6814_s3 + $0x108] sm:$0xff]  ;;  %4412 = vmatprep.subr.mxu1 %v6864_v49 }
 0x3ce   :  { %v3218_v19 = vsel %vm3207_vm6, %v3201_v51, %v3078_v16  ;;  %4130 = vmatpush3.msra.mxu0 %v3461_v33 }
 0x3cf   :  { %v3250_v50 = vrot.slane %v3218_v19, 1  ;;  %v3325_v39 = vrot.slane %v3281_v12, 7  ;;  %4131 = vmatprep.subr.mxu0 %v3476_v56 }
 0x3d0   :  { %4132 = vmatpush3.msra.mxu0 %v3460_v3 }
 0x3d1   :  { %v3282_v62 = vmax.f32 %v3218_v19, %v3250_v50  ;;  %v3080_v9 = vpop.permute.xlu1 %3079  ;;  %v3326_v15 = vsel %vm3305_vm7, %v3325_v39, %v3280_v52 }
 0x3d2   :  { %v3219_v6 = vsel %vm3207_vm6, %v3202_v31, %v3080_v9 }
 0x3d3   :  { %v3327_v32 = vrot.slane %v3282_v62, 6  ;;  %v3251_v10 = vrot.slane %v3219_v6, 1 }
 0x3d5   :  { %v3328_v42 = vsel %vm3308_vm8, %v3327_v32, %v3326_v15  ;;  %v3283_v8 = vmax.f32 %v3219_v6, %v3251_v10  ;;  %v3088_v44 = vpop.permute.xlu1 %3087  ;;  %v3643_v32 = vld [vmem:[%s6816_s5 + $0x18] sm:$0xff]  ;;  %v3642_v10 = vld [vmem:[%s6816_s5 + $0x10] sm:$0xff]  ;;  %v3640_v15 = vld [vmem:[%s6816_s5] sm:$0xff] }
 0x3d6   :  { %v3223_v30 = vsel %vm3207_vm6, %v3206_v47, %v3088_v44 }
 0x3d7   :  { %v3329_v34 = vrot.slane %v3283_v8, 5  ;;  %v3255_v40 = vrot.slane %v3223_v30, 1 }
 0x3d9   :  { %v3330_v23 = vsel %vm3311_vm9, %v3329_v34, %v3328_v42  ;;  %v3287_v1 = vmax.f32 %v3223_v30, %v3255_v40  ;;  %v3921_v42 = vld [vmem:[%s6815_s4] ss:$0 sm:$0xff] }
 0x3da   :  { %v3332_v17 = vsel %vm3314_vm10, %v3331_v63, %v3330_v23  ;;  %v3727_v23 = vld [vmem:[%s6818_s7 + $0x10] sm:$0xff] }
 0x3db   :  { %v3334_v5 = vsel %vm3317_vm11, %v3333_v24, %v3332_v17  ;;  %v3337_v20 = vrot.slane %v3287_v1, 1  ;;  %v3728_v24 = vld [vmem:[%s6818_s7 + $0x18] sm:$0xff]  ;;  %v3726_v1 = vld [vmem:[%s6818_s7 + $0x8] sm:$0xff]  ;;  %v3922_v17 = vld [vmem:[%s6817_s6] ss:$0 sm:$0xff] }
 0x3dc   :  { %v3336_v2 = vsel %vm3320_vm12, %v3335_v25, %v3334_v5  ;;  %v3725_v25 = vld [vmem:[%s6818_s7] sm:$0xff]  ;;  %s3816_s7 = sshll.u32 %s4499_s14, 4  ;;  %s3817_s7 = int_to_ptr.vmem [resolvable:$true] %s3816_s7 }
 0x3dd   :  { %v3338_v43 = vsel %vm3323_vm13, %v3337_v20, %v3336_v2  ;;  %s4461_s15 = scalar_lea.vmem %s3817_s7, 32  ;;  %p4466_p1 = scmp.lt.s32.totalorder %s3817_s7, %s3817_s7 }
 0x3de   :  { %v3356_v27 = vcombine.high %v3338_v43, %v6864_v49  ;;  %v3363_v13 = vrot.slane %v3338_v43, %v5047_v28  ;;  %v3924_v43 = vld [vmem:[%s6819_s8] ss:$0 sm:$0xff]  ;;  %p4462_p0 = scmp.ne.s32.totalorder %s3817_s7, %s4461_s15  ;;  %p4467_p2 = scmp.lt.s32.totalorder %s4461_s15, %s4461_s15 }
 0x3e0   :  { %v3370_v37 = vrot.slane %v3356_v27, %v5047_v28  ;;  %v3371_v55 = vcombine.low %v3348_v59, %v3363_v13  ;;  %v3372_v58 = vcombine.high %v3348_v59, %v3363_v13  ;;  %p4468_p3 = por %p4467_p2, %p4466_p1 }
 0x3e2   :  { %v3387_v53 = vcombine.low %v3355_v48, %v3370_v37  ;;  %v3388_v28 = vcombine.high %v3355_v48, %v3370_v37  ;;  %v3379_v12 = vrot.slane %v3371_v55, %v5058_v45  ;;  %v3386_v51 = vrot.slane %v3372_v58, %v5058_v45  ;;  %p4469_p4 = pnand %p4468_p3, %p4462_p0 }
 0x3e4   :  { %v3403_v16 = vcombine.high %v3379_v12, %v6864_v49  ;;  %v3404_v61 = vcombine.high %v3386_v51, %v6864_v49  ;;  %v3395_v26 = vrot.slane %v3387_v53, %v5058_v45  ;;  %v3402_v14 = vrot.slane %v3388_v28, %v5058_v45 }
 0x3e6   :  { %v4451_v19 = vpack.i.bf16 %v3403_v16, %v3404_v61  ;;  %v3405_v60 = vcombine.high %v3395_v26, %v6864_v49  ;;  %v3406_v50 = vcombine.high %v3402_v14, %v6864_v49 }
 0x3e8   :  { %4452 = vrot.lane.b32.xlu0 %v4451_v19, %s4486_s18  ;;  %v4456_v29 = vpack.i.bf16 %v3405_v60, %v3406_v50 }
 0x3ea   :  { %4457 = vrot.lane.b32.xlu1 %v4456_v29, %s4486_s18 }
 0x45a   :  { %v4453_v39 = vpop.permute.xlu0 %4452 }
 0x45b   :  { %v4455_v57 = vunpack.i.h.bf16 %v4453_v39  ;;  %v4454_v62 = vunpack.i.l.bf16 %v4453_v39 }
 0x45c   :  { %v4458_v31 = vpop.permute.xlu1 %4457 }
 0x45d   :  { %v3424_v9 = vsel %vm3423_vm14, %v3379_v12, %v4455_v57  ;;  %v4460_v22 = vunpack.i.h.bf16 %v4458_v31  ;;  %v4459_v52 = vunpack.i.l.bf16 %v4458_v31  ;;  %v3425_v35 = vsel %vm3423_vm14, %v3386_v51, %v4454_v62 }
 0x45e   :  { %3563 = vmatprep.mubr.f32.mxu1 %v3425_v35 }
 0x45f   :  { %v3426_v45 = vsel %vm3423_vm14, %v3395_v26, %v4460_v22  ;;  %3564 = vmatmul.mubr.f32.vlgmr.msra.gmra.mxu1 %v3424_v9  ;;  %v3427_v6 = vsel %vm3423_vm14, %v3402_v14, %v4459_v52 }
 0x460   :  { %3633 = vmatprep.mubr.f32.mxu0 %v3427_v6  ;;  %4413 = vmatpush3.msra.mxu1 %v3643_v32 }
 0x461   :  { %3634 = vmatmul.mubr.f32.vlgmr.msra.gmra.mxu0 %v3426_v45  ;;  %4420 = vmatprep.mubr.msk.f32.mxu1 %vm4498_vm15, %v6864_v49 }
 0x462   :  { %4414 = vmatprep.subr.mxu1 %v6864_v49 }
 0x463   :  { %4415 = vmatpush3.msra.mxu1 %v3642_v10 }
 0x464   :  { %4416 = vmatprep.subr.mxu1 %v6864_v49 }
 0x465   :  { %4417 = vmatpush3.msra.mxu1 %v3641_v36 }
 0x466   :  { %4418 = vmatprep.subr.mxu1 %v6864_v49 }
 0x467   :  { %4419 = vmatpush3.msra.mxu1 %v3640_v15 }
 0x468   :  { %4423 = vmatprep.subr.mxu1 %v6864_v49 }
 0x51f   :  { %v4098_v4 = vpop.f32.mrf.mxu1 }
 0x521   :  { %v4099_v8 = vpop.f32.mrf.mxu1  ;;  %v4133_v47 = vpop.f32.mrf.mxu0 }
 0x522   :  { %v4100_v44 = vadd.f32 %v4099_v8, %v4098_v4 }
 0x523   :  { %v4134_v46 = vpop.f32.mrf.mxu0 }
 0x524   :  { %v3566_v30 = vadd.f32 %v4100_v44, %v3921_v42  ;;  %v4135_v34 = vadd.f32 %v4134_v46, %v4133_v47 }
 0x526   :  { %v3636_v40 = vadd.f32 %v4135_v34, %v3566_v30 }
 0x528   :  { %v3639_v63 = vmax.f32 %v3636_v40, 0.0 }
 0x52a   :  { %4421 = vmatmul.mubr.msk.f32.vlgmr.msra.gmra.mxu1 %vm3156_vm3, %v3639_v63 }
 0x52b   :  { %4424 = vmatpush3.msra.mxu1 %v3728_v24  ;;  %4431 = vmatprep.mubr.msk.f32.mxu1 %vm4498_vm15, %v6864_v49 }
 0x52c   :  { %4425 = vmatprep.subr.mxu1 %v6864_v49 }
 0x52d   :  { %4426 = vmatpush3.msra.mxu1 %v3727_v23 }
 0x52e   :  { %4427 = vmatprep.subr.mxu1 %v6864_v49 }
 0x52f   :  { %4428 = vmatpush3.msra.mxu1 %v3726_v1 }
 0x530   :  { %4429 = vmatprep.subr.mxu1 %v6864_v49 }
 0x531   :  { %4430 = vmatpush3.msra.mxu1 %v3725_v25 }
 0x5ea   :  { %v3720_v11 = vpop.f32.mrf.mxu1 }
 0x5eb   :  { %v3721_v5 = vadd.f32 %v3922_v17, %v3720_v11 }
 0x5ec   :  { %v4422_v20 = vpop.f32.mrf.mxu1 }
 0x5ed   :  { %v3724_v2 = vmax.f32 %v3721_v5, 0.0 }
 0x5ef   :  { %4432 = vmatmul.mubr.msk.f32.vlgmr.msra.gmra.mxu1 %vm3156_vm3, %v3724_v2 }
 0x6af   :  { %v3805_v38 = vpop.f32.mrf.mxu1 }
 0x6b0   :  { %v3806_v18 = vadd.f32 %v3924_v43, %v3805_v38 }
 0x6b1   :  { %v4433_v49 = vpop.f32.mrf.mxu1 }
 0x6b2   :  { %3809 = vst [vmem:[#allocation2] sm:$0x3] %v3806_v18 }
 0x6b3   :  { %4472 = shalt.err (!%p4469_p4)
}
 0x6b4   :  { %3819 = dma.vmem_to_hbm [thread:$0]  %s3817_s7, 32, %s6820_s9, [#allocation3]  }
 0x6b5   :  { %4481 = dma.done.wait [#allocation3], 32  }
 0x6b6   :  { %4482 = vsyncadd [#allocation3], 4294967264 }
 0x6b7   :  { %3823 = vsyncpa [#allocation3], 1 }

</bundles_post_ra>
